<compile_context>
chip_gen: v7x
topology: tpu7x:2x2x1
jax: 0.10.0
libtpu: 0.0.40
codegen_flags: <defaults>
</compile_context>

<pallas_src>
import functools

import jax
import jax.numpy as jnp
from jax.experimental import pallas as pl
from jax.experimental.pallas import tpu as pltpu


def _round_up(x: int, m: int) -> int:
    return (x + m - 1) // m * m


def _largest_divisor_leq(n: int, cap: int) -> int:
    cap = max(1, min(cap, n))
    for d in range(cap, 0, -1):
        if n % d == 0:
            return d
    return 1


# --------------------------------------------------------------------------
# Fused kernel: Linear + bias + de-patchify, writes (r*p, W) output blocks.
# --------------------------------------------------------------------------
def _depatch_fused_kernel(x_ref, w_ref, b_ref, o_ref, *, r, w_cols, p):
    """One grid step = one batch image x r patch-rows (T = r*w_cols tokens).

    x_ref: (1, T, E)  activations (caller dtype, cast to bf16 in-kernel)
    w_ref: (E, p*p)   bf16 weight (VMEM-resident)
    b_ref: (1, p*p)   f32 bias    (VMEM-resident)
    o_ref: (1, 1, r*p, w_cols*p)  block of the final (B, 1, H, W) output
    """
    P2 = p * p
    xb = x_ref[0].astype(jnp.bfloat16)                      # in-kernel cast (VPU)
    acc = jnp.dot(xb, w_ref[...], preferred_element_type=jnp.float32)
    acc = acc + b_ref[...]                                  # f32 bias add (v5e-safe)

    # De-patchify relayout: acc[rr*w_+ww, p1*p+p2] -> out[rr*p+p1, ww*p+p2].
    # Only layout-trivial reshapes (8-aligned second-minor), minormost swaps
    # (XLU) and a static lane-concat are used; XLU/VPU slots are idle in this
    # HBM-bound kernel so the relayout is effectively free.
    a = acc.reshape(r, w_cols, P2)                          # leading split (w_cols % 8 == 0)
    a = jnp.swapaxes(a, -1, -2)                             # (r, P2, w_cols)
    a = a.reshape(r, p, p, w_cols)                          # split P2 -> (p1, p2); p % 8 == 0
    a = jnp.swapaxes(a, -1, -2)                             # (r, p1, w_cols, p2)
    a = jnp.concatenate([a[:, :, j, :] for j in range(w_cols)], axis=-1)  # (r, p, W)
    o_ref[0, 0] = a.reshape(r * p, w_cols * p).astype(o_ref.dtype)


def depatch_fused(x, w_t, b2d, out_dtype, *, h_, w_cols, p, r):
    """x: (B, N, E); returns (B, 1, H, W) in out_dtype with the rearrange fused."""
    B, N, E = x.shape
    P2 = p * p
    H, W = h_ * p, w_cols * p
    Tm = r * w_cols
    grid = (B, h_ // r)

    bytes_acc = (B * N * E * x.dtype.itemsize
                 + E * P2 * w_t.dtype.itemsize + P2 * 4
                 + B * H * W * jnp.dtype(out_dtype).itemsize)
    cost = pl.CostEstimate(flops=2 * B * N * E * P2, transcendentals=0,
                           bytes_accessed=bytes_acc)

    kernel = functools.partial(_depatch_fused_kernel, r=r, w_cols=w_cols, p=p)
    return pl.pallas_call(
        kernel,
        out_shape=jax.ShapeDtypeStruct((B, 1, H, W), out_dtype),
        grid_spec=pltpu.PrefetchScalarGridSpec(
            num_scalar_prefetch=0,
            grid=grid,
            in_specs=[
                pl.BlockSpec((1, Tm, E), lambda b, i: (b, i, 0)),   # streamed token rows
                pl.BlockSpec((E, P2), lambda b, i: (0, 0)),         # VMEM-resident weight
                pl.BlockSpec((1, P2), lambda b, i: (0, 0)),         # VMEM-resident bias
            ],
            out_specs=pl.BlockSpec((1, 1, r * p, W), lambda b, i: (b, 0, i, 0)),
        ),
        compiler_params=pltpu.CompilerParams(
            dimension_semantics=("parallel", "parallel"),   # megacore-friendly grid
            vmem_limit_bytes=32 * 1024 * 1024,              # fits v7x's 64 MiB physical VMEM
        ),
        cost_estimate=cost,
    )(x, w_t, b2d)


# --------------------------------------------------------------------------
# Fallback kernel: plain token-tiled Linear (+ XLA-side rearrange afterwards).
# --------------------------------------------------------------------------
def _linear_bias_kernel(x_ref, w_ref, b_ref, o_ref):
    xb = x_ref[...].astype(jnp.bfloat16)                    # in-kernel cast (VPU)
    acc = jnp.dot(xb, w_ref[...], preferred_element_type=jnp.float32)
    o_ref[...] = (acc + b_ref[...]).astype(o_ref.dtype)


def pallas_linear(x2d, w_t, b2d, out_dtype, *, tile_m=1024):
    """x2d: (M, E) any float dtype, w_t: (E, P2) bf16, b2d: (1, P2) f32 -> (M, P2)."""
    M, E = x2d.shape
    P2 = w_t.shape[1]

    # Lane-dense output: pad feature dim up to 128 only when P2 < 128.
    P2p = 128 if P2 < 128 else P2
    if P2p != P2:
        w_t = jnp.pad(w_t, ((0, 0), (0, P2p - P2)))
        b2d = jnp.pad(b2d, ((0, 0), (0, P2p - P2)))

    Mp8 = _round_up(M, 8)
    tm = min(_round_up(max(tile_m, 8), 8), Mp8)
    if Mp8 // tm < 2 and Mp8 >= 16:       # keep >= 2 grid steps (v7x two-TC split)
        tm = _round_up(Mp8 // 2, 8)
    Mp = _round_up(M, tm)
    if Mp != M:
        x2d = jnp.pad(x2d, ((0, Mp - M), (0, 0)))

    cost = pl.CostEstimate(
        flops=2 * Mp * E * P2p, transcendentals=0,
        bytes_accessed=(Mp * E * x2d.dtype.itemsize + E * P2p * w_t.dtype.itemsize
                        + P2p * 4 + Mp * P2p * jnp.dtype(out_dtype).itemsize))

    y = pl.pallas_call(
        _linear_bias_kernel,
        out_shape=jax.ShapeDtypeStruct((Mp, P2p), out_dtype),
        grid_spec=pltpu.PrefetchScalarGridSpec(
            num_scalar_prefetch=0,
            grid=(Mp // tm,),
            in_specs=[
                pl.BlockSpec((tm, E), lambda i: (i, 0)),
                pl.BlockSpec((E, P2p), lambda i: (0, 0)),
                pl.BlockSpec((1, P2p), lambda i: (0, 0)),
            ],
            out_specs=pl.BlockSpec((tm, P2p), lambda i: (i, 0)),
        ),
        compiler_params=pltpu.CompilerParams(
            dimension_semantics=("parallel",),
            vmem_limit_bytes=32 * 1024 * 1024,
        ),
        cost_estimate=cost,
    )(x2d, w_t, b2d)

    if Mp != M or P2p != P2:
        y = y[:M, :P2]
    return y


# --------------------------------------------------------------------------
# Module wrapper
# --------------------------------------------------------------------------
class SDePatchPallas:
    """JAX/Pallas port of S_DePatch."""

    def __init__(self, channel=16, embed_dim=128, patch_size=16, key=None,
                 out_dtype=jnp.bfloat16, tokens_per_step=1024):
        self.patch_size = patch_size
        self.embed_dim = embed_dim
        self.out_dtype = out_dtype
        self.tokens_per_step = tokens_per_step
        if key is None:
            key = jax.random.PRNGKey(42)
        kw, kb = jax.random.split(key)
        p2 = patch_size ** 2
        bound = float(embed_dim) ** -0.5
        # nn.Linear(embed_dim, patch_size**2): weight (out, in), bias (out,); f32 master.
        self.weight = jax.random.uniform(kw, (p2, embed_dim), jnp.float32, -bound, bound)
        self.bias = jax.random.uniform(kb, (p2,), jnp.float32, -bound, bound)
        # Pre-transposed / pre-reshaped kernel operands (no per-call transpose).
        self.w_t = self.weight.T.astype(jnp.bfloat16)                 # (E, P2)
        self.b2d = self.bias.reshape(1, -1).astype(jnp.float32)       # (1, P2)

    def __call__(self, x, ori):
        b, c, h, w = ori
        p = self.patch_size
        h_, w_ = h // p, w // p
        B, N, E = x.shape
        assert N == h_ * w_ and E == self.embed_dim

        # Fused path requires a layout-friendly relayout decomposition.
        fuse_ok = (w_ % 8 == 0) and (p % 8 == 0) and (h_ >= 1)
        if fuse_ok:
            r_max = max(1, self.tokens_per_step // w_)
            if B == 1 and h_ >= 2:
                r_max = min(r_max, max(1, h_ // 2))   # keep >= 2 grid steps on v7x
            r = _largest_divisor_leq(h_, r_max)
            try:
                out = depatch_fused(x, self.w_t, self.b2d, self.out_dtype,
                                    h_=h_, w_cols=w_, p=p, r=r)
                # Surfaces any lowering/dispatch problem here so the fallback
                # below can take over (no-op on tracers when jitted).
                return jax.block_until_ready(out)
            except Exception:
                # TODO(synk): drop this fallback once the fused relayout is
                # confirmed to lower on every targeted Mosaic version.
                pass

        # Fallback: token-tiled Linear kernel + XLA-side de-patchify (bf16).
        y = pallas_linear(x.reshape(B * N, E), self.w_t, self.b2d, self.out_dtype,
                          tile_m=max(self.tokens_per_step, 8))          # (B*N, P2)
        y = y.reshape(B, h_, w_, p, p)
        y = jnp.transpose(y, (0, 1, 3, 2, 4))                           # (B, h_, p, w_, p)
        return y.reshape(B, 1, h_ * p, w_ * p)


if __name__ == "__main__":
    # Small shapes consistent with the forward pass: patch_size=16 (module
    # default, so P2=256 and W=128 are lane-dense), embed_dim=128,
    # 128x128 image -> 8x8 = 64 tokens per image, batch=2.
    batch = 2
    patch_size = 16
    embed_dim = 128
    H = W = 128
    h_, w_ = H // patch_size, W // patch_size
    ori = (batch, 4, H, W)                     # original (b, c, h, w); shape only

    key = jax.random.PRNGKey(0)
    kx, kmod = jax.random.split(key)
    x = jax.random.normal(kx, (batch, h_ * w_, embed_dim), jnp.float32)

    # tokens_per_step=32 -> r=4 patch-rows per step -> a 2x2 grid even at this
    # tiny demo size, so the pipelined/megacore-split path is exercised.
    mod = SDePatchPallas(channel=16, embed_dim=embed_dim, patch_size=patch_size,
                         key=kmod, tokens_per_step=32)
    out = jax.block_until_ready(mod(x, ori))
    assert out.shape == (batch, 1, H, W), out.shape

    # Cross-check against a pure-JAX f32 reference (bf16 operands + bf16 store
    # => loose tolerance).
    ref = x.reshape(-1, embed_dim) @ mod.weight.T + mod.bias
    ref = ref.reshape(batch, h_, w_, patch_size, patch_size)
    ref = jnp.transpose(ref, (0, 1, 3, 2, 4)).reshape(batch, 1, H, W)
    out_f32 = out.astype(jnp.float32)
    assert jnp.allclose(out_f32, ref, atol=6e-2, rtol=6e-2), float(
        jnp.max(jnp.abs(out_f32 - ref)))

    print("KERNEL_OK")
</pallas_src>

<mosaic_0001>
module attributes {stable_mosaic.version = 11 : i64} {
  func.func @_depatch_fused_kernel(%arg0: i32, %arg1: i32, %arg2: memref<1x32x128xf32, #tpu.memory_space<vmem>>, %arg3: memref<128x256xbf16, #tpu.memory_space<vmem>>, %arg4: memref<1x256xf32, #tpu.memory_space<vmem>>, %arg5: memref<1x1x64x128xbf16, #tpu.memory_space<vmem>>) attributes {dimension_semantics = [#tpu.dimension_semantics<parallel>, #tpu.dimension_semantics<parallel>], iteration_bounds = array<i64: 2, 2>, scalar_prefetch = 0 : i64, scratch_operands = 0 : i64, tpu.core_type = #tpu.core_type<tc>, window_params = [{transform_indices = @transform_0, window_bounds = array<i64: 1, 32, 128>}, {pipeline_mode = #tpu.pipeline_mode<synchronous>, transform_indices = @transform_1, window_bounds = array<i64: 128, 256>}, {pipeline_mode = #tpu.pipeline_mode<synchronous>, transform_indices = @transform_2, window_bounds = array<i64: 1, 256>}, {transform_indices = @transform_3, window_bounds = array<i64: 1, 1, 64, 128>}]} {
    %c0 = arith.constant 0 : index
    %c0_0 = arith.constant 0 : index
    %c0_1 = arith.constant 0 : index
    %0 = vector.load %arg2[%c0, %c0_0, %c0_1] : memref<1x32x128xf32, #tpu.memory_space<vmem>>, vector<1x32x128xf32>
    %1 = vector.shape_cast %0 : vector<1x32x128xf32> to vector<32x128xf32>
    %2 = arith.truncf %1 : vector<32x128xf32> to vector<32x128xbf16>
    %c0_2 = arith.constant 0 : index
    %c0_3 = arith.constant 0 : index
    %3 = vector.load %arg3[%c0_2, %c0_3] : memref<128x256xbf16, #tpu.memory_space<vmem>>, vector<128x256xbf16>
    %cst = arith.constant dense<0.000000e+00> : vector<32x256xf32>
    %4 = tpu.matmul %2, %3, %cst {dimension_numbers = #tpu.dot_dimension_numbers<[1], [0], [0], [1], [0, 0, 1, 1], [], []>} : vector<32x128xbf16>, vector<128x256xbf16>, vector<32x256xf32> -> vector<32x256xf32>
    %c0_4 = arith.constant 0 : index
    %c0_5 = arith.constant 0 : index
    %5 = vector.load %arg4[%c0_4, %c0_5] : memref<1x256xf32, #tpu.memory_space<vmem>>, vector<1x256xf32>
    %6 = vector.broadcast %5 : vector<1x256xf32> to vector<32x256xf32>
    %7 = arith.addf %4, %6 : vector<32x256xf32>
    %8 = vector.shape_cast %7 : vector<32x256xf32> to vector<4x8x256xf32>
    %9 = tpu.transpose %8, [0, 2, 1] : vector<4x8x256xf32> -> vector<4x256x8xf32>
    %10 = vector.shape_cast %9 : vector<4x256x8xf32> to vector<4x16x16x8xf32>
    %11 = tpu.transpose %10, [0, 1, 3, 2] : vector<4x16x16x8xf32> -> vector<4x16x8x16xf32>
    %12 = vector.extract_strided_slice %11 {offsets = [0, 0, 0, 0], sizes = [4, 16, 1, 16], strides = [1, 1, 1, 1]} : vector<4x16x8x16xf32> to vector<4x16x1x16xf32>
    %13 = vector.shape_cast %12 : vector<4x16x1x16xf32> to vector<4x16x16xf32>
    %14 = vector.extract_strided_slice %11 {offsets = [0, 0, 1, 0], sizes = [4, 16, 1, 16], strides = [1, 1, 1, 1]} : vector<4x16x8x16xf32> to vector<4x16x1x16xf32>
    %15 = vector.shape_cast %14 : vector<4x16x1x16xf32> to vector<4x16x16xf32>
    %16 = vector.extract_strided_slice %11 {offsets = [0, 0, 2, 0], sizes = [4, 16, 1, 16], strides = [1, 1, 1, 1]} : vector<4x16x8x16xf32> to vector<4x16x1x16xf32>
    %17 = vector.shape_cast %16 : vector<4x16x1x16xf32> to vector<4x16x16xf32>
    %18 = vector.extract_strided_slice %11 {offsets = [0, 0, 3, 0], sizes = [4, 16, 1, 16], strides = [1, 1, 1, 1]} : vector<4x16x8x16xf32> to vector<4x16x1x16xf32>
    %19 = vector.shape_cast %18 : vector<4x16x1x16xf32> to vector<4x16x16xf32>
    %20 = vector.extract_strided_slice %11 {offsets = [0, 0, 4, 0], sizes = [4, 16, 1, 16], strides = [1, 1, 1, 1]} : vector<4x16x8x16xf32> to vector<4x16x1x16xf32>
    %21 = vector.shape_cast %20 : vector<4x16x1x16xf32> to vector<4x16x16xf32>
    %22 = vector.extract_strided_slice %11 {offsets = [0, 0, 5, 0], sizes = [4, 16, 1, 16], strides = [1, 1, 1, 1]} : vector<4x16x8x16xf32> to vector<4x16x1x16xf32>
    %23 = vector.shape_cast %22 : vector<4x16x1x16xf32> to vector<4x16x16xf32>
    %24 = vector.extract_strided_slice %11 {offsets = [0, 0, 6, 0], sizes = [4, 16, 1, 16], strides = [1, 1, 1, 1]} : vector<4x16x8x16xf32> to vector<4x16x1x16xf32>
    %25 = vector.shape_cast %24 : vector<4x16x1x16xf32> to vector<4x16x16xf32>
    %26 = vector.extract_strided_slice %11 {offsets = [0, 0, 7, 0], sizes = [4, 16, 1, 16], strides = [1, 1, 1, 1]} : vector<4x16x8x16xf32> to vector<4x16x1x16xf32>
    %27 = vector.shape_cast %26 : vector<4x16x1x16xf32> to vector<4x16x16xf32>
    %28 = tpu.concatenate %13, %15, %17, %19, %21, %23, %25, %27 in 2 : vector<4x16x16xf32>, vector<4x16x16xf32>, vector<4x16x16xf32>, vector<4x16x16xf32>, vector<4x16x16xf32>, vector<4x16x16xf32>, vector<4x16x16xf32>, vector<4x16x16xf32> -> vector<4x16x128xf32>
    %29 = vector.shape_cast %28 : vector<4x16x128xf32> to vector<64x128xf32>
    %30 = arith.truncf %29 : vector<64x128xf32> to vector<64x128xbf16>
    %c0_6 = arith.constant 0 : index
    %c0_7 = arith.constant 0 : index
    %c0_8 = arith.constant 0 : index
    %c0_9 = arith.constant 0 : index
    %31 = vector.load %arg5[%c0_6, %c0_7, %c0_8, %c0_9] : memref<1x1x64x128xbf16, #tpu.memory_space<vmem>>, vector<1x1x64x128xbf16>
    %32 = vector.shape_cast %31 : vector<1x1x64x128xbf16> to vector<64x128xbf16>
    %33 = vector.shape_cast %30 : vector<64x128xbf16> to vector<1x1x64x128xbf16>
    tpu.vector_store %arg5[%c0_6, %c0_7, %c0_8, %c0_9], %33 {strides = array<i32>} : memref<1x1x64x128xbf16, #tpu.memory_space<vmem>>, vector<1x1x64x128xbf16>,
    return
  }
  func.func @transform_0(%arg0: i32, %arg1: i32) -> (i32, i32, i32) {
    %c0_i32 = arith.constant 0 : i32
    %c0_i32_0 = arith.constant 0 : i32
    return %arg0, %arg1, %c0_i32 : i32, i32, i32
  }
  func.func @transform_1(%arg0: i32, %arg1: i32) -> (i32, i32) {
    %c0_i32 = arith.constant 0 : i32
    %c0_i32_0 = arith.constant 0 : i32
    %c0_i32_1 = arith.constant 0 : i32
    return %c0_i32, %c0_i32_0 : i32, i32
  }
  func.func @transform_2(%arg0: i32, %arg1: i32) -> (i32, i32) {
    %c0_i32 = arith.constant 0 : i32
    %c0_i32_0 = arith.constant 0 : i32
    %c0_i32_1 = arith.constant 0 : i32
    return %c0_i32, %c0_i32_0 : i32, i32
  }
  func.func @transform_3(%arg0: i32, %arg1: i32) -> (i32, i32, i32, i32) {
    %c0_i32 = arith.constant 0 : i32
    %c0_i32_0 = arith.constant 0 : i32
    %c0_i32_1 = arith.constant 0 : i32
    return %arg0, %c0_i32, %arg1, %c0_i32_0 : i32, i32, i32, i32
  }
}

module attributes {stable_mosaic.version = 11 : i64} {
  func.func @_linear_bias_kernel(%arg0: i32, %arg1: memref<32x128xf32, #tpu.memory_space<vmem>>, %arg2: memref<128x256xbf16, #tpu.memory_space<vmem>>, %arg3: memref<1x256xf32, #tpu.memory_space<vmem>>, %arg4: memref<32x256xbf16, #tpu.memory_space<vmem>>) attributes {dimension_semantics = [#tpu.dimension_semantics<parallel>], iteration_bounds = array<i64: 4>, scalar_prefetch = 0 : i64, scratch_operands = 0 : i64, tpu.core_type = #tpu.core_type<tc>, window_params = [{transform_indices = @transform_0, window_bounds = array<i64: 32, 128>}, {pipeline_mode = #tpu.pipeline_mode<synchronous>, transform_indices = @transform_1, window_bounds = array<i64: 128, 256>}, {pipeline_mode = #tpu.pipeline_mode<synchronous>, transform_indices = @transform_2, window_bounds = array<i64: 1, 256>}, {transform_indices = @transform_3, window_bounds = array<i64: 32, 256>}]} {
    %c0 = arith.constant 0 : index
    %c0_0 = arith.constant 0 : index
    %0 = vector.load %arg1[%c0, %c0_0] : memref<32x128xf32, #tpu.memory_space<vmem>>, vector<32x128xf32>
    %1 = arith.truncf %0 : vector<32x128xf32> to vector<32x128xbf16>
    %c0_1 = arith.constant 0 : index
    %c0_2 = arith.constant 0 : index
    %2 = vector.load %arg2[%c0_1, %c0_2] : memref<128x256xbf16, #tpu.memory_space<vmem>>, vector<128x256xbf16>
    %cst = arith.constant dense<0.000000e+00> : vector<32x256xf32>
    %3 = tpu.matmul %1, %2, %cst {dimension_numbers = #tpu.dot_dimension_numbers<[1], [0], [0], [1], [0, 0, 1, 1], [], []>} : vector<32x128xbf16>, vector<128x256xbf16>, vector<32x256xf32> -> vector<32x256xf32>
    %c0_3 = arith.constant 0 : index
    %c0_4 = arith.constant 0 : index
    %4 = vector.load %arg3[%c0_3, %c0_4] : memref<1x256xf32, #tpu.memory_space<vmem>>, vector<1x256xf32>
    %5 = vector.broadcast %4 : vector<1x256xf32> to vector<32x256xf32>
    %6 = arith.addf %3, %5 : vector<32x256xf32>
    %7 = arith.truncf %6 : vector<32x256xf32> to vector<32x256xbf16>
    %c0_5 = arith.constant 0 : index
    %c0_6 = arith.constant 0 : index
    %8 = vector.load %arg4[%c0_5, %c0_6] : memref<32x256xbf16, #tpu.memory_space<vmem>>, vector<32x256xbf16>
    tpu.vector_store %arg4[%c0_5, %c0_6], %7 {strides = array<i32>} : memref<32x256xbf16, #tpu.memory_space<vmem>>, vector<32x256xbf16>,
    return
  }
  func.func @transform_0(%arg0: i32) -> (i32, i32) {
    %c0_i32 = arith.constant 0 : i32
    %c0_i32_0 = arith.constant 0 : i32
    return %arg0, %c0_i32 : i32, i32
  }
  func.func @transform_1(%arg0: i32) -> (i32, i32) {
    %c0_i32 = arith.constant 0 : i32
    %c0_i32_0 = arith.constant 0 : i32
    %c0_i32_1 = arith.constant 0 : i32
    return %c0_i32, %c0_i32_0 : i32, i32
  }
  func.func @transform_2(%arg0: i32) -> (i32, i32) {
    %c0_i32 = arith.constant 0 : i32
    %c0_i32_0 = arith.constant 0 : i32
    %c0_i32_1 = arith.constant 0 : i32
    return %c0_i32, %c0_i32_0 : i32, i32
  }
  func.func @transform_3(%arg0: i32) -> (i32, i32) {
    %c0_i32 = arith.constant 0 : i32
    %c0_i32_0 = arith.constant 0 : i32
    return %arg0, %c0_i32 : i32, i32
  }
}

</mosaic_0001>

<bundles_post_ra>
// kernel: tpu_custom_call.1
= control target key start
LH: loop header
LB: loop body
LE: loop exit
PB: predicated region body
PF: predicated region fallthrough
CT: control target
= control target key end

     0   :  { %s7156_s0 = inlined_call_operand.hbm [shape: f32[2,64,128], index: 0, kind: input, shape index: {}]   ;;  %s7157_s1 = inlined_call_operand.hbm [shape: bf16[128,256], index: 1, kind: input, shape index: {}]   ;;  %s7158_s2 = inlined_call_operand.vmem [shape: f32[1,256], index: 2, kind: input, shape index: {}]   ;;  %s7159_s3 = inlined_call_operand.hbm [shape: bf16[2,1,128,128], index: 3, kind: output, shape index: {}]  }
   0x1   :  { %7252 = sst [smem:[#allocation80_spill]] %s7157_s1 }
   0x2   :  { %8 = vsyncpa [#allocation3], 0 }
   0x3   :  { %10 = vsyncpa [#allocation3 + $0x1], 0 }
   0x4   :  { %11 = vsyncpa [#allocation6], 0 }
   0x5   :  { %12 = vsyncpa [#allocation4], 0 }
   0x6   :  { %14 = vsyncpa [#allocation4 + $0x1], 0  ;;  %s5225_s12 = smov 0   ;;  %s5227_s13 = smov 0  }
   0x7   :  { %s5229_s14 = smov 0   ;;  %s5231_s15 = smov 0  }
   0x8   :  { %s5233_s16 = smov 0   ;;  %s5235_s17 = smov 0  }
   0x9   :  { %s5237_s18 = smov 0   ;;  %s5239_s19 = smov 0  }
   0xa LB: > { %7253 = sst [smem:[#allocation11_spill]] %s5181_s17  ;;  %s4058_s20 = sadd.s32 4294967295, %s5189_s19   ;;  %s5189_s19 = sphi %s5239_s19, %s20_s19   ;;  %s5185_s18 = sphi %s5237_s18, %s7436_s18   ;;  %s5181_s17 = sphi %s5235_s17, %s7430_s17   ;;  %s5177_s16 = sphi %s5233_s16, %s7435_s16   ;;  %s5173_s15 = sphi %s5231_s15, %s7429_s15   ;;  %s5169_s14 = sphi %s5229_s14, %s7434_s14   ;;  %s5165_s13 = sphi %s5227_s13, %s7433_s13   ;;  %s5161_s12 = sphi %s5225_s12, %s7432_s12  }
   0xb   : > { %s4059_s21 = sadd.s32 4294967294, %s5189_s19   ;;  %p54_p0 = scmp.ne.s32.totalorder %s5165_s13, %s5161_s12 }
   0xc   : > { %p5269_p1 = scmp.eq.s32.totalorder %s4058_s20, 0  ;;  %p5273_p2 = scmp.eq.s32.totalorder %s4058_s20, 3 }
   0xd   : > { %p128_p3 = scmp.eq.s32.totalorder %s4059_s21, 3  ;;  %p4060_p5 = scmp.ge.s32.totalorder %s5189_s19, 1 }
   0xe   : > { %s7254_s22 = scalar_select %p5269_p1, 1, 0 }
   0xf   : > { %s7255_s23 = scalar_select %p5273_p2, 1, 0 }
  0x10   : > { %p5279_p4 = por %p5269_p1, %p54_p0  ;;  %p5284_p6 = por %p128_p3, %p54_p0 }
  0x11   : > { %p135_p7 = scmp.lt.s32.totalorder %s5189_s19, 5  ;;  %s5191_s27 = smov [#allocation5]  }
  0x12   : > { %s7256_s24 = scalar_select %p5279_p4, 1, 0 }
  0x13   : > { %s7257_s25 = scalar_select %p5284_p6, 1, 0 }
  0x14   : > { %p5289_p8 = pnand %p4060_p5, %p135_p7  ;;  %s147_s28 = sshll.u32 %s5191_s27, 4  ;;  %s148_s28 = int_to_ptr.vmem [resolvable:$true] %s147_s28 }
  0x15   : > { %7258 = sst [smem:[#allocation12_spill]] %s7257_s25  ;;  %s7261_s1 = sld [smem:[#allocation80_spill]] }
  0x16   : > { %s7259_s26 = scalar_select %p5289_p8, 1, 0 }
  0x17   : > { %p4156_p9 = pneg %p5289_p8 }
  0x19   : > { %p5297_p10 = pnand %p4156_p9, %p5269_p1 }
  0x1b   : > { %s5029_s5 = scalar_lea.hbm %s7261_s1, 2048  ;;  %p5031_p12 = pneg %p5297_p10 }
  0x1c   : > { %p5030_p11 = scmp.ne.s32.totalorder %s7261_s1, %s5029_s5  ;;  %p5036_p3 = scmp.lt.u32.totalorder %s5029_s5, %s7261_s1 }
  0x1e   : > { %p5032_p13 = pnand %p5031_p12, %p5030_p11 }
  0x20   : > { %p5033_p0 = pneg %p5032_p13 }
  0x22   : > { %p5038_p5 = pnand %p5036_p3, %p5033_p0 }
  0x24   : > { %5041 = shalt.err (!%p5038_p5)
}
  0x25   : > { %s5042_s10 = scalar_lea.vmem %s148_s28, 2048  ;;  %p5050_p1 = scmp.lt.s32.totalorder %s148_s28, %s148_s28 }
  0x26   : > { %p5043_p7 = scmp.ne.s32.totalorder %s148_s28, %s5042_s10  ;;  %p5051_p4 = scmp.lt.s32.totalorder %s5042_s10, %s5042_s10 }
  0x28   : > { %p5045_p9 = pnand %p5043_p7, %p5031_p12  ;;  %p5052_p8 = por %p5051_p4, %p5050_p1 }
  0x2a   : > { %p5046_p6 = pneg %p5045_p9 }
  0x2c   : > { %p5053_p2 = pnand %p5052_p8, %p5046_p6 }
  0x2e   : > { %5056 = shalt.err (!%p5053_p2)
}
  0x2f   : > { %s7164_s11 = smov 128   ;;  %s7165_s20 = smov 8  }
  0x30   : > { %4159 = dma.hbm_to_vmem [thread:$0]  (!%p5297_p10), %s7261_s1, 2048, %s148_s28, [#allocation6], %s7164_s11, %s7164_s11, %s7165_s20  }
  0x31   : > { %s29_s30 = sadd.s32 1, %s5181_s17  ;;  %s32_s4 = sadd.s32 1, %s5185_s18 }
  0x32   : > { %p30_p1 = scmp.ge.s32.totalorder %s29_s30, 2  ;;  %s41_s5 = sadd.s32 1, %s5169_s14 }
  0x33   : > { %p48_p2 = scmp.ne.s32.totalorder %s5169_s14, %s5165_s13  ;;  %p49_p4 = scmp.eq.s32.totalorder %s5189_s19, 0 }
  0x34   : > { %s7438_s30 = smov (%p30_p1, %s29_s30), 0  ;;  %s7440_s4 = smov (!%p30_p1, %s32_s4), %s5185_s18 }
  0x35   : > { %7262 = sst [smem:[#allocation13_spill]] %s7438_s30  ;;  %s37_s29 = ssub.s32 %s5181_s17, %s7438_s30 }
  0x36   : > { %p34_p6 = scmp.ge.s32.totalorder %s7440_s4, 2  ;;  %p7263_p8 = scmp.ne.s32.totalorder %s7255_s23, 0 }
  0x37   : > { %p5337_p10 = por %p49_p4, %p48_p2  ;;  %p4169_p12 = scmp.lt.s32.totalorder %s5189_s19, 4 }
  0x38   : > { %p5333_p11 = por %p7263_p8, %p48_p2  ;;  %s7442_s4 = smov (%p34_p6, %s7440_s4), 0 }
  0x39   : > { %7266 = sst [smem:[#allocation14_spill]] %s7442_s4  ;;  %s164_s7 = sand.u32 1, %s5169_s14  }
  0x3a   : > { %s4064_s8 = sshll.u32 %s5181_s17, 2  ;;  %s36_s9 = ssub.s32 %s5185_s18, %s7442_s4 }
  0x3b   : > { %s38_s10 = sor.u32 %s37_s29, %s36_s9  ;;  %s4063_s21 = sshll.u32 %s164_s7, 5 }
  0x3c   : > { %p39_p13 = scmp.eq.s32.totalorder %s38_s10, 0  ;;  %s4065_s23 = sshll.u32 %s5185_s18, 3 }
  0x3d   : > { %s168_s27 = scalar_lea.vmem [#allocation2], %s4063_s21  ;;  %s174_s1 = sadd.s32 %s4065_s23, %s4064_s8 }
  0x3e   : > { %s177_s11 = sshll.u32 %s168_s27, 4  ;;  %s4066_s30 = sshll.u32 %s174_s1, 7  ;;  %s5352_s11 = int_to_ptr.vmem [resolvable:$true] %s177_s11 }
  0x3f   : > { %s5350_s20 = scalar_select %p39_p13, %s5169_s14, %s41_s5  }
  0x40   : > { %p5358_p0 = pnand %p4169_p12, %p5337_p10  ;;  %s5365_s29 = scalar_lea.hbm %s7156_s0, %s4066_s30 }
  0x41   : > { %s5367_s5 = scalar_lea.sflag [#allocation3], %s164_s7  ;;  %s5057_s1 = scalar_lea.hbm %s5365_s29, 512 }
  0x42   : > { %p5058_p3 = scmp.ne.s32.totalorder %s5365_s29, %s5057_s1  ;;  %p5059_p5 = pneg %p5358_p0 }
  0x43   : > { %s5062_s4 = scalar_lea.hbm %s7156_s0, 2048  ;;  %p5063_p1 = scmp.lt.u32.totalorder %s5365_s29, %s7156_s0 }
  0x44   : > { %p5060_p7 = pnand %p5059_p5, %p5058_p3  ;;  %p5064_p2 = scmp.lt.u32.totalorder %s5062_s4, %s5057_s1 }
  0x45   : > { %p5066_p6 = scmp.lt.u32.totalorder %s5057_s1, %s5365_s29 }
  0x46   : > { %p5061_p9 = pneg %p5060_p7  ;;  %p5065_p4 = por %p5064_p2, %p5063_p1 }
  0x48   : > { %p5067_p8 = por %p5066_p6, %p5065_p4 }
  0x4a   : > { %p5068_p10 = pnand %p5067_p8, %p5061_p9 }
  0x4c   : > { %5071 = shalt.err (!%p5068_p10)
}
  0x4d   : > { %s5072_s7 = scalar_lea.vmem %s5352_s11, 512  ;;  %s5194_s9 = smov [#allocation2]  }
  0x4e   : > { %p5073_p12 = scmp.ne.s32.totalorder %s5352_s11, %s5072_s7  ;;  %s5077_s10 = sshll.u32 %s5194_s9, 4  ;;  %s5078_s10 = int_to_ptr.vmem [resolvable:$false] %s5077_s10 }
  0x4f   : > { %s5079_s21 = scalar_lea.vmem %s5078_s10, 1024  ;;  %p5080_p7 = scmp.lt.s32.totalorder %s5352_s11, %s5078_s10 }
  0x50   : > { %p5075_p13 = pnand %p5073_p12, %p5059_p5  ;;  %p5081_p1 = scmp.lt.s32.totalorder %s5079_s21, %s5072_s7 }
  0x52   : > { %p5076_p3 = pneg %p5075_p13  ;;  %p5082_p2 = por %p5081_p1, %p5080_p7 }
  0x54   : > { %p5083_p4 = pnand %p5082_p2, %p5076_p3 }
  0x56   : > { %5086 = shalt.err (!%p5083_p4)
}
  0x57   : > { %s7268_s23 = smov 8   ;;  %s7269_s27 = smov 128  }
  0x58   : > { %4163 = dma.hbm_to_vmem [thread:$0]  (!%p5358_p0), %s5365_s29, 512, %s5352_s11, %s5367_s5, %s7269_s27, %s7269_s27, %s7268_s23  }
  0x59   : > { %p7270_p5 = scmp.ne.s32.totalorder %s7259_s26, 0 }
  0x5b   : > { %189 = sbr.rel (%p7270_p5) target bundleno = 1024 (0x400), region = 32 }
  0x62   : > { %s5401_s1 = sand.u32 1, %s5165_s13   ;;  %p7271_p9 = scmp.ne.s32.totalorder %s7256_s24, 0 }
  0x63   : > { %s4068_s28 = sshll.u32 %s5401_s1, 5  ;;  %s192_s17 = scalar_lea.sflag [#allocation3], %s5401_s1 }
  0x64   : > { %s5407_s25 = scalar_lea.vmem [#allocation2], %s4068_s28 }
  0x65   : > { %5148 = dma.done.wait (%p7271_p9), %s192_s17, 512  }
  0x66   : > { %5150 = vsyncadd (%p7271_p9), %s192_s17, 4294966784  ;;  %p7272_p0 = scmp.ne.s32.totalorder %s7254_s22, 0 }
  0x68   : > { %5152 = dma.done.wait (%p7272_p0), [#allocation6], 2048  }
  0x69   : > { %5154 = vsyncadd (%p7272_p0), [#allocation6], 4294965248  ;;  %v5195_v0 = vmov 0   ;;  %v5005_v1 = vld [vmem:[#allocation5 + $0x4] ss:$8 sps:$4 sm:$0xff]   ;;  %v227_v19 = vld [vmem:[%s5407_s25 + $0x10] sm:$0xff]  ;;  %v249_v23 = vlaneseq }
  0x6a   : > { %371 = vmatprep.mubr.bf16.mxu0 %v5195_v0  ;;  %381 = vmatprep.mubr.bf16.mxu1 %v5195_v0  ;;  %v5007_v2 = vld [vmem:[#allocation5] ss:$8 sps:$4 sm:$0xff]   ;;  %v5008_v3 = vld [vmem:[#allocation5 + $0x14] ss:$8 sps:$4 sm:$0xff]   ;;  %v5010_v4 = vld [vmem:[#allocation5 + $0x10] ss:$8 sps:$4 sm:$0xff]  }
  0x6b   : > { %339 = vmatprep.subr.bf16.mxu0 %v5005_v1  ;;  %4132 = vmatprep.subr.bf16.mxu1 %v5005_v1  ;;  %v5011_v5 = vld [vmem:[#allocation5 + $0x24] ss:$8 sps:$4 sm:$0xff]   ;;  %v5013_v6 = vld [vmem:[#allocation5 + $0x20] ss:$8 sps:$4 sm:$0xff]   ;;  %v5014_v7 = vld [vmem:[#allocation5 + $0x34] ss:$8 sps:$4 sm:$0xff]  }
  0x6c   : > { %340 = vmatpush1.bf16.msra.mxu0 %v5007_v2  ;;  %4140 = vmatpush1.bf16.msra.mxu1 %v5007_v2  ;;  %v5016_v8 = vld [vmem:[#allocation5 + $0x30] ss:$8 sps:$4 sm:$0xff]   ;;  %v5017_v9 = vld [vmem:[#allocation5 + $0x44] ss:$8 sps:$4 sm:$0xff]   ;;  %v5019_v10 = vld [vmem:[#allocation5 + $0x40] ss:$8 sps:$4 sm:$0xff]  }
  0x6d   : > { %341 = vmatprep.subr.bf16.mxu0 %v5008_v3  ;;  %4133 = vmatprep.subr.bf16.mxu1 %v5008_v3  ;;  %v5020_v11 = vld [vmem:[#allocation5 + $0x54] ss:$8 sps:$4 sm:$0xff]   ;;  %v5022_v12 = vld [vmem:[#allocation5 + $0x50] ss:$8 sps:$4 sm:$0xff]   ;;  %v5023_v13 = vld [vmem:[#allocation5 + $0x64] ss:$8 sps:$4 sm:$0xff]  }
  0x6e   : > { %v5025_v14 = vld [vmem:[#allocation5 + $0x60] ss:$8 sps:$4 sm:$0xff]   ;;  %v5026_v15 = vld [vmem:[#allocation5 + $0x74] ss:$8 sps:$4 sm:$0xff]   ;;  %v5028_v16 = vld [vmem:[#allocation5 + $0x70] ss:$8 sps:$4 sm:$0xff]  }
  0x6f   : > { %v225_v17 = vld [vmem:[%s5407_s25] sm:$0xff]  ;;  %v226_v18 = vld [vmem:[%s5407_s25 + $0x8] sm:$0xff]  ;;  %v228_v20 = vld [vmem:[%s5407_s25 + $0x18] sm:$0xff]  ;;  %v250_v24 = vshrl.u32 %v249_v23, 7  ;;  %vm2761_vm0 = vcmask 1041409   ;;  %vm2764_vm1 = vcmask 1042434  }
  0x70   : > { %342 = vmatpush1.bf16.msra.mxu0 %v5010_v4  ;;  %4141 = vmatpush1.bf16.msra.mxu1 %v5010_v4  ;;  %v229_v21 = vpack.c.bf16 %v226_v18, %v225_v17  ;;  %v230_v22 = vpack.c.bf16 %v228_v20, %v227_v19  ;;  %v247_v26 = vld [vmem:[%s7158_s2] sm:$0x3]  ;;  %vm2767_vm2 = vcmask 1043459   ;;  %vm2770_vm3 = vcmask 1044484   ;;  %s5196_s26 = smov 16   ;;  %s5197_s11 = smov 32  }
  0x71   : > { %343 = vmatprep.subr.bf16.mxu0 %v5011_v5  ;;  %4134 = vmatprep.subr.bf16.mxu1 %v5011_v5  ;;  %v251_v25 = vsub.s32 0, %v250_v24  ;;  %v255_v27 = vsub.s32 1, %v250_v24  ;;  %vm2773_vm4 = vcmask 1045509   ;;  %vm2779_vm5 = vcmask 1047559   ;;  %s5198_s29 = smov 48   ;;  %s5199_s5 = smov 64  }
  0x72   : > { %vm2776_vm6 = vcmask 1046534   ;;  %s5200_s4 = smov 112   ;;  %s5201_s30 = smov 80   ;;  %vm3839_vm7 = vcmask 130048   ;;  %vm3848_vm8 = vcmask 261120   ;;  %vm3857_vm9 = vcmask 392192  }
  0x73   : > { %v252_v28 = vrot.slane %v247_v26, %v251_v25  ;;  %v256_v29 = vrot.slane %v247_v26, %v255_v27  ;;  %s5202_s8 = smov 96   ;;  %vm3866_vm10 = vcmask 523264   ;;  %vm3875_vm11 = vcmask 654336   ;;  %s6963_s7 = scalar_lea.vmem [#allocation7], %s4068_s28 }
  0x74   : > { %344 = vmatpush1.bf16.msra.mxu0 %v5013_v6  ;;  %4142 = vmatpush1.bf16.msra.mxu1 %v5013_v6  ;;  %vm3884_vm12 = vcmask 785408   ;;  %vm3893_vm13 = vcmask 916480   ;;  %s4096_s9 = sshll.u32 %s5173_s15, 3  ;;  %s4097_s10 = sshll.u32 %s5177_s16, 4 }
  0x75   : > { %345 = vmatprep.subr.bf16.mxu0 %v5014_v7  ;;  %4135 = vmatprep.subr.bf16.mxu1 %v5014_v7  ;;  %s3955_s21 = sadd.s32 %s4097_s10, %s4096_s9  ;;  %s3958_s15 = sshll.u32 %s6963_s7, 4  ;;  %s7094_s15 = int_to_ptr.vmem [resolvable:$true] %s3958_s15 }
  0x76   : > { %s4098_s16 = sshll.u32 %s3955_s21, 6  ;;  %s3943_s17 = scalar_lea.sflag [#allocation4], %s5401_s1 }
  0x77   : > { %s7099_s28 = scalar_lea.hbm %s7159_s3, %s4098_s16  ;;  %s5087_s25 = scalar_lea.vmem %s7094_s15, 512 }
  0x78   : > { %346 = vmatpush1.bf16.msra.mxu0 %v5016_v8  ;;  %4143 = vmatpush1.bf16.msra.mxu1 %v5016_v8  ;;  %p5088_p6 = scmp.ne.s32.totalorder %s7094_s15, %s5087_s25  ;;  %s5203_s22 = smov [#allocation7]  }
  0x79   : > { %347 = vmatprep.subr.bf16.mxu0 %v5017_v9  ;;  %4136 = vmatprep.subr.bf16.mxu1 %v5017_v9  ;;  %s5091_s24 = sshll.u32 %s5203_s22, 4  ;;  %s5092_s24 = int_to_ptr.vmem [resolvable:$false] %s5091_s24 }
  0x7a   : > { %p5089_p8 = pnand %p5088_p6, %p5333_p11  ;;  %p5094_p12 = scmp.lt.s32.totalorder %s7094_s15, %s5092_s24 }
  0x7c   : > { %348 = vmatpush1.bf16.msra.mxu0 %v5019_v10  ;;  %4144 = vmatpush1.bf16.msra.mxu1 %v5019_v10  ;;  %p5090_p10 = pneg %p5089_p8 }
  0x7d   : > { %349 = vmatprep.subr.bf16.mxu0 %v5020_v11  ;;  %4137 = vmatprep.subr.bf16.mxu1 %v5020_v11 }
  0x80   : > { %350 = vmatpush1.bf16.msra.mxu0 %v5022_v12  ;;  %4145 = vmatpush1.bf16.msra.mxu1 %v5022_v12 }
  0x81   : > { %351 = vmatprep.subr.bf16.mxu0 %v5023_v13  ;;  %4138 = vmatprep.subr.bf16.mxu1 %v5023_v13 }
  0x84   : > { %352 = vmatpush1.bf16.msra.mxu0 %v5025_v14  ;;  %4146 = vmatpush1.bf16.msra.mxu1 %v5025_v14 }
  0x85   : > { %353 = vmatprep.subr.bf16.mxu0 %v5026_v15  ;;  %4139 = vmatprep.subr.bf16.mxu1 %v5026_v15 }
  0x88   : > { %354 = vmatpush1.bf16.msra.mxu0 %v5028_v16  ;;  %4147 = vmatpush1.bf16.msra.mxu1 %v5028_v16 }
  0x8b   : > { %372 = vmatmul.mubr.bf16.vlgmr.msra.gmra.mrb[0].mxu0 %v229_v21  ;;  %382 = vmatmul.mubr.bf16.vlgmr.msra.gmra.mrb[0].mxu1 %v230_v22 }
 0x15e   : > { %v373_v30 = vpop.f32.mrb[0].mxu0  ;;  %v383_v31 = vpop.f32.mrb[0].mxu1 }
 0x15f   : > { %v374_v32 = vadd.f32 %v373_v30, %v252_v28  ;;  %v384_v33 = vadd.f32 %v383_v31, %v252_v28  ;;  %v375_v34 = vpop.f32.mrb[1].mxu0  ;;  %v385_v35 = vpop.f32.mrb[1].mxu1 }
 0x160   : > { %v376_v36 = vadd.f32 %v375_v34, %v256_v29  ;;  %v386_v37 = vadd.f32 %v385_v35, %v256_v29  ;;  %v377_v38 = vpop.f32.mrb[2].mxu0  ;;  %v387_v39 = vpop.f32.mrb[2].mxu1 }
 0x161   : > { %v378_v40 = vadd.f32 %v377_v38, %v252_v28  ;;  %v379_v41 = vpop.f32.mrb[3].mxu0  ;;  %v388_v42 = vadd.f32 %v387_v39, %v252_v28  ;;  %v389_v43 = vpop.f32.mrb[3].mxu1 }
 0x162   : > { %v380_v44 = vadd.f32 %v379_v41, %v256_v29  ;;  %v4331_v45 = vpack.i.bf16 %v386_v37, %v384_v33  ;;  %v4249_v46 = vpack.i.bf16 %v376_v36, %v374_v32  ;;  %v390_v47 = vadd.f32 %v389_v43, %v256_v29 }
 0x164   : > { %4332 = vxpose.xlu1.b32.start.end [1/1] (short) %v4331_v45, 128  ;;  %4250 = vxpose.xlu0.b32.start.end [1/1] (short) %v4249_v46, 128  ;;  %v4495_v48 = vpack.i.bf16 %v390_v47, %v388_v42  ;;  %v4413_v49 = vpack.i.bf16 %v380_v44, %v378_v40 }
 0x1a1   : > { %4496 = vxpose.xlu1.b32.start.end [1/1] (short) %v4495_v48, 128  ;;  %4414 = vxpose.xlu0.b32.start.end [1/1] (short) %v4413_v49, 128 }
 0x1e4   : > { %v4333_v50 = vpop.trf.xlu1  ;;  %v4251_v51 = vpop.trf.xlu0 }
 0x1e5   : > { %v4252_v57 = vunpack.i.l.bf16 %v4251_v51  ;;  %v4334_v3 = vunpack.i.l.bf16 %v4333_v50  ;;  %v4255_v15 = vunpack.i.h.bf16 %v4251_v51  ;;  %v4337_v25 = vunpack.i.h.bf16 %v4333_v50 }
 0x1e8   : > { %v5424_v52 = vpop.trf.xlu1  ;;  %v4256_v53 = vpop.trf.xlu0 }
 0x1e9   : > { %v4257_v62 = vunpack.i.l.bf16 %v4256_v53  ;;  %v4339_v8 = vunpack.i.l.bf16 %v5424_v52  ;;  %v4260_v23 = vunpack.i.h.bf16 %v4256_v53  ;;  %v4342_v33 = vunpack.i.h.bf16 %v5424_v52 }
 0x1ec   : > { %v4343_v54 = vpop.trf.xlu1  ;;  %v4261_v55 = vpop.trf.xlu0 }
 0x1ed   : > { %v4262_v56 = vunpack.i.l.bf16 %v4261_v55  ;;  %v4344_v2 = vunpack.i.l.bf16 %v4343_v54  ;;  %v4265_v12 = vunpack.i.h.bf16 %v4261_v55  ;;  %v4347_v24 = vunpack.i.h.bf16 %v4343_v54 }
 0x1ef   : > { %v4577_v60 = vpack.i.bf16 %v4262_v56, %v4252_v57  ;;  %v4586_v6 = vpack.i.bf16 %v4344_v2, %v4334_v3  ;;  %v4595_v19 = vpack.i.bf16 %v4265_v12, %v4255_v15  ;;  %v4604_v32 = vpack.i.bf16 %v4347_v24, %v4337_v25 }
 0x1f0   : > { %v4348_v58 = vpop.trf.xlu1  ;;  %v4266_v59 = vpop.trf.xlu0 }
 0x1f1   : > { %4578 = vxpose.xlu0.b32.start [1/2] (short) (narrow) %v4577_v60, 8  ;;  %v4267_v61 = vunpack.i.l.bf16 %v4266_v59  ;;  %v4349_v7 = vunpack.i.l.bf16 %v4348_v58  ;;  %v4270_v20 = vunpack.i.h.bf16 %v4266_v59  ;;  %v4352_v39 = vunpack.i.h.bf16 %v4348_v58 }
 0x1f3   : > { %v4579_v1 = vpack.i.bf16 %v4267_v61, %v4257_v62  ;;  %v4588_v11 = vpack.i.bf16 %v4349_v7, %v4339_v8  ;;  %v4597_v29 = vpack.i.bf16 %v4270_v20, %v4260_v23  ;;  %v4606_v43 = vpack.i.bf16 %v4352_v39, %v4342_v33 }
 0x1f4   : > { %v5426_v63 = vpop.trf.xlu1  ;;  %v4271_v0 = vpop.trf.xlu0 }
 0x1f5   : > { %4580 = vxpose.xlu0.b32.end [2/2] (short) (narrow) %v4579_v1, 8  ;;  %v4272_v14 = vunpack.i.l.bf16 %v4271_v0  ;;  %v4354_v31 = vunpack.i.l.bf16 %v5426_v63  ;;  %v4275_v45 = vunpack.i.h.bf16 %v4271_v0  ;;  %v4357_v55 = vunpack.i.h.bf16 %v5426_v63 }
 0x1f8   : > { %v5428_v4 = vpop.trf.xlu1  ;;  %v4276_v5 = vpop.trf.xlu0 }
 0x1f9   : > { %4587 = vxpose.xlu0.b32.start [1/2] (short) (narrow) %v4586_v6, 8  ;;  %v4277_v22 = vunpack.i.l.bf16 %v4276_v5  ;;  %v4359_v38 = vunpack.i.l.bf16 %v5428_v4  ;;  %v4280_v50 = vunpack.i.h.bf16 %v4276_v5  ;;  %v4362_v60 = vunpack.i.h.bf16 %v5428_v4 }
 0x1fc   : > { %v4363_v9 = vpop.trf.xlu1  ;;  %v4281_v10 = vpop.trf.xlu0 }
 0x1fd   : > { %4589 = vxpose.xlu0.b32.end [2/2] (short) (narrow) %v4588_v11, 8  ;;  %v4282_v13 = vunpack.i.l.bf16 %v4281_v10  ;;  %v4364_v30 = vunpack.i.l.bf16 %v4363_v9  ;;  %v4285_v44 = vunpack.i.h.bf16 %v4281_v10  ;;  %v4367_v54 = vunpack.i.h.bf16 %v4363_v9 }
 0x1ff   : > { %v4649_v18 = vpack.i.bf16 %v4282_v13, %v4272_v14  ;;  %v4658_v36 = vpack.i.bf16 %v4364_v30, %v4354_v31  ;;  %v4667_v48 = vpack.i.bf16 %v4285_v44, %v4275_v45  ;;  %v4676_v58 = vpack.i.bf16 %v4367_v54, %v4357_v55 }
 0x200   : > { %v4368_v16 = vpop.trf.xlu1  ;;  %v4286_v17 = vpop.trf.xlu0 }
 0x201   : > { %4650 = vxpose.xlu1.b32.start [1/2] (short) (narrow) %v4649_v18, 8  ;;  %4596 = vxpose.xlu0.b32.start [1/2] (short) (narrow) %v4595_v19, 8  ;;  %v4287_v21 = vunpack.i.l.bf16 %v4286_v17  ;;  %v4369_v37 = vunpack.i.l.bf16 %v4368_v16  ;;  %v4290_v49 = vunpack.i.h.bf16 %v4286_v17  ;;  %v4372_v59 = vunpack.i.h.bf16 %v4368_v16 }
 0x203   : > { %v4651_v28 = vpack.i.bf16 %v4287_v21, %v4277_v22  ;;  %v4660_v42 = vpack.i.bf16 %v4369_v37, %v4359_v38  ;;  %v4669_v53 = vpack.i.bf16 %v4290_v49, %v4280_v50  ;;  %v4678_v0 = vpack.i.bf16 %v4372_v59, %v4362_v60 }
 0x204   : > { %v5431_v26 = vpop.trf.xlu1  ;;  %v5433_v27 = vpop.trf.xlu0 }
 0x205   : > { %4652 = vxpose.xlu1.b32.end [2/2] (short) (narrow) %v4651_v28, 8  ;;  %4598 = vxpose.xlu0.b32.end [2/2] (short) (narrow) %v4597_v29, 8 }
 0x208   : > { %v5437_v34 = vpop.trf.xlu1  ;;  %v5439_v35 = vpop.trf.xlu0 }
 0x209   : > { %4659 = vxpose.xlu1.b32.start [1/2] (short) (narrow) %v4658_v36, 8  ;;  %4605 = vxpose.xlu0.b32.start [1/2] (short) (narrow) %v4604_v32, 8 }
 0x20c   : > { %v5442_v40 = vpop.trf.xlu1  ;;  %v5444_v41 = vpop.trf.xlu0 }
 0x20d   : > { %4661 = vxpose.xlu1.b32.end [2/2] (short) (narrow) %v4660_v42, 8  ;;  %4607 = vxpose.xlu0.b32.end [2/2] (short) (narrow) %v4606_v43, 8 }
 0x210   : > { %v5446_v46 = vpop.trf.xlu1  ;;  %v5448_v47 = vpop.trf.xlu0 }
 0x211   : > { %4668 = vxpose.xlu1.b32.start [1/2] (short) (narrow) %v4667_v48, 8 }
 0x214   : > { %v5450_v51 = vpop.trf.xlu1  ;;  %v4311_v52 = vpop.trf.xlu0 }
 0x215   : > { %4670 = vxpose.xlu1.b32.end [2/2] (short) (narrow) %v4669_v53, 8  ;;  %v4312_v2 = vunpack.i.l.bf16 %v4311_v52  ;;  %v4315_v5 = vunpack.i.h.bf16 %v4311_v52 }
 0x218   : > { %v5453_v56 = vpop.trf.xlu1  ;;  %v4316_v57 = vpop.trf.xlu0 }
 0x219   : > { %4677 = vxpose.xlu1.b32.start [1/2] (short) (narrow) %v4676_v58, 8  ;;  %v4320_v9 = vunpack.i.h.bf16 %v4316_v57  ;;  %v4317_v10 = vunpack.i.l.bf16 %v4316_v57 }
 0x21c   : > { %v5456_v61 = vpop.trf.xlu1  ;;  %v4321_v62 = vpop.trf.xlu0 }
 0x21d   : > { %4679 = vxpose.xlu1.b32.end [2/2] (short) (narrow) %v4678_v0, 8  ;;  %v4322_v1 = vunpack.i.l.bf16 %v4321_v62  ;;  %v4325_v3 = vunpack.i.h.bf16 %v4321_v62 }
 0x21f   : > { %v5460_v7 = vpack.i.bf16 %v4322_v1, %v4312_v2  ;;  %v5462_v8 = vpack.i.bf16 %v4325_v3, %v4315_v5 }
 0x220   : > { %v5458_v6 = vpop.trf.xlu1  ;;  %v4326_v63 = vpop.trf.xlu0 }
 0x221   : > { %v4330_v4 = vunpack.i.h.bf16 %v4326_v63  ;;  %v4327_v11 = vunpack.i.l.bf16 %v4326_v63 }
 0x223   : > { %v5464_v14 = vpack.i.bf16 %v4327_v11, %v4317_v10  ;;  %v5466_v15 = vpack.i.bf16 %v4330_v4, %v4320_v9 }
 0x224   : > { %v4497_v12 = vpop.trf.xlu1  ;;  %v4415_v13 = vpop.trf.xlu0 }
 0x225   : > { %v4416_v21 = vunpack.i.l.bf16 %v4415_v13  ;;  %v4498_v33 = vunpack.i.l.bf16 %v4497_v12  ;;  %v4419_v52 = vunpack.i.h.bf16 %v4415_v13  ;;  %v4501_v1 = vunpack.i.h.bf16 %v4497_v12 }
 0x228   : > { %v5468_v16 = vpop.trf.xlu1  ;;  %v4420_v17 = vpop.trf.xlu0 }
 0x229   : > { %v4421_v25 = vunpack.i.l.bf16 %v4420_v17  ;;  %v4503_v36 = vunpack.i.l.bf16 %v5468_v16  ;;  %v4424_v59 = vunpack.i.h.bf16 %v4420_v17  ;;  %v4506_v4 = vunpack.i.h.bf16 %v5468_v16 }
 0x22c   : > { %v4507_v18 = vpop.trf.xlu1  ;;  %v4425_v19 = vpop.trf.xlu0 }
 0x22d   : > { %v4426_v20 = vunpack.i.l.bf16 %v4425_v19  ;;  %v4508_v32 = vunpack.i.l.bf16 %v4507_v18  ;;  %v4429_v48 = vunpack.i.h.bf16 %v4425_v19  ;;  %v4511_v0 = vunpack.i.h.bf16 %v4507_v18 }
 0x22f   : > { %v4613_v24 = vpack.i.bf16 %v4426_v20, %v4416_v21  ;;  %v4622_v42 = vpack.i.bf16 %v4508_v32, %v4498_v33  ;;  %v4631_v58 = vpack.i.bf16 %v4429_v48, %v4419_v52  ;;  %v4640_v11 = vpack.i.bf16 %v4511_v0, %v4501_v1 }
 0x230   : > { %v4512_v22 = vpop.trf.xlu1  ;;  %v4430_v23 = vpop.trf.xlu0  ;;  %v4297_v48 = vunpack.i.l.bf16 %v5439_v35  ;;  %v4389_v1 = vunpack.i.l.bf16 %v5446_v46 }
 0x231   : > { %v4431_v28 = vunpack.i.l.bf16 %v4430_v23  ;;  %4614 = vxpose.xlu0.b32.start [1/2] (short) (narrow) %v4613_v24, 8  ;;  %v4513_v37 = vunpack.i.l.bf16 %v4512_v22  ;;  %v4434_v53 = vunpack.i.h.bf16 %v4430_v23  ;;  %v4516_v13 = vunpack.i.h.bf16 %v4512_v22 }
 0x233   : > { %v4615_v31 = vpack.i.bf16 %v4431_v28, %v4421_v25  ;;  %v4624_v45 = vpack.i.bf16 %v4513_v37, %v4503_v36  ;;  %v4633_v3 = vpack.i.bf16 %v4434_v53, %v4424_v59  ;;  %v4642_v23 = vpack.i.bf16 %v4516_v13, %v4506_v4 }
 0x234   : > { %v5470_v29 = vpop.trf.xlu1  ;;  %v4435_v30 = vpop.trf.xlu0  ;;  %v4302_v25 = vunpack.i.l.bf16 %v5444_v41  ;;  %v4307_v37 = vunpack.i.l.bf16 %v5448_v47  ;;  %v4379_v59 = vunpack.i.l.bf16 %v5437_v34 }
 0x235   : > { %4616 = vxpose.xlu0.b32.end [2/2] (short) (narrow) %v4615_v31, 8  ;;  %v4436_v50 = vunpack.i.l.bf16 %v4435_v30  ;;  %v4518_v63 = vunpack.i.l.bf16 %v5470_v29  ;;  %v4439_v22 = vunpack.i.h.bf16 %v4435_v30  ;;  %v4292_v31 = vunpack.i.l.bf16 %v5433_v27 }
 0x236   : > { %v4374_v30 = vunpack.i.l.bf16 %v5431_v26  ;;  %v4723_v52 = vpack.i.bf16 %v4307_v37, %v4297_v48 }
 0x237   : > { %v4721_v36 = vpack.i.bf16 %v4302_v25, %v4292_v31 }
 0x238   : > { %v5473_v38 = vpop.trf.xlu1  ;;  %v5475_v39 = vpop.trf.xlu0 }
 0x239   : > { %4623 = vxpose.xlu0.b32.start [1/2] (short) (narrow) %v4622_v42, 8  ;;  %v4441_v60 = vunpack.i.l.bf16 %v5475_v39  ;;  %v4523_v17 = vunpack.i.l.bf16 %v5473_v38 }
 0x23c   : > { %v5477_v43 = vpop.trf.xlu1  ;;  %v4445_v44 = vpop.trf.xlu0 }
 0x23d   : > { %4625 = vxpose.xlu0.b32.end [2/2] (short) (narrow) %v4624_v45, 8  ;;  %v4446_v49 = vunpack.i.l.bf16 %v4445_v44  ;;  %v4528_v5 = vunpack.i.l.bf16 %v5477_v43  ;;  %v4449_v24 = vunpack.i.h.bf16 %v4445_v44  ;;  %v4444_v44 = vunpack.i.h.bf16 %v5475_v39 }
 0x23e   : > { %v4531_v53 = vunpack.i.h.bf16 %v5477_v43 }
 0x23f   : > { %v4685_v57 = vpack.i.bf16 %v4446_v49, %v4436_v50  ;;  %v4694_v18 = vpack.i.bf16 %v4528_v5, %v4518_v63  ;;  %v4703_v33 = vpack.i.bf16 %v4449_v24, %v4439_v22  ;;  %v4384_v49 = vunpack.i.l.bf16 %v5442_v40 }
 0x240   : > { %v5479_v54 = vpop.trf.xlu1  ;;  %v4450_v55 = vpop.trf.xlu0  ;;  %v4305_v5 = vunpack.i.h.bf16 %v5444_v41  ;;  %v4300_v41 = vunpack.i.h.bf16 %v5439_v35  ;;  %v4382_v24 = vunpack.i.h.bf16 %v5437_v34  ;;  %v4399_v35 = vunpack.i.l.bf16 %v5453_v56 }
 0x241   : > { %v4451_v62 = vunpack.i.l.bf16 %v4450_v55  ;;  %4686 = vxpose.xlu1.b32.start [1/2] (short) (narrow) %v4685_v57, 8  ;;  %4632 = vxpose.xlu0.b32.start [1/2] (short) (narrow) %v4631_v58, 8  ;;  %v4533_v12 = vunpack.i.l.bf16 %v5479_v54  ;;  %v4454_v32 = vunpack.i.h.bf16 %v4450_v55  ;;  %v4521_v55 = vunpack.i.h.bf16 %v5470_v29 }
 0x242   : > { %v4730_v39 = vpack.i.bf16 %v4384_v49, %v4374_v30  ;;  %v4412_v30 = vunpack.i.h.bf16 %v5458_v6 }
 0x243   : > { %v4687_v2 = vpack.i.bf16 %v4451_v62, %v4441_v60  ;;  %v4696_v21 = vpack.i.bf16 %v4533_v12, %v4523_v17  ;;  %v4705_v50 = vpack.i.bf16 %v4454_v32, %v4444_v44  ;;  %v4526_v60 = vunpack.i.h.bf16 %v5473_v38 }
 0x244   : > { %v5484_v9 = vpop.trf.xlu0  ;;  %v5486_v10 = vpop.trf.xlu1  ;;  %v4536_v62 = vunpack.i.h.bf16 %v5479_v54  ;;  %v4712_v0 = vpack.i.bf16 %v4531_v53, %v4521_v55  ;;  %v4295_v38 = vunpack.i.h.bf16 %v5433_v27  ;;  %v4387_v12 = vunpack.i.h.bf16 %v5442_v40 }
 0x245   : > { %4688 = vxpose.xlu1.b32.end [2/2] (short) (narrow) %v4687_v2, 8  ;;  %4634 = vxpose.xlu0.b32.end [2/2] (short) (narrow) %v4633_v3, 8  ;;  %v4732_v3 = vpack.i.bf16 %v4389_v1, %v4379_v59  ;;  %v4394_v27 = vunpack.i.l.bf16 %v5450_v51  ;;  %v4392_v40 = vunpack.i.h.bf16 %v5446_v46  ;;  %v4456_v32 = vunpack.i.l.bf16 %v5484_v9 }
 0x246   : > { %v4714_v29 = vpack.i.bf16 %v4536_v62, %v4526_v60  ;;  %v4739_v54 = vpack.i.bf16 %v4305_v5, %v4295_v38  ;;  %v4397_v46 = vunpack.i.h.bf16 %v5450_v51  ;;  %v4407_v44 = vunpack.i.h.bf16 %v5456_v61 }
 0x247   : > { %v4750_v22 = vpack.i.bf16 %v4392_v40, %v4382_v24  ;;  %v4538_v49 = vunpack.i.l.bf16 %v5486_v10  ;;  %v4541_v38 = vunpack.i.h.bf16 %v5486_v10 }
 0x248   : > { %v5491_v19 = vpop.trf.xlu0  ;;  %v5493_v20 = vpop.trf.xlu1  ;;  %v4820_v53 = vpack.i.bf16 %v4407_v44, %v4397_v46 }
 0x249   : > { %4695 = vxpose.xlu1.b32.start [1/2] (short) (narrow) %v4694_v18, 8  ;;  %4641 = vxpose.xlu0.b32.start [1/2] (short) (narrow) %v4640_v11, 8  ;;  %v4310_v11 = vunpack.i.h.bf16 %v5448_v47  ;;  %v4377_v18 = vunpack.i.h.bf16 %v5431_v26 }
 0x24b   : > { %v4748_v47 = vpack.i.bf16 %v4387_v12, %v4377_v18 }
 0x24c   : > { %v5496_v28 = vpop.trf.xlu0  ;;  %v5498_v16 = vpop.trf.xlu1 }
 0x24d   : > { %4697 = vxpose.xlu1.b32.end [2/2] (short) (narrow) %v4696_v21, 8  ;;  %4643 = vxpose.xlu0.b32.end [2/2] (short) (narrow) %v4642_v23, 8  ;;  %v4741_v21 = vpack.i.bf16 %v4310_v11, %v4300_v41  ;;  %v4404_v23 = vunpack.i.l.bf16 %v5456_v61  ;;  %v4466_v31 = vunpack.i.l.bf16 %v5496_v28  ;;  %v4548_v48 = vunpack.i.l.bf16 %v5498_v16 }
 0x24f   : > { %v4802_v25 = vpack.i.bf16 %v4404_v23, %v4394_v27  ;;  %v4766_v51 = vpack.i.bf16 %v4548_v48, %v4538_v49 }
 0x250   : > { %v5502_v42 = vpop.trf.xlu0  ;;  %v5504_v45 = vpop.trf.xlu1 }
 0x251   : > { %4704 = vxpose.xlu1.b32.start [1/2] (short) (narrow) %v4703_v33, 8  ;;  %4722 = vxpose.xlu0.b32.start [1/2] (short) (narrow) %v4721_v36, 8  ;;  %v4471_v34 = vunpack.i.l.bf16 %v5502_v42  ;;  %v4757_v33 = vpack.i.bf16 %v4466_v31, %v4456_v32  ;;  %v4474_v62 = vunpack.i.h.bf16 %v5502_v42  ;;  %v4556_v5 = vunpack.i.h.bf16 %v5504_v45 }
 0x254   : > { %v5512_v57 = vpop.trf.xlu0  ;;  %v5514_v58 = vpop.trf.xlu1 }
 0x255   : > { %4706 = vxpose.xlu1.b32.end [2/2] (short) (narrow) %v4705_v50, 8  ;;  %4724 = vxpose.xlu0.b32.end [2/2] (short) (narrow) %v4723_v52, 8  ;;  %v4402_v50 = vunpack.i.h.bf16 %v5453_v56  ;;  %v4553_v52 = vunpack.i.l.bf16 %v5504_v45  ;;  %v4476_v60 = vunpack.i.l.bf16 %v5512_v57  ;;  %v4464_v56 = vunpack.i.h.bf16 %v5491_v19 }
 0x256   : > { %v4558_v42 = vunpack.i.l.bf16 %v5514_v58  ;;  %v4479_v10 = vunpack.i.h.bf16 %v5512_v57 }
 0x257   : > { %v4822_v55 = vpack.i.bf16 %v4412_v30, %v4402_v50 }
 0x258   : > { %v5520_v2 = vpop.trf.xlu0  ;;  %v5522_v43 = vpop.trf.xlu1 }
 0x259   : > { %4713 = vxpose.xlu1.b32.start [1/2] (short) (narrow) %v4712_v0, 8  ;;  %4731 = vxpose.xlu0.b32.start [1/2] (short) (narrow) %v4730_v39, 8  ;;  %v4459_v39 = vunpack.i.h.bf16 %v5484_v9  ;;  %v4481_v0 = vunpack.i.l.bf16 %v5520_v2  ;;  %v4546_v9 = vunpack.i.h.bf16 %v5493_v20  ;;  %v4566_v24 = vunpack.i.h.bf16 %v5522_v43 }
 0x25b   : > { %v4786_v23 = vpack.i.bf16 %v4556_v5, %v4546_v9 }
 0x25c   : > { %v5525_v63 = vpop.trf.xlu0  ;;  %v5527_v4 = vpop.trf.xlu1 }
 0x25d   : > { %4715 = vxpose.xlu1.b32.end [2/2] (short) (narrow) %v4714_v29, 8  ;;  %4733 = vxpose.xlu0.b32.end [2/2] (short) (narrow) %v4732_v3, 8  ;;  %v4568_v12 = vunpack.i.l.bf16 %v5527_v4 }
 0x260   : > { %v5531_v13 = vpop.trf.xlu0  ;;  %v5533_v17 = vpop.trf.xlu1 }
 0x261   : > { %4794 = vxpose.xlu1.b32.start [1/2] (short) (narrow) %v5460_v7, 8  ;;  %4740 = vxpose.xlu0.b32.start [1/2] (short) (narrow) %v4739_v54, 8  ;;  %v4409_v7 = vunpack.i.l.bf16 %v5458_v6  ;;  %v4469_v6 = vunpack.i.h.bf16 %v5496_v28  ;;  %v4491_v1 = vunpack.i.l.bf16 %v5531_v13  ;;  %v4551_v28 = vunpack.i.h.bf16 %v5498_v16 }
 0x262   : > { %v4573_v45 = vunpack.i.l.bf16 %v5533_v17  ;;  %v4838_v16 = vpack.i.bf16 %v4568_v12, %v4558_v42  ;;  %v4576_v40 = vunpack.i.h.bf16 %v5533_v17 }
 0x263   : > { %v4804_v26 = vpack.i.bf16 %v4409_v7, %v4399_v35  ;;  %v4775_v3 = vpack.i.bf16 %v4469_v6, %v4459_v39  ;;  %v4831_v41 = vpack.i.bf16 %v4491_v1, %v4481_v0  ;;  %v4784_v18 = vpack.i.bf16 %v4551_v28, %v4541_v38 }
 0x264   : > { %v4489_v7 = vunpack.i.h.bf16 %v5525_v63  ;;  %v4494_v35 = vunpack.i.h.bf16 %v5531_v13 }
 0x265   : > { %4796 = vxpose.xlu1.b32.end [2/2] (short) (narrow) %v5464_v14, 8  ;;  %4742 = vxpose.xlu0.b32.end [2/2] (short) (narrow) %v4741_v21, 8  ;;  %v4461_v14 = vunpack.i.l.bf16 %v5491_v19  ;;  %v4777_v19 = vpack.i.bf16 %v4474_v62, %v4464_v56 }
 0x266   : > { %v4847_v32 = vpack.i.bf16 %v4489_v7, %v4479_v10 }
 0x267   : > { %v4759_v37 = vpack.i.bf16 %v4471_v34, %v4461_v14  ;;  %v5595_v14 = vpack.i.bf16 %v4576_v40, %v4566_v24 }
 0x269   : > { %4803 = vxpose.xlu1.b32.start [1/2] (short) (narrow) %v4802_v25, 8  ;;  %4749 = vxpose.xlu0.b32.start [1/2] (short) (narrow) %v4748_v47, 8  ;;  %v4484_v47 = vunpack.i.h.bf16 %v5520_v2  ;;  %v4561_v25 = vunpack.i.h.bf16 %v5514_v58 }
 0x26b   : > { %v4849_v17 = vpack.i.bf16 %v4494_v35, %v4484_v47 }
 0x26d   : > { %4805 = vxpose.xlu1.b32.end [2/2] (short) (narrow) %v4804_v26, 8  ;;  %4751 = vxpose.xlu0.b32.end [2/2] (short) (narrow) %v4750_v22, 8  ;;  %v4571_v26 = vunpack.i.h.bf16 %v5527_v4 }
 0x26f   : > { %v4856_v4 = vpack.i.bf16 %v4571_v26, %v4561_v25 }
 0x271   : > { %4812 = vxpose.xlu1.b32.start [1/2] (short) (narrow) %v5462_v8, 8  ;;  %4758 = vxpose.xlu0.b32.start [1/2] (short) (narrow) %v4757_v33, 8  ;;  %v4581_v36 = vpop.trf.xlu0  ;;  %v4543_v8 = vunpack.i.l.bf16 %v5493_v20  ;;  %v4563_v20 = vunpack.i.l.bf16 %v5522_v43 }
 0x272   : > { %v5576_v21 = vunpack.i.l.bf16 %v4581_v36  ;;  %v5579_v27 = vunpack.i.h.bf16 %v4581_v36 }
 0x273   : > { %v4768_v59 = vpack.i.bf16 %v4553_v52, %v4543_v8  ;;  %v4840_v57 = vpack.i.bf16 %v4573_v45, %v4563_v20 }
 0x274   : > { %7273 = vst [vmem:[#allocation15_spill] sm:$0xff] %v5576_v21  ;;  %7274 = vst [vmem:[#allocation16_spill] sm:$0xff] %v5579_v27  ;;  %v2887_v2 = vrot.slane %v5576_v21, 1  ;;  %v3023_v43 = vrot.slane %v5576_v21, 2  ;;  %v3159_v34 = vrot.slane %v5576_v21, 3  ;;  %v3160_v33 = vrot.slane %v5579_v27, 2 }
 0x275   : > { %4814 = vxpose.xlu1.b32.end [2/2] (short) (narrow) %v5466_v15, 8  ;;  %4760 = vxpose.xlu0.b32.end [2/2] (short) (narrow) %v4759_v37, 8  ;;  %v4486_v15 = vunpack.i.l.bf16 %v5525_v63  ;;  %v3024_v63 = vrot.slane %v5579_v27, 1  ;;  %v3295_v36 = vrot.slane %v5576_v21, 4  ;;  %v3296_v46 = vrot.slane %v5579_v27, 3 }
 0x276   : > { %v3431_v37 = vrot.slane %v5576_v21, 5  ;;  %v2888_v49 = vsel %vm2761_vm0, %v5579_v27, %v2887_v2  ;;  %v3161_v62 = vsel %vm2761_vm0, %v3160_v33, %v3159_v34 }
 0x277   : > { %v4829_v29 = vpack.i.bf16 %v4486_v15, %v4476_v60  ;;  %v3025_v30 = vsel %vm2761_vm0, %v3024_v63, %v3023_v43  ;;  %v3297_v0 = vsel %vm2761_vm0, %v3296_v46, %v3295_v36 }
 0x279   : > { %4821 = vxpose.xlu1.b32.start [1/2] (short) (narrow) %v4820_v53, 8  ;;  %4767 = vxpose.xlu0.b32.start [1/2] (short) (narrow) %v4766_v51, 8  ;;  %v4590_v61 = vpop.trf.xlu0  ;;  %v3432_v53 = vrot.slane %v5579_v27, 4 }
 0x27a   : > { %v5591_v58 = vunpack.i.h.bf16 %v4590_v61  ;;  %v5593_v13 = vunpack.i.l.bf16 %v4590_v61 }
 0x27b   : > { %v5630_v9 = vsel %vm2761_vm0, %v3432_v53, %v3431_v37 }
 0x27c   : > { %7275 = vst [vmem:[#allocation17_spill] sm:$0xff] %v5591_v58  ;;  %7276 = vst [vmem:[#allocation18_spill] sm:$0xff] %v5593_v13  ;;  %v2943_v50 = vrot.slane %v5593_v13, 1  ;;  %v3079_v8 = vrot.slane %v5593_v13, 2  ;;  %v3080_v52 = vrot.slane %v5591_v58, 1  ;;  %v3215_v39 = vrot.slane %v5593_v13, 3 }
 0x27d   : > { %4823 = vxpose.xlu1.b32.end [2/2] (short) (narrow) %v4822_v55, 8  ;;  %4769 = vxpose.xlu0.b32.end [2/2] (short) (narrow) %v4768_v59, 8  ;;  %v3216_v59 = vrot.slane %v5591_v58, 2  ;;  %v3351_v15 = vrot.slane %v5593_v13, 4  ;;  %v3352_v60 = vrot.slane %v5591_v58, 3 }
 0x27e   : > { %v2944_v1 = vsel %vm2761_vm0, %v5591_v58, %v2943_v50 }
 0x281   : > { %4830 = vxpose.xlu1.b32.start [1/2] (short) (narrow) %v4829_v29, 8  ;;  %4776 = vxpose.xlu0.b32.start [1/2] (short) (narrow) %v4775_v3, 8  ;;  %v4599_v54 = vpop.trf.xlu0  ;;  %v4653_v11 = vpop.trf.xlu1  ;;  %v3081_v29 = vsel %vm2761_vm0, %v3080_v52, %v3079_v8 }
 0x282   : > { %v5602_v44 = vunpack.i.l.bf16 %v4599_v54  ;;  %v5604_v48 = vunpack.i.l.bf16 %v4653_v11  ;;  %v5613_v51 = vunpack.i.h.bf16 %v4599_v54  ;;  %v5615_v61 = vunpack.i.h.bf16 %v4653_v11 }
 0x283   : > { %v3217_v54 = vsel %vm2761_vm0, %v3216_v59, %v3215_v39 }
 0x284   : > { %7277 = vst [vmem:[#allocation19_spill] sm:$0xff] %v5602_v44  ;;  %7278 = vst [vmem:[#allocation20_spill] sm:$0xff] %v5604_v48  ;;  %v2889_v6 = vrot.slane %v5604_v48, 7  ;;  %v2901_v56 = vrot.slane %v5602_v44, 1  ;;  %v3162_v3 = vrot.slane %v5604_v48, 1  ;;  %v3027_v5 = vrot.slane %v5615_v61, 7 }
 0x285   : > { %4832 = vxpose.xlu1.b32.end [2/2] (short) (narrow) %v4831_v41, 8  ;;  %4778 = vxpose.xlu0.b32.end [2/2] (short) (narrow) %v4777_v19, 8  ;;  %7279 = vst [vmem:[#allocation21_spill] sm:$0xff] %v5613_v51  ;;  %7280 = vst [vmem:[#allocation22_spill] sm:$0xff] %v5615_v61  ;;  %v3037_v28 = vrot.slane %v5602_v44, 2  ;;  %v3038_v38 = vrot.slane %v5613_v51, 1  ;;  %v3026_v11 = vsel %vm2764_vm1, %v5604_v48, %v3025_v30 }
 0x286   : > { %v2891_v42 = vrot.slane %v5615_v61, 6  ;;  %v3353_v41 = vsel %vm2761_vm0, %v3352_v60, %v3351_v15  ;;  %v2890_v12 = vsel %vm2764_vm1, %v2889_v6, %v2888_v49  ;;  %v5645_v20 = vsel %vm2761_vm0, %v5613_v51, %v2901_v56 }
 0x287   : > { %v3173_v45 = vrot.slane %v5602_v44, 3  ;;  %v3163_v10 = vsel %vm2764_vm1, %v3162_v3, %v3161_v62  ;;  %v3298_v47 = vrot.slane %v5604_v48, 2  ;;  %v5658_v25 = vsel %vm2767_vm2, %v3027_v5, %v3026_v11 }
 0x288   : > { %v3039_v35 = vsel %vm2761_vm0, %v3038_v38, %v3037_v28  ;;  %v3300_v40 = vrot.slane %v5615_v61, 1  ;;  %v5663_v26 = vsel %vm2767_vm2, %v2891_v42, %v2890_v12  ;;  %v3309_v43 = vrot.slane %v5602_v44, 4 }
 0x289   : > { %4839 = vxpose.xlu1.b32.start [1/2] (short) (narrow) %v4838_v16, 8  ;;  %4785 = vxpose.xlu0.b32.start [1/2] (short) (narrow) %v4784_v18, 8  ;;  %v4608_v22 = vpop.trf.xlu0  ;;  %v4662_v31 = vpop.trf.xlu1  ;;  %v3174_v18 = vrot.slane %v5613_v51, 2  ;;  %v3310_v46 = vrot.slane %v5613_v51, 3  ;;  %v3434_v53 = vrot.slane %v5604_v48, 3  ;;  %v3445_v38 = vrot.slane %v5602_v44, 5 }
 0x28a   : > { %v5636_v19 = vunpack.i.l.bf16 %v4662_v31  ;;  %v5649_v16 = vunpack.i.h.bf16 %v4608_v22  ;;  %v5655_v24 = vunpack.i.h.bf16 %v4662_v31 }
 0x28b   : > { %v3175_v31 = vsel %vm2761_vm0, %v3174_v18, %v3173_v45 }
 0x28c   : > { %7281 = vst [vmem:[#allocation23_spill] sm:$0xff] %v5636_v19  ;;  %7282 = vst [vmem:[#allocation24_spill] sm:$0xff] %v5649_v16  ;;  %v3218_v2 = vrot.slane %v5636_v19, 1  ;;  %v2947_v34 = vrot.slane %v5655_v24, 6  ;;  %v3083_v33 = vrot.slane %v5655_v24, 7  ;;  %v3082_v49 = vsel %vm2764_vm1, %v5636_v19, %v3081_v29 }
 0x28d   : > { %4841 = vxpose.xlu1.b32.end [2/2] (short) (narrow) %v4840_v57, 8  ;;  %4787 = vxpose.xlu0.b32.end [2/2] (short) (narrow) %v4786_v23, 8  ;;  %v5651_v23 = vunpack.i.l.bf16 %v4608_v22  ;;  %7284 = vst [vmem:[#allocation26_spill] sm:$0xff] %v5655_v24  ;;  %v2945_v22 = vrot.slane %v5636_v19, 7  ;;  %v5668_v57 = vsel %vm2767_vm2, %v5615_v61, %v3163_v10  ;;  %v3230_v30 = vrot.slane %v5649_v16, 2 }
 0x28e   : > { %v3354_v50 = vrot.slane %v5636_v19, 2  ;;  %v3219_v8 = vsel %vm2764_vm1, %v3218_v2, %v3217_v54  ;;  %v3366_v52 = vrot.slane %v5649_v16, 3  ;;  %v5702_v56 = vsel %vm2767_vm2, %v3083_v33, %v3082_v49 }
 0x28f   : > { %7283 = vst [vmem:[#allocation25_spill] sm:$0xff] %v5651_v23  ;;  %v2957_v63 = vrot.slane %v5651_v23, 1  ;;  %v3229_v36 = vrot.slane %v5651_v23, 3  ;;  %v2946_v37 = vsel %vm2764_vm1, %v2945_v22, %v2944_v1  ;;  %v3356_v3 = vrot.slane %v5655_v24, 1 }
 0x290   : > { %v5699_v6 = vsel %vm2767_vm2, %v2947_v34, %v2946_v37  ;;  %v3355_v29 = vsel %vm2764_vm1, %v3354_v50, %v3353_v41  ;;  %v3446_v54 = vrot.slane %v5613_v51, 4  ;;  %v3435_v41 = vsel %vm2764_vm1, %v3434_v53, %v5630_v9 }
 0x291   : > { %4848 = vxpose.xlu1.b32.start [1/2] (short) (narrow) %v4847_v32, 8  ;;  %v4671_v55 = vpop.trf.xlu1  ;;  %v3093_v32 = vrot.slane %v5651_v23, 2  ;;  %v2958_v15 = vsel %vm2761_vm0, %v5649_v16, %v2957_v63  ;;  %v3231_v1 = vsel %vm2761_vm0, %v3230_v30, %v3229_v36  ;;  %v3487_v10 = vrot.slane %v5593_v13, 5 }
 0x292   : > { %v5691_v39 = vunpack.i.h.bf16 %v4671_v55  ;;  %v5693_v59 = vunpack.i.l.bf16 %v4671_v55  ;;  %v5710_v55 = vsel %vm2767_vm2, %v5655_v24, %v3219_v8  ;;  %v3436_v2 = vrot.slane %v5615_v61, 2 }
 0x293   : > { %v5738_v63 = vsel %vm2767_vm2, %v3356_v3, %v3355_v29  ;;  %v3490_v34 = vrot.slane %v5636_v19, 3 }
 0x294   : > { %7285 = vst [vmem:[#allocation27_spill] sm:$0xff] %v5691_v39  ;;  %7286 = vst [vmem:[#allocation28_spill] sm:$0xff] %v5693_v59  ;;  %v2903_v42 = vrot.slane %v5693_v59, 7  ;;  %v3040_v11 = vsel %vm2764_vm1, %v5693_v59, %v3039_v35  ;;  %v3041_v12 = vrot.slane %v5691_v39, 7  ;;  %v3176_v45 = vrot.slane %v5693_v59, 1 }
 0x295   : > { %4850 = vxpose.xlu1.b32.end [2/2] (short) (narrow) %v4849_v17, 8  ;;  %v3094_v17 = vrot.slane %v5649_v16, 1  ;;  %v3312_v18 = vrot.slane %v5693_v59, 2  ;;  %v2905_v22 = vrot.slane %v5691_v39, 6  ;;  %v3448_v35 = vrot.slane %v5693_v59, 3 }
 0x296   : > { %v3314_v9 = vrot.slane %v5691_v39, 1  ;;  %v3177_v33 = vsel %vm2764_vm1, %v3176_v45, %v3175_v31  ;;  %v5760_v31 = vsel %vm2767_vm2, %v3436_v2, %v3435_v41  ;;  %v3623_v2 = vrot.slane %v5593_v13, 6 }
 0x297   : > { %v3095_v60 = vsel %vm2761_vm0, %v3094_v17, %v3093_v32  ;;  %v3447_v32 = vsel %vm2761_vm0, %v3446_v54, %v3445_v38  ;;  %v2904_v17 = vsel %vm2764_vm1, %v2903_v42, %v5645_v20  ;;  %v3501_v54 = vrot.slane %v5651_v23, 5 }
 0x298   : > { %v3449_v50 = vsel %vm2764_vm1, %v3448_v35, %v3447_v32  ;;  %v5764_v53 = vsel %vm2767_vm2, %v2905_v22, %v2904_v17  ;;  %v3582_v22 = vrot.slane %v5613_v51, 5  ;;  %v3703_v32 = vrot.slane %v5576_v21, 7 }
 0x299   : > { %4857 = vxpose.xlu1.b32.start [1/2] (short) (narrow) %v4856_v4, 8  ;;  %v4680_v7 = vpop.trf.xlu1  ;;  %v3299_v4 = vsel %vm2764_vm1, %v3298_v47, %v3297_v0  ;;  %v3311_v0 = vsel %vm2761_vm0, %v3310_v46, %v3309_v43  ;;  %v3488_v47 = vrot.slane %v5591_v58, 4  ;;  %v3450_v46 = vrot.slane %v5691_v39, 2 }
 0x29a   : > { %v5705_v62 = vsel %vm2767_vm2, %v3300_v40, %v3299_v4  ;;  %v5715_v5 = vunpack.i.l.bf16 %v4680_v7  ;;  %v5730_v40 = vunpack.i.h.bf16 %v4680_v7  ;;  %v5744_v7 = vsel %vm2767_vm2, %v3041_v12, %v3040_v11 }
 0x29b   : > { %v3313_v36 = vsel %vm2764_vm1, %v3312_v18, %v3311_v0  ;;  %v3489_v37 = vsel %vm2761_vm0, %v3488_v47, %v3487_v10  ;;  %v5768_v0 = vsel %vm2767_vm2, %v5691_v39, %v3177_v33  ;;  %v5777_v38 = vsel %vm2767_vm2, %v3450_v46, %v3449_v50 }
 0x29c   : > { %7287 = vst [vmem:[#allocation29_spill] sm:$0xff] %v5715_v5  ;;  %7288 = vst [vmem:[#allocation30_spill] sm:$0xff] %v5730_v40  ;;  %v2959_v43 = vrot.slane %v5715_v5, 7  ;;  %v3232_v4 = vrot.slane %v5715_v5, 1  ;;  %v2961_v49 = vrot.slane %v5730_v40, 6  ;;  %v3097_v30 = vrot.slane %v5730_v40, 7 }
 0x29d   : > { %4859 = vxpose.xlu1.b32.end [2/2] (short) (narrow) %v5595_v14, 8  ;;  %v3365_v14 = vrot.slane %v5651_v23, 4  ;;  %v3368_v20 = vrot.slane %v5715_v5, 2  ;;  %v3491_v3 = vsel %vm2764_vm1, %v3490_v34, %v3489_v37  ;;  %v3502_v12 = vrot.slane %v5649_v16, 4 }
 0x29e   : > { %v2960_v8 = vsel %vm2764_vm1, %v2959_v43, %v2958_v15  ;;  %v3233_v29 = vsel %vm2764_vm1, %v3232_v4, %v3231_v1  ;;  %v5773_v15 = vsel %vm2767_vm2, %v3314_v9, %v3313_v36  ;;  %v3567_v18 = vrot.slane %v5576_v21, 6 }
 0x29f   : > { %v3367_v28 = vsel %vm2761_vm0, %v3366_v52, %v3365_v14  ;;  %v3096_v14 = vsel %vm2764_vm1, %v5715_v5, %v3095_v60  ;;  %v3492_v52 = vrot.slane %v5655_v24, 2  ;;  %v5781_v42 = vsel %vm2767_vm2, %v2961_v49, %v2960_v8 }
 0x2a0   : > { %v5784_v11 = vsel %vm2767_vm2, %v3097_v30, %v3096_v14  ;;  %v3369_v1 = vsel %vm2764_vm1, %v3368_v20, %v3367_v28  ;;  %v5790_v41 = vsel %vm2767_vm2, %v5730_v40, %v3233_v29  ;;  %v3568_v10 = vrot.slane %v5579_v27, 5 }
 0x2a1   : > { %v5793_v45 = vsel %vm2767_vm2, %v3492_v52, %v3491_v3  ;;  %v3581_v47 = vrot.slane %v5602_v44, 6  ;;  %v3624_v28 = vrot.slane %v5591_v58, 5  ;;  %v3637_v43 = vrot.slane %v5651_v23, 6 }
 0x2a2   : > { %v3638_v9 = vrot.slane %v5649_v16, 5  ;;  %v3704_v17 = vrot.slane %v5579_v27, 6  ;;  %v3503_v4 = vsel %vm2761_vm0, %v3502_v12, %v3501_v54  ;;  %v3504_v34 = vrot.slane %v5715_v5, 3 }
 0x2a3   : > { %v3569_v33 = vsel %vm2761_vm0, %v3568_v10, %v3567_v18  ;;  %v3570_v36 = vrot.slane %v5604_v48, 4  ;;  %v3584_v46 = vrot.slane %v5693_v59, 4  ;;  %v3626_v37 = vrot.slane %v5636_v19, 4 }
 0x2a4   : > { %v3583_v49 = vsel %vm2761_vm0, %v3582_v22, %v3581_v47  ;;  %v3625_v30 = vsel %vm2761_vm0, %v3624_v28, %v3623_v2  ;;  %v3640_v20 = vrot.slane %v5715_v5, 4  ;;  %v3706_v50 = vrot.slane %v5604_v48, 5 }
 0x2a5   : > { %v3639_v52 = vsel %vm2761_vm0, %v3638_v9, %v3637_v43  ;;  %v3705_v29 = vsel %vm2761_vm0, %v3704_v17, %v3703_v32  ;;  %v3505_v3 = vsel %vm2764_vm1, %v3504_v34, %v3503_v4  ;;  %v3506_v54 = vrot.slane %v5730_v40, 2 }
 0x2a6   : > { %v3572_v12 = vrot.slane %v5615_v61, 3  ;;  %v3586_v18 = vrot.slane %v5691_v39, 3  ;;  %v3571_v10 = vsel %vm2764_vm1, %v3570_v36, %v3569_v33  ;;  %v3585_v47 = vsel %vm2764_vm1, %v3584_v46, %v3583_v49 }
 0x2a7   : > { %v3627_v22 = vsel %vm2764_vm1, %v3626_v37, %v3625_v30  ;;  %v3628_v2 = vrot.slane %v5655_v24, 3  ;;  %v3641_v28 = vsel %vm2764_vm1, %v3640_v20, %v3639_v52  ;;  %v3707_v43 = vsel %vm2764_vm1, %v3706_v50, %v3705_v29 }
 0x2a8   : > { %v3708_v9 = vrot.slane %v5615_v61, 4  ;;  %v7293_v27 = vrot.slane %v5730_v40, 1  ;;  %v5859_v16 = vsel %vm2767_vm2, %v3506_v54, %v3505_v3  ;;  %v5862_v23 = vsel %vm2767_vm2, %v3572_v12, %v3571_v10 }
 0x2a9   : > { %v5865_v24 = vsel %vm2767_vm2, %v3586_v18, %v3585_v47 }
 0x2aa   : > { %v5856_v5 = vsel %vm2767_vm2, %v7293_v27, %v3369_v1  ;;  %7294 = vst [vmem:[#allocation35_spill] sm:$0xff] %v5865_v24  ;;  %v5875_v27 = vsel %vm2767_vm2, %v3708_v9, %v3707_v43 }
 0x2ab   : > { %7297 = vst [vmem:[#allocation38_spill] sm:$0xff] %v5875_v27 }
 0x2b1   : > { %v4617_v35 = vpop.trf.xlu0 }
 0x2b2   : > { %v5815_v8 = vunpack.i.h.bf16 %v4617_v35  ;;  %v5817_v14 = vunpack.i.l.bf16 %v4617_v35  ;;  %v3642_v35 = vrot.slane %v5730_v40, 3 }
 0x2b4   : > { %7289 = vst [vmem:[#allocation31_spill] sm:$0xff] %v5815_v8  ;;  %7290 = vst [vmem:[#allocation32_spill] sm:$0xff] %v5817_v14  ;;  %v3731_v17 = vrot.slane %v5817_v14, 7  ;;  %v3732_v4 = vrot.slane %v5815_v8, 6  ;;  %v3051_v34 = vrot.slane %v5817_v14, 2  ;;  %v3052_v33 = vrot.slane %v5815_v8, 1 }
 0x2b5   : > { %v3187_v37 = vrot.slane %v5817_v14, 3  ;;  %v3188_v49 = vrot.slane %v5815_v8, 2  ;;  %v2915_v30 = vrot.slane %v5817_v14, 1  ;;  %v3323_v20 = vrot.slane %v5817_v14, 4 }
 0x2b6   : > { %v3324_v60 = vrot.slane %v5815_v8, 3  ;;  %v3733_v19 = vsel %vm2761_vm0, %v3732_v4, %v3731_v17  ;;  %v5872_v58 = vsel %vm2767_vm2, %v3642_v35, %v3641_v28  ;;  %v3053_v1 = vsel %vm2761_vm0, %v3052_v33, %v3051_v34 }
 0x2b7   : > { %7296 = vst [vmem:[#allocation37_spill] sm:$0xff] %v5872_v58  ;;  %v3189_v3 = vsel %vm2761_vm0, %v3188_v49, %v3187_v37  ;;  %v2916_v54 = vsel %vm2761_vm0, %v5815_v8, %v2915_v30 }
 0x2b8   : > { %v3325_v12 = vsel %vm2761_vm0, %v3324_v60, %v3323_v20 }
 0x2b9   : > { %v4626_v32 = vpop.trf.xlu0 }
 0x2ba   : > { %v5837_v36 = vunpack.i.h.bf16 %v4626_v32  ;;  %v5839_v46 = vunpack.i.l.bf16 %v4626_v32 }
 0x2bc   : > { %7291 = vst [vmem:[#allocation33_spill] sm:$0xff] %v5837_v36  ;;  %7292 = vst [vmem:[#allocation34_spill] sm:$0xff] %v5839_v46  ;;  %v3107_v50 = vrot.slane %v5839_v46, 2  ;;  %v3108_v52 = vrot.slane %v5837_v36, 1  ;;  %v3243_v29 = vrot.slane %v5839_v46, 3  ;;  %v3244_v61 = vrot.slane %v5837_v36, 2 }
 0x2bd   : > { %v2971_v32 = vrot.slane %v5839_v46, 1  ;;  %v3379_v21 = vrot.slane %v5839_v46, 4  ;;  %v3380_v48 = vrot.slane %v5837_v36, 3  ;;  %v5869_v46 = vsel %vm2767_vm2, %v3628_v2, %v3627_v22 }
 0x2be   : > { %7295 = vst [vmem:[#allocation36_spill] sm:$0xff] %v5869_v46  ;;  %v3109_v10 = vsel %vm2761_vm0, %v3108_v52, %v3107_v50  ;;  %v3245_v47 = vsel %vm2761_vm0, %v3244_v61, %v3243_v29 }
 0x2bf   : > { %v5886_v22 = vsel %vm2761_vm0, %v5837_v36, %v2971_v32  ;;  %v5889_v2 = vsel %vm2761_vm0, %v3380_v48, %v3379_v21 }
 0x2c0   : > { %7298 = vst [vmem:[#allocation39_spill] sm:$0xff] %v5886_v22  ;;  %7299 = vst [vmem:[#allocation40_spill] sm:$0xff] %v5889_v2 }
 0x2c1   : > { %v4635_v18 = vpop.trf.xlu0  ;;  %v4689_v43 = vpop.trf.xlu1 }
 0x2c2   : > { %v5891_v28 = vunpack.i.h.bf16 %v4635_v18  ;;  %v5893_v35 = vunpack.i.l.bf16 %v4635_v18  ;;  %v5895_v9 = vunpack.i.h.bf16 %v4689_v43  ;;  %v5897_v60 = vunpack.i.l.bf16 %v4689_v43 }
 0x2c4   : > { %7300 = vst [vmem:[#allocation41_spill] sm:$0xff] %v5891_v28  ;;  %7301 = vst [vmem:[#allocation42_spill] sm:$0xff] %v5893_v35  ;;  %v3745_v17 = vrot.slane %v5893_v35, 7  ;;  %v3746_v61 = vrot.slane %v5891_v28, 6  ;;  %v3065_v4 = vrot.slane %v5893_v35, 2  ;;  %v3066_v34 = vrot.slane %v5891_v28, 1 }
 0x2c5   : > { %7302 = vst [vmem:[#allocation43_spill] sm:$0xff] %v5895_v9  ;;  %7303 = vst [vmem:[#allocation44_spill] sm:$0xff] %v5897_v60  ;;  %v3734_v21 = vrot.slane %v5897_v60, 5  ;;  %v3736_v48 = vrot.slane %v5895_v9, 4  ;;  %v3054_v33 = vsel %vm2764_vm1, %v5897_v60, %v3053_v1  ;;  %v3055_v37 = vrot.slane %v5895_v9, 7 }
 0x2c6   : > { %v5909_v49 = vsel %vm2761_vm0, %v3746_v61, %v3745_v17  ;;  %v5912_v30 = vsel %vm2761_vm0, %v3066_v34, %v3065_v4  ;;  %v3190_v20 = vrot.slane %v5897_v60, 1  ;;  %v3201_v50 = vrot.slane %v5893_v35, 3 }
 0x2c7   : > { %v3735_v52 = vsel %vm2764_vm1, %v3734_v21, %v3733_v19  ;;  %v5918_v29 = vsel %vm2767_vm2, %v3055_v37, %v3054_v33  ;;  %v3202_v32 = vrot.slane %v5891_v28, 2  ;;  %v2917_v1 = vrot.slane %v5897_v60, 7 }
 0x2c8   : > { %v5923_v18 = vsel %vm2767_vm2, %v3736_v48, %v3735_v52  ;;  %v3191_v43 = vsel %vm2764_vm1, %v3190_v20, %v3189_v3  ;;  %v2919_v17 = vrot.slane %v5895_v9, 6  ;;  %v2929_v61 = vrot.slane %v5893_v35, 1 }
 0x2c9   : > { %v4644_v4 = vpop.trf.xlu0  ;;  %v5930_v19 = vsel %vm2767_vm2, %v5895_v9, %v3191_v43  ;;  %v5933_v34 = vsel %vm2761_vm0, %v3202_v32, %v3201_v50  ;;  %v2918_v21 = vsel %vm2764_vm1, %v2917_v1, %v2916_v54  ;;  %v3326_v33 = vrot.slane %v5897_v60, 2  ;;  %v4698_v3 = vpop.trf.xlu1 }
 0x2ca   : > { %7304 = vst [vmem:[#allocation45_spill] sm:$0xff] %v5930_v19  ;;  %7305 = vst [vmem:[#allocation46_spill] sm:$0xff] %v5933_v34  ;;  %v5937_v48 = vunpack.i.h.bf16 %v4644_v4  ;;  %v5939_v37 = vunpack.i.l.bf16 %v4644_v4  ;;  %v5941_v20 = vunpack.i.h.bf16 %v4698_v3  ;;  %v5943_v52 = vunpack.i.l.bf16 %v4698_v3 }
 0x2cb   : > { %v5954_v3 = vsel %vm2767_vm2, %v2919_v17, %v2918_v21  ;;  %v5964_v60 = vsel %vm2761_vm0, %v5891_v28, %v2929_v61  ;;  %v3327_v8 = vsel %vm2764_vm1, %v3326_v33, %v3325_v12  ;;  %v3328_v17 = vrot.slane %v5895_v9, 1 }
 0x2cc   : > { %7306 = vst [vmem:[#allocation47_spill] sm:$0xff] %v5937_v48  ;;  %7307 = vst [vmem:[#allocation48_spill] sm:$0xff] %v5939_v37  ;;  %v3121_v43 = vrot.slane %v5939_v37, 2  ;;  %v3122_v50 = vrot.slane %v5937_v48, 1  ;;  %v3257_v32 = vrot.slane %v5939_v37, 3  ;;  %v3258_v54 = vrot.slane %v5937_v48, 2 }
 0x2cd   : > { %7308 = vst [vmem:[#allocation49_spill] sm:$0xff] %v5941_v20  ;;  %7309 = vst [vmem:[#allocation50_spill] sm:$0xff] %v5943_v52  ;;  %v3110_v1 = vsel %vm2764_vm1, %v5943_v52, %v3109_v10  ;;  %v3111_v4 = vrot.slane %v5941_v20, 7  ;;  %v3246_v36 = vrot.slane %v5943_v52, 1  ;;  %v5981_v33 = vsel %vm2767_vm2, %v3328_v17, %v3327_v8 }
 0x2ce   : > { %7310 = vst [vmem:[#allocation51_spill] sm:$0xff] %v5954_v3  ;;  %v5957_v40 = vsel %vm2761_vm0, %v3122_v50, %v3121_v43  ;;  %v5960_v13 = vsel %vm2761_vm0, %v3258_v54, %v3257_v32  ;;  %7312 = vst [vmem:[#allocation53_spill] sm:$0xff] %v5964_v60 }
 0x2cf   : > { %7311 = vst [vmem:[#allocation52_spill] sm:$0xff] %v5960_v13  ;;  %v5968_v10 = vsel %vm2767_vm2, %v3111_v4, %v3110_v1  ;;  %v3247_v14 = vsel %vm2764_vm1, %v3246_v36, %v3245_v47  ;;  %7314 = vst [vmem:[#allocation55_spill] sm:$0xff] %v5981_v33 }
 0x2d0   : > { %v5975_v43 = vsel %vm2767_vm2, %v5941_v20, %v3247_v14 }
 0x2d1   : > { %7313 = vst [vmem:[#allocation54_spill] sm:$0xff] %v5975_v43  ;;  %v4725_v12 = vpop.trf.xlu0  ;;  %v4707_v4 = vpop.trf.xlu1 }
 0x2d2   : > { %v5986_v1 = vunpack.i.h.bf16 %v4725_v12  ;;  %v5988_v14 = vunpack.i.l.bf16 %v4725_v12  ;;  %v5990_v50 = vunpack.i.h.bf16 %v4707_v4  ;;  %v5992_v61 = vunpack.i.l.bf16 %v4707_v4 }
 0x2d4   : > { %7315 = vst [vmem:[#allocation56_spill] sm:$0xff] %v5986_v1  ;;  %7316 = vst [vmem:[#allocation57_spill] sm:$0xff] %v5988_v14  ;;  %v2893_v32 = vrot.slane %v5988_v14, 5  ;;  %v2895_v8 = vrot.slane %v5986_v1, 4  ;;  %v3029_v17 = vrot.slane %v5988_v14, 6  ;;  %v3031_v36 = vrot.slane %v5986_v1, 5 }
 0x2d5   : > { %7317 = vst [vmem:[#allocation58_spill] sm:$0xff] %v5990_v50  ;;  %7318 = vst [vmem:[#allocation59_spill] sm:$0xff] %v5992_v61  ;;  %v3165_v47 = vrot.slane %v5988_v14, 7  ;;  %v3167_v54 = vrot.slane %v5986_v1, 6  ;;  %v3302_v12 = vsel %vm2770_vm3, %v5988_v14, %v5705_v62  ;;  %v3303_v21 = vrot.slane %v5986_v1, 7 }
 0x2d6   : > { %v2894_v4 = vsel %vm2770_vm3, %v2893_v32, %v5663_v26  ;;  %v3030_v9 = vsel %vm2770_vm3, %v3029_v17, %v5658_v25  ;;  %v3748_v39 = vrot.slane %v5992_v61, 5  ;;  %v3750_v59 = vrot.slane %v5990_v50, 4 }
 0x2d7   : > { %v2896_v27 = vsel %vm2773_vm4, %v2895_v8, %v2894_v4  ;;  %v3032_v51 = vsel %vm2773_vm4, %v3031_v36, %v3030_v9  ;;  %v3166_v44 = vsel %vm2770_vm3, %v3165_v47, %v5668_v57  ;;  %v6015_v62 = vsel %vm2773_vm4, %v3303_v21, %v3302_v12 }
 0x2d8   : > { %v6018_v2 = vsel %vm2773_vm4, %v3167_v54, %v3166_v44  ;;  %v3749_v25 = vsel %vm2764_vm1, %v3748_v39, %v5909_v49  ;;  %v3438_v26 = vrot.slane %v5988_v14, 1  ;;  %v3068_v32 = vsel %vm2764_vm1, %v5992_v61, %v5912_v30 }
 0x2d9   : > { %v4734_v8 = vpop.trf.xlu0  ;;  %v6027_v9 = vsel %vm2767_vm2, %v3750_v59, %v3749_v25  ;;  %v3069_v57 = vrot.slane %v5990_v50, 7  ;;  %v3574_v21 = vrot.slane %v5988_v14, 2  ;;  %v4716_v39 = vpop.trf.xlu1 }
 0x2da   : > { %v6032_v36 = vunpack.i.h.bf16 %v4734_v8  ;;  %v6034_v47 = vunpack.i.l.bf16 %v4734_v8  ;;  %v6036_v49 = vunpack.i.h.bf16 %v4716_v39  ;;  %v6038_v54 = vunpack.i.l.bf16 %v4716_v39 }
 0x2db   : > { %v3439_v48 = vsel %vm2770_vm3, %v3438_v26, %v5760_v31  ;;  %v6057_v37 = vsel %vm2767_vm2, %v3069_v57, %v3068_v32  ;;  %v6082_v57 = vsel %vm2770_vm3, %v3574_v21, %v5862_v23 }
 0x2dc   : > { %7319 = vst [vmem:[#allocation60_spill] sm:$0xff] %v6032_v36  ;;  %7320 = vst [vmem:[#allocation61_spill] sm:$0xff] %v6034_v47  ;;  %v2949_v30 = vrot.slane %v6034_v47, 5  ;;  %v2951_v59 = vrot.slane %v6032_v36, 4  ;;  %v3085_v17 = vrot.slane %v6034_v47, 6  ;;  %v3087_v12 = vrot.slane %v6032_v36, 5 }
 0x2dd   : > { %7321 = vst [vmem:[#allocation62_spill] sm:$0xff] %v6036_v49  ;;  %7322 = vst [vmem:[#allocation63_spill] sm:$0xff] %v6038_v54  ;;  %v3221_v4 = vrot.slane %v6034_v47, 7  ;;  %v3223_v25 = vrot.slane %v6032_v36, 6  ;;  %v3358_v8 = vsel %vm2770_vm3, %v6034_v47, %v5738_v63  ;;  %v3359_v39 = vrot.slane %v6032_v36, 7 }
 0x2de   : > { %v2950_v44 = vsel %vm2770_vm3, %v2949_v30, %v5699_v6  ;;  %v3086_v14 = vsel %vm2770_vm3, %v3085_v17, %v5702_v56  ;;  %v6071_v56 = vsel %vm2773_vm4, %v5986_v1, %v3439_v48  ;;  %v6077_v26 = vsel %vm2764_vm1, %v6038_v54, %v5957_v40 }
 0x2df   : > { %v2952_v20 = vsel %vm2773_vm4, %v2951_v59, %v2950_v44  ;;  %v3088_v52 = vsel %vm2773_vm4, %v3087_v12, %v3086_v14  ;;  %v3222_v63 = vsel %vm2770_vm3, %v3221_v4, %v5710_v55  ;;  %v6064_v22 = vsel %vm2773_vm4, %v3359_v39, %v3358_v8 }
 0x2e0   : > { %v6067_v6 = vsel %vm2773_vm4, %v3223_v25, %v3222_v63 }
 0x2e1   : > { %v4797_v14 = vpop.trf.xlu1  ;;  %v4743_v32 = vpop.trf.xlu0 }
 0x2e2   : > { %v6086_v30 = vunpack.i.h.bf16 %v4797_v14  ;;  %v6088_v59 = vunpack.i.l.bf16 %v4797_v14  ;;  %v6090_v17 = vunpack.i.h.bf16 %v4743_v32  ;;  %v6092_v40 = vunpack.i.l.bf16 %v4743_v32 }
 0x2e4   : > { %7323 = vst [vmem:[#allocation64_spill] sm:$0xff] %v6086_v30  ;;  %7324 = vst [vmem:[#allocation65_spill] sm:$0xff] %v6088_v59  ;;  %v2897_v12 = vrot.slane %v6088_v59, 3  ;;  %v2899_v4 = vrot.slane %v6086_v30, 2  ;;  %v3033_v25 = vrot.slane %v6088_v59, 4  ;;  %v3035_v23 = vrot.slane %v6086_v30, 3 }
 0x2e5   : > { %7325 = vst [vmem:[#allocation66_spill] sm:$0xff] %v6090_v17  ;;  %v2907_v21 = vrot.slane %v6092_v40, 5  ;;  %v2909_v8 = vrot.slane %v6090_v17, 4  ;;  %v3043_v39 = vrot.slane %v6092_v40, 6  ;;  %v3045_v63 = vrot.slane %v6090_v17, 5 }
 0x2e6   : > { %v2898_v14 = vsel %vm2776_vm6, %v2897_v12, %v2896_v27  ;;  %v3034_v32 = vsel %vm2776_vm6, %v3033_v25, %v3032_v51  ;;  %v3169_v48 = vrot.slane %v6088_v59, 5  ;;  %v3171_v44 = vrot.slane %v6086_v30, 4 }
 0x2e7   : > { %v6107_v55 = vsel %vm2779_vm5, %v2899_v4, %v2898_v14  ;;  %v2908_v31 = vsel %vm2770_vm3, %v2907_v21, %v5764_v53  ;;  %v6112_v28 = vsel %vm2779_vm5, %v3035_v23, %v3034_v32  ;;  %v3044_v35 = vsel %vm2770_vm3, %v3043_v39, %v5744_v7 }
 0x2e8   : > { %v2910_v27 = vsel %vm2773_vm4, %v2909_v8, %v2908_v31  ;;  %v3046_v51 = vsel %vm2773_vm4, %v3045_v63, %v3044_v35  ;;  %v3170_v12 = vsel %vm2776_vm6, %v3169_v48, %v6018_v2  ;;  %v3179_v25 = vrot.slane %v6092_v40, 7 }
 0x2e9   : > { %v4806_v4 = vpop.trf.xlu1  ;;  %v4752_v14 = vpop.trf.xlu0  ;;  %v6122_v33 = vsel %vm2779_vm5, %v3171_v44, %v3170_v12  ;;  %v3181_v53 = vrot.slane %v6090_v17, 6  ;;  %v3305_v23 = vrot.slane %v6088_v59, 6  ;;  %v3307_v7 = vrot.slane %v6086_v30, 5 }
 0x2ea   : > { %v6127_v21 = vunpack.i.h.bf16 %v4806_v4  ;;  %v6129_v31 = vunpack.i.l.bf16 %v4806_v4  ;;  %v6131_v35 = vunpack.i.h.bf16 %v4752_v14  ;;  %v6133_v2 = vunpack.i.l.bf16 %v4752_v14 }
 0x2eb   : > { %v3180_v3 = vsel %vm2770_vm3, %v3179_v25, %v5768_v0 }
 0x2ec   : > { %7326 = vst [vmem:[#allocation67_spill] sm:$0xff] %v6129_v31  ;;  %v2953_v48 = vrot.slane %v6129_v31, 3  ;;  %v2955_v8 = vrot.slane %v6127_v21, 2  ;;  %v3089_v44 = vrot.slane %v6129_v31, 4  ;;  %v3091_v39 = vrot.slane %v6127_v21, 3 }
 0x2ed   : > { %v2963_v63 = vrot.slane %v6133_v2, 5  ;;  %v2965_v32 = vrot.slane %v6131_v35, 4  ;;  %v3099_v12 = vrot.slane %v6133_v2, 6  ;;  %v3101_v4 = vrot.slane %v6131_v35, 5 }
 0x2ee   : > { %v2954_v60 = vsel %vm2776_vm6, %v2953_v48, %v2952_v20  ;;  %v3090_v14 = vsel %vm2776_vm6, %v3089_v44, %v3088_v52  ;;  %v3225_v13 = vrot.slane %v6129_v31, 5  ;;  %v3182_v0 = vsel %vm2773_vm4, %v3181_v53, %v3180_v3 }
 0x2ef   : > { %v6149_v54 = vsel %vm2779_vm5, %v2955_v8, %v2954_v60  ;;  %v2964_v43 = vsel %vm2770_vm3, %v2963_v63, %v5781_v42  ;;  %v6154_v58 = vsel %vm2779_vm5, %v3091_v39, %v3090_v14  ;;  %v3100_v46 = vsel %vm2770_vm3, %v3099_v12, %v5784_v11 }
 0x2f0   : > { %v2966_v20 = vsel %vm2773_vm4, %v2965_v32, %v2964_v43  ;;  %v3102_v52 = vsel %vm2773_vm4, %v3101_v4, %v3100_v46  ;;  %v3226_v25 = vsel %vm2776_vm6, %v3225_v13, %v6067_v6  ;;  %v3227_v8 = vrot.slane %v6127_v21, 4 }
 0x2f1   : > { %v4815_v60 = vpop.trf.xlu1  ;;  %v4761_v48 = vpop.trf.xlu0  ;;  %v3235_v42 = vrot.slane %v6133_v2, 7  ;;  %v3237_v44 = vrot.slane %v6131_v35, 6  ;;  %v3306_v11 = vsel %vm2776_vm6, %v3305_v23, %v6015_v62 }
 0x2f2   : > { %v6168_v39 = vunpack.i.h.bf16 %v4815_v60  ;;  %v6170_v43 = vunpack.i.l.bf16 %v4815_v60  ;;  %v6172_v46 = vunpack.i.h.bf16 %v4761_v48  ;;  %v6174_v3 = vunpack.i.l.bf16 %v4761_v48 }
 0x2f3   : > { %v6183_v23 = vsel %vm2779_vm5, %v3227_v8, %v3226_v25  ;;  %v3236_v12 = vsel %vm2770_vm3, %v3235_v42, %v5790_v41  ;;  %v6191_v48 = vsel %vm2779_vm5, %v3307_v7, %v3306_v11  ;;  %v3316_v25 = vsel %vm2770_vm3, %v6092_v40, %v5773_v15 }
 0x2f4   : > { %7327 = vst [vmem:[#allocation68_spill] sm:$0xff] %v6168_v39  ;;  %7328 = vst [vmem:[#allocation69_spill] sm:$0xff] %v6170_v43  ;;  %v2911_v13 = vrot.slane %v6170_v43, 3  ;;  %v2913_v6 = vrot.slane %v6168_v39, 2  ;;  %v3047_v53 = vrot.slane %v6170_v43, 4  ;;  %v3049_v63 = vrot.slane %v6168_v39, 3 }
 0x2f5   : > { %7329 = vst [vmem:[#allocation70_spill] sm:$0xff] %v6172_v46  ;;  %v3183_v32 = vrot.slane %v6170_v43, 5  ;;  %v3185_v62 = vrot.slane %v6168_v39, 4  ;;  %v3238_v60 = vsel %vm2773_vm4, %v3237_v44, %v3236_v12  ;;  %v3317_v7 = vrot.slane %v6090_v17, 7 }
 0x2f6   : > { %v2912_v4 = vsel %vm2776_vm6, %v2911_v13, %v2910_v27  ;;  %v3048_v14 = vsel %vm2776_vm6, %v3047_v53, %v3046_v51  ;;  %v3321_v11 = vrot.slane %v6168_v39, 5  ;;  %v3361_v15 = vrot.slane %v6129_v31, 6 }
 0x2f7   : > { %v2914_v50 = vsel %vm2779_vm5, %v2913_v6, %v2912_v4  ;;  %v3050_v61 = vsel %vm2779_vm5, %v3049_v63, %v3048_v14  ;;  %v3184_v34 = vsel %vm2776_vm6, %v3183_v32, %v3182_v0  ;;  %v3319_v0 = vrot.slane %v6170_v43, 6 }
 0x2f8   : > { %v4865_v41 = vpack.i.bf16 %v2914_v50, %v6107_v55  ;;  %v4875_v27 = vpack.i.bf16 %v3050_v61, %v6112_v28  ;;  %v6202_v51 = vsel %vm2779_vm5, %v3185_v62, %v3184_v34  ;;  %v3318_v62 = vsel %vm2773_vm4, %v3317_v7, %v3316_v25 }
 0x2f9   : > { %v4824_v8 = vpop.trf.xlu1  ;;  %v4770_v42 = vpop.trf.xlu0  ;;  %v3362_v12 = vsel %vm2776_vm6, %v3361_v15, %v6064_v22 }
 0x2fa   : > { %v6210_v13 = vunpack.i.h.bf16 %v4824_v8  ;;  %v6212_v50 = vunpack.i.l.bf16 %v4824_v8  ;;  %4866 = vrot.lane.b32.xlu0 %v4865_v41, %s5196_s26  ;;  %v6215_v28 = vunpack.i.h.bf16 %v4770_v42  ;;  %v6217_v34 = vunpack.i.l.bf16 %v4770_v42 }
 0x2fb   : > { %v3320_v41 = vsel %vm2776_vm6, %v3319_v0, %v3318_v62  ;;  %v3363_v8 = vrot.slane %v6127_v21, 5 }
 0x2fc   : > { %7330 = vst [vmem:[#allocation71_spill] sm:$0xff] %v6215_v28  ;;  %v2967_v61 = vrot.slane %v6212_v50, 3  ;;  %v2969_v55 = vrot.slane %v6210_v13, 2  ;;  %v3103_v6 = vrot.slane %v6212_v50, 4  ;;  %v3105_v53 = vrot.slane %v6210_v13, 3 }
 0x2fd   : > { %v3239_v63 = vrot.slane %v6212_v50, 5  ;;  %v3241_v32 = vrot.slane %v6210_v13, 4  ;;  %v6236_v24 = vsel %vm2779_vm5, %v3321_v11, %v3320_v41  ;;  %v3441_v41 = vrot.slane %v6088_v59, 7 }
 0x2fe   : > { %v2968_v4 = vsel %vm2776_vm6, %v2967_v61, %v2966_v20  ;;  %v3104_v14 = vsel %vm2776_vm6, %v3103_v6, %v3102_v52  ;;  %v4895_v52 = vpack.i.bf16 %v6236_v24, %v6191_v48  ;;  %v3375_v6 = vrot.slane %v6212_v50, 6 }
 0x2ff   : > { %v2970_v42 = vsel %vm2779_vm5, %v2969_v55, %v2968_v4  ;;  %v3106_v44 = vsel %vm2779_vm5, %v3105_v53, %v3104_v14  ;;  %v3240_v19 = vsel %vm2776_vm6, %v3239_v63, %v3238_v60  ;;  %v6248_v60 = vsel %vm2779_vm5, %v3363_v8, %v3362_v12 }
 0x300   : > { %v4870_v25 = vpack.i.bf16 %v2970_v42, %v6149_v54  ;;  %v4880_v22 = vpack.i.bf16 %v3106_v44, %v6154_v58  ;;  %v6241_v20 = vsel %vm2779_vm5, %v3241_v32, %v3240_v19  ;;  %v3372_v54 = vsel %vm2770_vm3, %v6133_v2, %v5856_v5 }
 0x301   : > { %v4833_v7 = vpop.trf.xlu1  ;;  %v4779_v0 = vpop.trf.xlu0  ;;  %v4890_v15 = vpack.i.bf16 %v6241_v20, %v6183_v23  ;;  %v3373_v58 = vrot.slane %v6131_v35, 7  ;;  %v3377_v53 = vrot.slane %v6210_v13, 5  ;;  %v3738_v5 = vrot.slane %v6174_v3, 3 }
 0x302   : > { %v6254_v44 = vunpack.i.h.bf16 %v4833_v7  ;;  %v6256_v19 = vunpack.i.l.bf16 %v4833_v7  ;;  %4871 = vrot.lane.b32.xlu1 %v4870_v25, %s5196_s26  ;;  %v6259_v11 = vunpack.i.h.bf16 %v4779_v0  ;;  %v6261_v61 = vunpack.i.l.bf16 %v4779_v0 }
 0x303   : > { %v3374_v55 = vsel %vm2773_vm4, %v3373_v58, %v3372_v54  ;;  %v3740_v63 = vrot.slane %v6172_v46, 2  ;;  %v3739_v14 = vsel %vm2770_vm3, %v3738_v5, %v5923_v18  ;;  %v3443_v8 = vrot.slane %v6086_v30, 6 }
 0x304   : > { %7331 = vst [vmem:[#allocation72_spill] sm:$0xff] %v6254_v44  ;;  %v3742_v32 = vrot.slane %v6256_v19, 1  ;;  %v3752_v62 = vrot.slane %v6261_v61, 3  ;;  %v3754_v12 = vrot.slane %v6259_v11, 2  ;;  %v3376_v4 = vsel %vm2776_vm6, %v3375_v6, %v3374_v55 }
 0x305   : > { %v6278_v42 = vsel %vm2779_vm5, %v3377_v53, %v3376_v4  ;;  %v3741_v25 = vsel %vm2773_vm4, %v3740_v63, %v3739_v14  ;;  %v3452_v0 = vrot.slane %v6092_v40, 1  ;;  %v3442_v58 = vsel %vm2776_vm6, %v3441_v41, %v6071_v56 }
 0x306   : > { %4876 = vrot.lane.b32.xlu1 %v4875_v27, %s5197_s11  ;;  %v3753_v7 = vsel %vm2770_vm3, %v3752_v62, %v6027_v9  ;;  %v4900_v27 = vpack.i.bf16 %v6278_v42, %v6248_v60  ;;  %v3743_v54 = vsel %vm2776_vm6, %v3742_v32, %v3741_v25  ;;  %v6295_v9 = vsel %vm2779_vm5, %v3443_v8, %v3442_v58 }
 0x307   : > { %v3755_v18 = vsel %vm2773_vm4, %v3754_v12, %v3753_v7  ;;  %v6292_v53 = vsel %vm2779_vm5, %v6254_v44, %v3743_v54  ;;  %v3453_v5 = vsel %vm2770_vm3, %v3452_v0, %v5777_v38  ;;  %v3455_v63 = vrot.slane %v6170_v43, 7 }
 0x308   : > { %v3454_v4 = vsel %vm2773_vm4, %v6090_v17, %v3453_v5  ;;  %v3457_v14 = vrot.slane %v6168_v39, 6  ;;  %v3057_v41 = vrot.slane %v6174_v3, 6  ;;  %v3059_v38 = vrot.slane %v6172_v46, 5 }
 0x309   : > { %v4842_v55 = vpop.trf.xlu1  ;;  %v4788_v6 = vpop.trf.xlu0  ;;  %v3456_v8 = vsel %vm2776_vm6, %v3455_v63, %v3454_v4  ;;  %v3061_v25 = vrot.slane %v6256_v19, 4  ;;  %v3063_v7 = vrot.slane %v6254_v44, 3  ;;  %v7336_v0 = vpack.i.bf16 %v6202_v51, %v6122_v33 }
 0x30a   : > { %v6300_v32 = vunpack.i.h.bf16 %v4842_v55  ;;  %v6302_v62 = vunpack.i.l.bf16 %v4842_v55  ;;  %4881 = vrot.lane.b32.xlu1 %v4880_v22, %s5197_s11  ;;  %v6305_v56 = vunpack.i.h.bf16 %v4788_v6  ;;  %v6307_v12 = vunpack.i.l.bf16 %v4788_v6 }
 0x30b   : > { %v3071_v22 = vrot.slane %v6261_v61, 6  ;;  %v6323_v54 = vsel %vm2779_vm5, %v3457_v14, %v3456_v8  ;;  %v3058_v58 = vsel %vm2770_vm3, %v3057_v41, %v5918_v29  ;;  %v3073_v55 = vrot.slane %v6259_v11, 5 }
 0x30c   : > { %7332 = vst [vmem:[#allocation73_spill] sm:$0xff] %v6300_v32  ;;  %7333 = vst [vmem:[#allocation74_spill] sm:$0xff] %v6302_v62  ;;  %v7337_v6 = vrot.slane %v6034_v47, 1  ;;  %v4905_v63 = vpack.i.bf16 %v6323_v54, %v6295_v9  ;;  %v3060_v4 = vsel %vm2773_vm4, %v3059_v38, %v3058_v58  ;;  %v3497_v41 = vrot.slane %v6129_v31, 7 }
 0x30d   : > { %7334 = vst [vmem:[#allocation75_spill] sm:$0xff] %v6305_v56  ;;  %7335 = vst [vmem:[#allocation76_spill] sm:$0xff] %v6307_v12  ;;  %v3072_v33 = vsel %vm2770_vm3, %v3071_v22, %v6057_v37  ;;  %v3062_v29 = vsel %vm2776_vm6, %v3061_v25, %v3060_v4  ;;  %v3499_v8 = vrot.slane %v6127_v21, 6  ;;  %v3511_v38 = vrot.slane %v6212_v50, 7 }
 0x30e   : > { %4886 = vrot.lane.b32.xlu1 %v7336_v0, %s5198_s29  ;;  %v3495_v5 = vsel %vm2770_vm3, %v7337_v6, %v5793_v45  ;;  %v3074_v14 = vsel %vm2773_vm4, %v3073_v55, %v3072_v33  ;;  %v3064_v0 = vsel %vm2779_vm5, %v3063_v7, %v3062_v29  ;;  %v3508_v6 = vrot.slane %v6133_v2, 1 }
 0x30f   : > { %v3496_v51 = vsel %vm2773_vm4, %v6032_v36, %v3495_v5  ;;  %v3513_v37 = vrot.slane %v6210_v13, 6  ;;  %v3113_v55 = vrot.slane %v6217_v34, 6  ;;  %v3115_v5 = vrot.slane %v6215_v28, 5 }
 0x310   : > { %v3498_v25 = vsel %vm2776_vm6, %v3497_v41, %v3496_v51  ;;  %v3509_v7 = vsel %vm2770_vm3, %v3508_v6, %v5859_v16  ;;  %v3117_v16 = vrot.slane %v6302_v62, 4  ;;  %v3590_v60 = vrot.slane %v6090_v17, 1 }
 0x311   : > { %v4851_v45 = vpop.trf.xlu1  ;;  %v3510_v23 = vsel %vm2773_vm4, %v6131_v35, %v3509_v7  ;;  %v3114_v20 = vsel %vm2770_vm3, %v3113_v55, %v5968_v10  ;;  %v3199_v9 = vrot.slane %v6254_v44, 4 }
 0x312   : > { %v6347_v22 = vunpack.i.h.bf16 %v4851_v45  ;;  %v6349_v58 = vunpack.i.l.bf16 %v4851_v45  ;;  %4891 = vrot.lane.b32.xlu1 %v4890_v15, %s5198_s29  ;;  %v3500_v45 = vsel %vm2779_vm5, %v3499_v8, %v3498_v25  ;;  %v3119_v15 = vrot.slane %v6300_v32, 3 }
 0x313   : > { %v3512_v8 = vsel %vm2776_vm6, %v3511_v38, %v3510_v23  ;;  %v3116_v6 = vsel %vm2773_vm4, %v3115_v5, %v3114_v20  ;;  %v7339_v38 = vrot.slane %v6036_v49, 7  ;;  %v3579_v23 = vrot.slane %v6086_v30, 7 }
 0x314   : > { %7338 = vst [vmem:[#allocation77_spill] sm:$0xff] %v6347_v22  ;;  %v3756_v4 = vrot.slane %v6349_v58, 1  ;;  %v3075_v33 = vrot.slane %v6349_v58, 4  ;;  %v3077_v29 = vrot.slane %v6347_v22, 3  ;;  %v3514_v7 = vsel %vm2779_vm5, %v3513_v37, %v3512_v8 }
 0x315   : > { %v3118_v55 = vsel %vm2776_vm6, %v3117_v16, %v3116_v6  ;;  %v3126_v5 = vsel %vm2767_vm2, %v7339_v38, %v6077_v26  ;;  %v7340_v37 = vrot.slane %v5986_v1, 1  ;;  %v3193_v8 = vrot.slane %v6174_v3, 7 }
 0x316   : > { %4896 = vrot.lane.b32.xlu1 %v4895_v52, %s5199_s5  ;;  %v3757_v51 = vsel %vm2776_vm6, %v3756_v4, %v3755_v18  ;;  %v3076_v41 = vsel %vm2776_vm6, %v3075_v33, %v3074_v14  ;;  %v4910_v52 = vpack.i.bf16 %v3514_v7, %v3500_v45  ;;  %v3120_v18 = vsel %vm2779_vm5, %v3119_v15, %v3118_v55 }
 0x317   : > { %v3758_v10 = vsel %vm2779_vm5, %v6347_v22, %v3757_v51  ;;  %v3078_v25 = vsel %vm2779_vm5, %v3077_v29, %v3076_v41  ;;  %v3127_v4 = vrot.slane %v6307_v12, 6  ;;  %v3129_v33 = vrot.slane %v6305_v56, 5 }
 0x318   : > { %v4940_v24 = vpack.i.bf16 %v3758_v10, %v6292_v53  ;;  %v4945_v48 = vpack.i.bf16 %v3078_v25, %v3064_v0  ;;  %v3577_v29 = vsel %vm2773_vm4, %v7340_v37, %v6082_v57  ;;  %v3588_v57 = vrot.slane %v6092_v40, 2 }
 0x319   : > { %v4860_v14 = vpop.trf.xlu1  ;;  %v3128_v26 = vsel %vm2770_vm3, %v3127_v4, %v3126_v5  ;;  %v3578_v45 = vsel %vm2776_vm6, %v6088_v59, %v3577_v29  ;;  %v3593_v41 = vrot.slane %v6168_v39, 7  ;;  %v3195_v25 = vrot.slane %v6172_v46, 6  ;;  %v7345_v5 = vld [vmem:[#allocation46_spill] sm:$0xff]  ;;  %v7346_v4 = vld [vmem:[#allocation59_spill] sm:$0xff] }
 0x31a   : > { %v6395_v53 = vunpack.i.h.bf16 %v4860_v14  ;;  %v6397_v0 = vunpack.i.l.bf16 %v4860_v14  ;;  %4901 = vrot.lane.b32.xlu1 %v4900_v27, %s5199_s5  ;;  %4941 = vrot.lane.b32.xlu0 %v4940_v24, %s5200_s4  ;;  %v3130_v20 = vsel %vm2773_vm4, %v3129_v33, %v3128_v26  ;;  %v3580_v42 = vsel %vm2779_vm5, %v3579_v23, %v3578_v45  ;;  %v7343_v27 = vld [vmem:[#allocation35_spill] sm:$0xff]  ;;  %v7344_v14 = vld [vmem:[#allocation45_spill] sm:$0xff]  ;;  %v7348_v45 = vld [vmem:[#allocation58_spill] sm:$0xff] }
 0x31b   : > { %v3589_v51 = vsel %vm2770_vm3, %v3588_v57, %v7343_v27  ;;  %v3197_v7 = vrot.slane %v6256_v19, 5  ;;  %v3194_v38 = vsel %vm2770_vm3, %v3193_v8, %v7344_v14  ;;  %v7347_v33 = vrot.slane %v7346_v4, 1 }
 0x31c   : > { %7341 = vst [vmem:[#allocation78_spill] sm:$0xff] %v6395_v53  ;;  %7342 = vst [vmem:[#allocation79_spill] sm:$0xff] %v6397_v0  ;;  %v3131_v16 = vrot.slane %v6397_v0, 4  ;;  %v3133_v15 = vrot.slane %v6395_v53, 3  ;;  %v3591_v10 = vsel %vm2773_vm4, %v3590_v60, %v3589_v51  ;;  %v3207_v57 = vrot.slane %v6261_v61, 7 }
 0x31d   : > { %v3592_v24 = vsel %vm2776_vm6, %v6170_v43, %v3591_v10  ;;  %v3205_v37 = vsel %vm2764_vm1, %v7347_v33, %v7345_v5  ;;  %v7350_v27 = vrot.slane %v6034_v47, 2  ;;  %v3646_v10 = vrot.slane %v6131_v35, 1 }
 0x31e   : > { %4906 = vrot.lane.b32.xlu1 %v4905_v63, %s5201_s30  ;;  %4946 = vrot.lane.b32.xlu0 %v4945_v48, %s5197_s11  ;;  %v3132_v6 = vsel %vm2776_vm6, %v3131_v16, %v3130_v20  ;;  %v3594_v63 = vsel %vm2779_vm5, %v3593_v41, %v3592_v24  ;;  %v3196_v48 = vsel %vm2773_vm4, %v3195_v25, %v3194_v38  ;;  %v3209_v20 = vrot.slane %v6259_v11, 6 }
 0x31f   : > { %v3134_v55 = vsel %vm2779_vm5, %v3133_v15, %v3132_v6  ;;  %v4915_v29 = vpack.i.bf16 %v3594_v63, %v3580_v42  ;;  %v3198_v26 = vsel %vm2776_vm6, %v3197_v7, %v3196_v48  ;;  %v3206_v23 = vsel %vm2767_vm2, %v7348_v45, %v3205_v37  ;;  %v7349_v42 = vld [vmem:[#allocation36_spill] sm:$0xff] }
 0x320   : > { %v4950_v54 = vpack.i.bf16 %v3134_v55, %v3120_v18  ;;  %v3200_v18 = vsel %vm2779_vm5, %v3199_v9, %v3198_v26  ;;  %v3211_v16 = vrot.slane %v6349_v58, 5  ;;  %v3213_v15 = vrot.slane %v6347_v22, 4  ;;  %v7352_v26 = vld [vmem:[#allocation54_spill] sm:$0xff] }
 0x321   : > { %v3208_v60 = vsel %vm2770_vm3, %v3207_v57, %v3206_v23  ;;  %v3631_v51 = vsel %vm2770_vm3, %v7350_v27, %v7349_v42  ;;  %v3632_v41 = vrot.slane %v6032_v36, 1  ;;  %v3644_v6 = vrot.slane %v6133_v2, 2 }
 0x322   : > { %4911 = vrot.lane.b32.xlu1 %v4910_v52, %s5201_s30  ;;  %4951 = vrot.lane.b32.xlu0 %v4950_v54, %s5197_s11  ;;  %v3635_v52 = vrot.slane %v6127_v21, 7  ;;  %v3210_v8 = vsel %vm2773_vm4, %v3209_v20, %v3208_v60  ;;  %v3649_v25 = vrot.slane %v6210_v13, 7  ;;  %v3249_v24 = vrot.slane %v6217_v34, 7  ;;  %v7351_v54 = vld [vmem:[#allocation37_spill] sm:$0xff] }
 0x323   : > { %v3212_v7 = vsel %vm2776_vm6, %v3211_v16, %v3210_v8  ;;  %v3633_v55 = vsel %vm2773_vm4, %v3632_v41, %v3631_v51  ;;  %v3251_v14 = vrot.slane %v6215_v28, 6  ;;  %v3645_v63 = vsel %vm2770_vm3, %v3644_v6, %v7351_v54  ;;  %v7353_v16 = vld [vmem:[#allocation63_spill] sm:$0xff] }
 0x324   : > { %v3214_v38 = vsel %vm2779_vm5, %v3213_v15, %v3212_v7  ;;  %v3634_v9 = vsel %vm2776_vm6, %v6129_v31, %v3633_v55  ;;  %v3253_v48 = vrot.slane %v6302_v62, 5  ;;  %v3647_v37 = vsel %vm2773_vm4, %v3646_v10, %v3645_v63  ;;  %v7355_v63 = vld [vmem:[#allocation51_spill] sm:$0xff] }
 0x325   : > { %v4955_v5 = vpack.i.bf16 %v3214_v38, %v3200_v18  ;;  %v3636_v33 = vsel %vm2779_vm5, %v3635_v52, %v3634_v9  ;;  %v3250_v23 = vsel %vm2770_vm3, %v3249_v24, %v7352_v26  ;;  %v3255_v20 = vrot.slane %v6300_v32, 4  ;;  %v7354_v52 = vld [vmem:[#allocation52_spill] sm:$0xff] }
 0x326   : > { %4916 = vrot.lane.b32.xlu1 %v4915_v29, %s5202_s8  ;;  %v3648_v29 = vsel %vm2776_vm6, %v6212_v50, %v3647_v37  ;;  %v3252_v57 = vsel %vm2773_vm4, %v3251_v14, %v3250_v23  ;;  %v3260_v15 = vrot.slane %v7353_v16, 1  ;;  %v3263_v42 = vrot.slane %v6307_v12, 7  ;;  %v7356_v23 = vld [vmem:[#allocation53_spill] sm:$0xff] }
 0x327   : > { %4956 = vrot.lane.b32.xlu0 %v4955_v5, %s5198_s29  ;;  %v3650_v18 = vsel %vm2779_vm5, %v3649_v25, %v3648_v29  ;;  %v3254_v60 = vsel %vm2776_vm6, %v3253_v48, %v3252_v57  ;;  %v3265_v27 = vrot.slane %v6305_v56, 6  ;;  %v3267_v6 = vrot.slane %v6397_v0, 5 }
 0x328   : > { %v4920_v51 = vpack.i.bf16 %v3650_v18, %v3636_v33  ;;  %v3256_v41 = vsel %vm2779_vm5, %v3255_v20, %v3254_v60  ;;  %v3261_v8 = vsel %vm2764_vm1, %v3260_v15, %v7354_v52  ;;  %v3269_v7 = vrot.slane %v6395_v53, 4 }
 0x329   : > { %v3262_v10 = vsel %vm2767_vm2, %v6036_v49, %v3261_v8  ;;  %v2921_v25 = vrot.slane %v6174_v3, 5  ;;  %v2923_v55 = vrot.slane %v6172_v46, 4  ;;  %v2925_v14 = vrot.slane %v6256_v19, 3 }
 0x32a   : > { %4921 = vrot.lane.b32.xlu1 %v4920_v51, %s5202_s8  ;;  %v3264_v24 = vsel %vm2770_vm3, %v3263_v42, %v3262_v10  ;;  %v2927_v38 = vrot.slane %v6254_v44, 2  ;;  %v2931_v9 = vrot.slane %v7346_v4, 7  ;;  %v2933_v5 = vrot.slane %v7348_v45, 6 }
 0x32b   : > { %v3266_v54 = vsel %vm2773_vm4, %v3265_v27, %v3264_v24  ;;  %v2922_v48 = vsel %vm2770_vm3, %v2921_v25, %v7355_v63  ;;  %v2935_v33 = vrot.slane %v6261_v61, 5  ;;  %v2937_v57 = vrot.slane %v6259_v11, 4  ;;  %v7358_v24 = vld [vmem:[#allocation42_spill] sm:$0xff] }
 0x32c   : > { %v3268_v37 = vsel %vm2776_vm6, %v3267_v6, %v3266_v54  ;;  %v2924_v26 = vsel %vm2773_vm4, %v2923_v55, %v2922_v48  ;;  %v2932_v29 = vsel %vm2764_vm1, %v2931_v9, %v7356_v23  ;;  %v2939_v60 = vrot.slane %v6349_v58, 3  ;;  %v7357_v6 = vld [vmem:[#allocation55_spill] sm:$0xff] }
 0x32d   : > { %v3270_v20 = vsel %vm2779_vm5, %v3269_v7, %v3268_v37  ;;  %v2926_v15 = vsel %vm2776_vm6, %v2925_v14, %v2924_v26  ;;  %v2934_v18 = vsel %vm2767_vm2, %v2933_v5, %v2932_v29  ;;  %v2941_v52 = vrot.slane %v6347_v22, 2 }
 0x32e   : > { %v4960_v42 = vpack.i.bf16 %v3270_v20, %v3256_v41  ;;  %v2928_v27 = vsel %vm2779_vm5, %v2927_v38, %v2926_v15  ;;  %v2936_v51 = vsel %vm2770_vm3, %v2935_v33, %v2934_v18  ;;  %v3330_v10 = vsel %vm2770_vm3, %v6174_v3, %v7357_v6  ;;  %v7360_v38 = vld [vmem:[#allocation41_spill] sm:$0xff] }
 0x32f   : > { %v2938_v8 = vsel %vm2773_vm4, %v2937_v57, %v2936_v51  ;;  %v3331_v7 = vrot.slane %v6172_v46, 7  ;;  %v3333_v25 = vrot.slane %v6256_v19, 6  ;;  %v3335_v55 = vrot.slane %v6254_v44, 5 }
 0x330   : > { %4961 = vrot.lane.b32.xlu0 %v4960_v42, %s5198_s29  ;;  %v2940_v41 = vsel %vm2776_vm6, %v2939_v60, %v2938_v8  ;;  %v7359_v14 = vrot.slane %v7358_v24, 4  ;;  %v7361_v9 = vrot.slane %v7360_v38, 3  ;;  %v3340_v63 = vrot.slane %v7346_v4, 2  ;;  %v7362_v60 = vld [vmem:[#allocation39_spill] sm:$0xff]  ;;  %v7363_v42 = vld [vmem:[#allocation50_spill] sm:$0xff]  ;;  %v7365_v8 = vld [vmem:[#allocation49_spill] sm:$0xff] }
 0x331   : > { %v2942_v48 = vsel %vm2779_vm5, %v2941_v52, %v2940_v41  ;;  %v3332_v5 = vsel %vm2773_vm4, %v3331_v7, %v3330_v10  ;;  %v3342_v33 = vrot.slane %v7348_v45, 1  ;;  %v3345_v37 = vrot.slane %v6259_v11, 7 }
 0x332   : > { %v3339_v54 = vsel %vm2761_vm0, %v7361_v9, %v7359_v14  ;;  %v4925_v26 = vpack.i.bf16 %v2942_v48, %v2928_v27  ;;  %v3334_v23 = vsel %vm2776_vm6, %v3333_v25, %v3332_v5  ;;  %v3347_v57 = vrot.slane %v6349_v58, 6  ;;  %v7367_v9 = vld [vmem:[#allocation48_spill] sm:$0xff] }
 0x333   : > { %v3341_v29 = vsel %vm2764_vm1, %v3340_v63, %v3339_v54  ;;  %v3336_v20 = vsel %vm2779_vm5, %v3335_v55, %v3334_v23  ;;  %v3349_v18 = vrot.slane %v6347_v22, 5  ;;  %v7364_v51 = vrot.slane %v7363_v42, 7  ;;  %v7369_v63 = vld [vmem:[#allocation47_spill] sm:$0xff] }
 0x334   : > { %v3343_v15 = vsel %vm2767_vm2, %v3342_v33, %v3341_v29  ;;  %4926 = vrot.lane.b32.xlu1 %v4925_v26, %s5196_s26  ;;  %v7366_v6 = vrot.slane %v7365_v8, 6  ;;  %v2977_v7 = vrot.slane %v6217_v34, 5  ;;  %v2979_v25 = vrot.slane %v6215_v28, 4 }
 0x335   : > { %v2974_v52 = vsel %vm2764_vm1, %v7364_v51, %v7362_v60  ;;  %v3344_v27 = vsel %vm2770_vm3, %v6261_v61, %v3343_v15  ;;  %v2981_v55 = vrot.slane %v6302_v62, 3  ;;  %v2983_v14 = vrot.slane %v6300_v32, 2 }
 0x336   : > { %v2976_v10 = vsel %vm2767_vm2, %v7366_v6, %v2974_v52  ;;  %v3346_v41 = vsel %vm2773_vm4, %v3345_v37, %v3344_v27  ;;  %v7368_v54 = vrot.slane %v7367_v9, 1  ;;  %v2987_v26 = vrot.slane %v7353_v16, 7 }
 0x337   : > { %v3348_v5 = vsel %vm2776_vm6, %v3347_v57, %v3346_v41  ;;  %v2978_v33 = vsel %vm2770_vm3, %v2977_v7, %v2976_v10  ;;  %v2989_v23 = vrot.slane %v6036_v49, 6  ;;  %v2991_v15 = vrot.slane %v6307_v12, 5 }
 0x338   : > { %v2986_v48 = vsel %vm2761_vm0, %v7369_v63, %v7368_v54  ;;  %v3350_v29 = vsel %vm2779_vm5, %v3349_v18, %v3348_v5  ;;  %v2980_v37 = vsel %vm2773_vm4, %v2979_v25, %v2978_v33  ;;  %v2993_v60 = vrot.slane %v6305_v56, 4  ;;  %v7370_v18 = vld [vmem:[#allocation40_spill] sm:$0xff] }
 0x339   : > { %v4965_v51 = vpack.i.bf16 %v3350_v29, %v3336_v20  ;;  %v2982_v52 = vsel %vm2776_vm6, %v2981_v55, %v2980_v37  ;;  %v2988_v27 = vsel %vm2764_vm1, %v2987_v26, %v2986_v48  ;;  %v2995_v57 = vrot.slane %v6397_v0, 3 }
 0x33a   : > { %v2984_v6 = vsel %vm2779_vm5, %v2983_v14, %v2982_v52  ;;  %v2990_v10 = vsel %vm2767_vm2, %v2989_v23, %v2988_v27  ;;  %v2997_v7 = vrot.slane %v6395_v53, 2  ;;  %v7371_v25 = vrot.slane %v7363_v42, 2 }
 0x33b   : > { %4966 = vrot.lane.b32.xlu0 %v4965_v51, %s5199_s5  ;;  %v2992_v20 = vsel %vm2770_vm3, %v2991_v15, %v2990_v10  ;;  %v7372_v55 = vrot.slane %v7365_v8, 1  ;;  %v3387_v48 = vrot.slane %v6215_v28, 7  ;;  %v3389_v14 = vrot.slane %v6302_v62, 6 }
 0x33c   : > { %v3383_v41 = vsel %vm2764_vm1, %v7371_v25, %v7370_v18  ;;  %v2994_v5 = vsel %vm2773_vm4, %v2993_v60, %v2992_v20  ;;  %v3391_v26 = vrot.slane %v6300_v32, 5  ;;  %v3393_v23 = vrot.slane %v7367_v9, 4 }
 0x33d   : > { %v3385_v54 = vsel %vm2767_vm2, %v7372_v55, %v3383_v41  ;;  %v2996_v29 = vsel %vm2776_vm6, %v2995_v57, %v2994_v5  ;;  %v3394_v15 = vrot.slane %v7369_v63, 3  ;;  %v3396_v51 = vrot.slane %v7353_v16, 2  ;;  %v7374_v5 = vld [vmem:[#allocation19_spill] sm:$0xff] }
 0x33e   : > { %v3386_v33 = vsel %vm2770_vm3, %v6217_v34, %v3385_v54  ;;  %v2998_v52 = vsel %vm2779_vm5, %v2997_v7, %v2996_v29  ;;  %v3398_v60 = vrot.slane %v6036_v49, 1  ;;  %v3401_v10 = vrot.slane %v6305_v56, 7  ;;  %v7373_v54 = vld [vmem:[#allocation57_spill] sm:$0xff] }
 0x33f   : > { %v3388_v37 = vsel %vm2773_vm4, %v3387_v48, %v3386_v33  ;;  %v4930_v18 = vpack.i.bf16 %v2998_v52, %v2984_v6  ;;  %v3395_v41 = vsel %vm2761_vm0, %v3394_v15, %v3393_v23  ;;  %v3403_v57 = vrot.slane %v6397_v0, 6 }
 0x340   : > { %v3390_v27 = vsel %vm2776_vm6, %v3389_v14, %v3388_v37  ;;  %v3397_v20 = vsel %vm2764_vm1, %v3396_v51, %v3395_v41  ;;  %v3405_v55 = vrot.slane %v6395_v53, 5  ;;  %v3710_v48 = vrot.slane %v7373_v54, 3  ;;  %v7376_v37 = vld [vmem:[#allocation38_spill] sm:$0xff]  ;;  %v7377_v51 = vld [vmem:[#allocation28_spill] sm:$0xff] }
 0x341   : > { %v3392_v25 = vsel %vm2779_vm5, %v3391_v26, %v3390_v27  ;;  %v3712_v7 = vrot.slane %v5986_v1, 2  ;;  %4931 = vrot.lane.b32.xlu1 %v4930_v18, %s5196_s26  ;;  %v3399_v14 = vsel %vm2767_vm2, %v3398_v60, %v3397_v20  ;;  %v3714_v6 = vrot.slane %v6088_v59, 1  ;;  %v7375_v26 = vld [vmem:[#allocation21_spill] sm:$0xff]  ;;  %v7378_v27 = vld [vmem:[#allocation27_spill] sm:$0xff]  ;;  %s5093_s26 = scalar_lea.vmem %s5092_s24, 1024 }
 0x342   : > { %v3717_v33 = vrot.slane %v7374_v5, 7  ;;  %v3718_v23 = vrot.slane %v7375_v26, 6  ;;  %v3400_v29 = vsel %vm2770_vm3, %v6307_v12, %v3399_v14  ;;  %v3711_v15 = vsel %vm2770_vm3, %v3710_v48, %v7376_v37  ;;  %p5095_p13 = scmp.lt.s32.totalorder %s5093_s26, %s5087_s25 }
 0x343   : > { %v3720_v52 = vrot.slane %v7377_v51, 5  ;;  %v3722_v41 = vrot.slane %v7378_v27, 4  ;;  %v3402_v18 = vsel %vm2773_vm4, %v3401_v10, %v3400_v29  ;;  %v3713_v60 = vsel %vm2773_vm4, %v3712_v7, %v3711_v15  ;;  %v7379_v29 = vld [vmem:[#allocation32_spill] sm:$0xff]  ;;  %v7380_v15 = vld [vmem:[#allocation31_spill] sm:$0xff] }
 0x344   : > { %v3719_v20 = vsel %vm2761_vm0, %v3718_v23, %v3717_v33  ;;  %v3724_v59 = vrot.slane %v6092_v40, 3  ;;  %v3404_v1 = vsel %vm2776_vm6, %v3403_v57, %v3402_v18  ;;  %v3715_v54 = vsel %vm2776_vm6, %v3714_v6, %v3713_v60  ;;  %v7381_v18 = vld [vmem:[#allocation44_spill] sm:$0xff]  ;;  %p5096_p3 = por %p5095_p13, %p5094_p12 }
 0x345   : > { %v3721_v14 = vsel %vm2764_vm1, %v3720_v52, %v3719_v20  ;;  %v3726_v48 = vrot.slane %v6090_v17, 2  ;;  %v3406_v37 = vsel %vm2779_vm5, %v3405_v55, %v3404_v1  ;;  %v3716_v27 = vsel %vm2779_vm5, %v6086_v30, %v3715_v54  ;;  %v7382_v20 = vld [vmem:[#allocation43_spill] sm:$0xff]  ;;  %v7386_v17 = vld [vmem:[#allocation26_spill] sm:$0xff] }
 0x346   : > { %v3723_v10 = vsel %vm2767_vm2, %v3722_v41, %v3721_v14  ;;  %v3728_v7 = vrot.slane %v6170_v43, 1  ;;  %v4970_v33 = vpack.i.bf16 %v3406_v37, %v3392_v25  ;;  %v3459_v57 = vrot.slane %v7379_v29, 5  ;;  %p5097_p7 = pnand %p5096_p3, %p5090_p10 }
 0x347   : > { %v3725_v23 = vsel %vm2770_vm3, %v3724_v59, %v3723_v10  ;;  %v3460_v6 = vrot.slane %v7380_v15, 4  ;;  %v3462_v60 = vrot.slane %v7381_v18, 3  ;;  %v3464_v1 = vrot.slane %v7382_v20, 2 }
 0x348   : > { %v3727_v52 = vsel %vm2773_vm4, %v3726_v48, %v3725_v23  ;;  %v3466_v55 = vrot.slane %v6174_v3, 1  ;;  %4971 = vrot.lane.b32.xlu0 %v4970_v33, %s5199_s5  ;;  %v3469_v59 = vrot.slane %v6256_v19, 7  ;;  %v3471_v41 = vrot.slane %v6254_v44, 6 }
 0x349   : > { %v3729_v54 = vsel %vm2776_vm6, %v3728_v7, %v3727_v52  ;;  %v3461_v25 = vsel %vm2761_vm0, %v3460_v6, %v3459_v57  ;;  %v3473_v37 = vrot.slane %v7358_v24, 5  ;;  %v3474_v10 = vrot.slane %v7360_v38, 4 }
 0x34a   : > { %v3730_v14 = vsel %vm2779_vm5, %v6168_v39, %v3729_v54  ;;  %v3463_v48 = vsel %vm2764_vm1, %v3462_v60, %v3461_v25  ;;  %v3476_v7 = vrot.slane %v7346_v4, 3  ;;  %v3478_v57 = vrot.slane %v7348_v45, 2  ;;  %v7383_v25 = vld [vmem:[#allocation18_spill] sm:$0xff] }
 0x34b   : > { %v4935_v23 = vpack.i.bf16 %v3730_v14, %v3716_v27  ;;  %v3465_v33 = vsel %vm2767_vm2, %v3464_v1, %v3463_v48  ;;  %v3475_v52 = vsel %vm2761_vm0, %v3474_v10, %v3473_v37  ;;  %v3480_v30 = vrot.slane %v6261_v61, 1  ;;  %v7384_v37 = vld [vmem:[#allocation17_spill] sm:$0xff] }
 0x34c   : > { %v3467_v6 = vsel %vm2770_vm3, %v3466_v55, %v3465_v33  ;;  %v3483_v54 = vrot.slane %v6349_v58, 7  ;;  %v3477_v27 = vsel %vm2764_vm1, %v3476_v7, %v3475_v52  ;;  %v3485_v1 = vrot.slane %v6347_v22, 6  ;;  %v7385_v33 = vld [vmem:[#allocation23_spill] sm:$0xff] }
 0x34d   : > { %4936 = vrot.lane.b32.xlu1 %v4935_v23, %s5200_s4  ;;  %v3468_v60 = vsel %vm2773_vm4, %v6172_v46, %v3467_v6  ;;  %v3759_v14 = vrot.slane %v7383_v25, 7  ;;  %v3479_v55 = vsel %vm2767_vm2, %v3478_v57, %v3477_v27  ;;  %v3760_v10 = vrot.slane %v7384_v37, 6  ;;  %v7390_v37 = vld [vmem:[#allocation30_spill] sm:$0xff] }
 0x34e   : > { %v3470_v48 = vsel %vm2776_vm6, %v3469_v59, %v3468_v60  ;;  %v3762_v39 = vrot.slane %v7385_v33, 5  ;;  %v3481_v23 = vsel %vm2770_vm3, %v3480_v30, %v3479_v55  ;;  %v3764_v6 = vrot.slane %v7386_v17, 4  ;;  %v7388_v30 = vld [vmem:[#allocation24_spill] sm:$0xff]  ;;  %v7389_v33 = vld [vmem:[#allocation29_spill] sm:$0xff] }
 0x34f   : > { %v3472_v43 = vsel %vm2779_vm5, %v3471_v41, %v3470_v48  ;;  %v3766_v7 = vrot.slane %v6034_v47, 3  ;;  %v3482_v52 = vsel %vm2773_vm4, %v6259_v11, %v3481_v23  ;;  %v3761_v25 = vsel %vm2761_vm0, %v3760_v10, %v3759_v14  ;;  %v7387_v41 = vld [vmem:[#allocation25_spill] sm:$0xff] }
 0x350   : > { %v3768_v59 = vrot.slane %v6032_v36, 2  ;;  %v3770_v57 = vrot.slane %v6129_v31, 1  ;;  %v3484_v60 = vsel %vm2776_vm6, %v3483_v54, %v3482_v52  ;;  %v3763_v27 = vsel %vm2764_vm1, %v3762_v39, %v3761_v25 }
 0x351   : > { %v3773_v48 = vrot.slane %v7387_v41, 7  ;;  %v3774_v55 = vrot.slane %v7388_v30, 6  ;;  %v3486_v17 = vsel %vm2779_vm5, %v3485_v1, %v3484_v60  ;;  %v3765_v47 = vsel %vm2767_vm2, %v3764_v6, %v3763_v27 }
 0x352   : > { %v3776_v23 = vrot.slane %v7389_v33, 5  ;;  %v3778_v14 = vrot.slane %v7390_v37, 4  ;;  %v4975_v10 = vpack.i.bf16 %v3486_v17, %v3472_v43  ;;  %v3767_v36 = vsel %vm2770_vm3, %v3766_v7, %v3765_v47  ;;  %v7391_v43 = vld [vmem:[#allocation34_spill] sm:$0xff]  ;;  %v7392_v7 = vld [vmem:[#allocation33_spill] sm:$0xff] }
 0x353   : > { %v3775_v31 = vsel %vm2761_vm0, %v3774_v55, %v3773_v48  ;;  %v3780_v54 = vrot.slane %v6133_v2, 3  ;;  %v3769_v39 = vsel %vm2773_vm4, %v3768_v59, %v3767_v36  ;;  %v3782_v52 = vrot.slane %v6131_v35, 2 }
 0x354   : > { %v3777_v25 = vsel %vm2764_vm1, %v3776_v23, %v3775_v31  ;;  %v3784_v1 = vrot.slane %v6212_v50, 1  ;;  %4976 = vrot.lane.b32.xlu0 %v4975_v10, %s5201_s30  ;;  %v3771_v6 = vsel %vm2776_vm6, %v3770_v57, %v3769_v39  ;;  %v3515_v47 = vrot.slane %v7391_v43, 5 }
 0x355   : > { %v3779_v17 = vsel %vm2767_vm2, %v3778_v14, %v3777_v25  ;;  %v3516_v60 = vrot.slane %v7392_v7, 4  ;;  %v3772_v27 = vsel %vm2779_vm5, %v6127_v21, %v3771_v6  ;;  %v3518_v31 = vrot.slane %v7363_v42, 3 }
 0x356   : > { %v3781_v36 = vsel %vm2770_vm3, %v3780_v54, %v3779_v17  ;;  %v3520_v59 = vrot.slane %v7365_v8, 2  ;;  %v3522_v57 = vrot.slane %v6217_v34, 1  ;;  %v3525_v23 = vrot.slane %v6302_v62, 7 }
 0x357   : > { %v3783_v48 = vsel %vm2773_vm4, %v3782_v52, %v3781_v36  ;;  %v3517_v55 = vsel %vm2761_vm0, %v3516_v60, %v3515_v47  ;;  %v3527_v39 = vrot.slane %v6300_v32, 6  ;;  %v3529_v54 = vrot.slane %v7367_v9, 5 }
 0x358   : > { %v3785_v14 = vsel %vm2776_vm6, %v3784_v1, %v3783_v48  ;;  %v3519_v10 = vsel %vm2764_vm1, %v3518_v31, %v3517_v55  ;;  %v3530_v52 = vrot.slane %v7369_v63, 4  ;;  %v3532_v17 = vrot.slane %v7353_v16, 3 }
 0x359   : > { %v3786_v25 = vsel %vm2779_vm5, %v6210_v13, %v3785_v14  ;;  %v3521_v6 = vsel %vm2767_vm2, %v3520_v59, %v3519_v10  ;;  %v3534_v1 = vrot.slane %v6036_v49, 2  ;;  %v3536_v36 = vrot.slane %v6307_v12, 1 }
 0x35a   : > { %v4995_v47 = vpack.i.bf16 %v3786_v25, %v3772_v27  ;;  %v3523_v60 = vsel %vm2770_vm3, %v3522_v57, %v3521_v6  ;;  %v3531_v48 = vsel %vm2761_vm0, %v3530_v52, %v3529_v54  ;;  %v3539_v55 = vrot.slane %v6397_v0, 7 }
 0x35b   : > { %v3524_v31 = vsel %vm2773_vm4, %v6215_v28, %v3523_v60  ;;  %v3541_v59 = vrot.slane %v6395_v53, 6  ;;  %v3533_v27 = vsel %vm2764_vm1, %v3532_v17, %v3531_v48  ;;  %v3595_v57 = vrot.slane %v7379_v29, 6 }
 0x35c   : > { %4996 = vrot.lane.b32.xlu1 %v4995_v47, %s5200_s4  ;;  %v3526_v14 = vsel %vm2776_vm6, %v3525_v23, %v3524_v31  ;;  %v3596_v10 = vrot.slane %v7380_v15, 5  ;;  %v3535_v6 = vsel %vm2767_vm2, %v3534_v1, %v3533_v27  ;;  %v3598_v54 = vrot.slane %v7381_v18, 4 }
 0x35d   : > { %v3528_v25 = vsel %vm2779_vm5, %v3527_v39, %v3526_v14  ;;  %v3600_v52 = vrot.slane %v7382_v20, 3  ;;  %v3537_v60 = vsel %vm2770_vm3, %v3536_v36, %v3535_v6  ;;  %v3602_v23 = vrot.slane %v6174_v3, 2 }
 0x35e   : > { %v3597_v47 = vsel %vm2761_vm0, %v3596_v10, %v3595_v57  ;;  %v3604_v17 = vrot.slane %v6172_v46, 1  ;;  %v3538_v31 = vsel %vm2773_vm4, %v6305_v56, %v3537_v60  ;;  %v3607_v39 = vrot.slane %v6254_v44, 7 }
 0x35f   : > { %v3599_v48 = vsel %vm2764_vm1, %v3598_v54, %v3597_v47  ;;  %v3609_v1 = vrot.slane %v7358_v24, 6  ;;  %v3540_v14 = vsel %vm2776_vm6, %v3539_v55, %v3538_v31  ;;  %v3610_v36 = vrot.slane %v7360_v38, 5 }
 0x360   : > { %v3601_v27 = vsel %vm2767_vm2, %v3600_v52, %v3599_v48  ;;  %v3612_v57 = vrot.slane %v7346_v4, 4  ;;  %v3542_v10 = vsel %vm2779_vm5, %v3541_v59, %v3540_v14  ;;  %v3614_v60 = vrot.slane %v7348_v45, 3 }
 0x361   : > { %v3603_v6 = vsel %vm2770_vm3, %v3602_v23, %v3601_v27  ;;  %v3616_v54 = vrot.slane %v6261_v61, 2  ;;  %v4980_v47 = vpack.i.bf16 %v3542_v10, %v3528_v25  ;;  %v3611_v46 = vsel %vm2761_vm0, %v3610_v36, %v3609_v1 }
 0x362   : > { %v3605_v44 = vsel %vm2773_vm4, %v3604_v17, %v3603_v6  ;;  %v3618_v55 = vrot.slane %v6259_v11, 1  ;;  %v3613_v31 = vsel %vm2764_vm1, %v3612_v57, %v3611_v46  ;;  %v3621_v59 = vrot.slane %v6347_v22, 7 }
 0x363   : > { %v3606_v52 = vsel %vm2776_vm6, %v6256_v19, %v3605_v44  ;;  %v3651_v23 = vrot.slane %v7391_v43, 6  ;;  %4981 = vrot.lane.b32.xlu0 %v4980_v47, %s5201_s30  ;;  %v3615_v25 = vsel %vm2767_vm2, %v3614_v60, %v3613_v31  ;;  %v3652_v17 = vrot.slane %v7392_v7, 5 }
 0x364   : > { %v3608_v48 = vsel %vm2779_vm5, %v3607_v39, %v3606_v52  ;;  %v3654_v1 = vrot.slane %v7363_v42, 4  ;;  %v3617_v14 = vsel %vm2770_vm3, %v3616_v54, %v3615_v25  ;;  %v3656_v44 = vrot.slane %v7365_v8, 3 }
 0x365   : > { %v3658_v46 = vrot.slane %v6217_v34, 2  ;;  %v3660_v27 = vrot.slane %v6215_v28, 1  ;;  %v3619_v36 = vsel %vm2773_vm4, %v3618_v55, %v3617_v14  ;;  %v3653_v57 = vsel %vm2761_vm0, %v3652_v17, %v3651_v23 }
 0x366   : > { %v3663_v39 = vrot.slane %v6300_v32, 7  ;;  %v3665_v10 = vrot.slane %v7367_v9, 6  ;;  %v3620_v6 = vsel %vm2776_vm6, %v6349_v58, %v3619_v36  ;;  %v3655_v60 = vsel %vm2764_vm1, %v3654_v1, %v3653_v57 }
 0x367   : > { %v3666_v54 = vrot.slane %v7369_v63, 5  ;;  %v3668_v47 = vrot.slane %v7353_v16, 4  ;;  %v3622_v52 = vsel %vm2779_vm5, %v3621_v59, %v3620_v6  ;;  %v3657_v31 = vsel %vm2767_vm2, %v3656_v44, %v3655_v60 }
 0x368   : > { %v3670_v55 = vrot.slane %v6036_v49, 3  ;;  %v3672_v23 = vrot.slane %v6307_v12, 2  ;;  %v4985_v25 = vpack.i.bf16 %v3622_v52, %v3608_v48  ;;  %v3659_v17 = vsel %vm2770_vm3, %v3658_v46, %v3657_v31 }
 0x369   : > { %v3667_v14 = vsel %vm2761_vm0, %v3666_v54, %v3665_v10  ;;  %v3674_v36 = vrot.slane %v6305_v56, 1  ;;  %v3661_v1 = vsel %vm2773_vm4, %v3660_v27, %v3659_v17  ;;  %v3677_v22 = vrot.slane %v6395_v53, 7 }
 0x36a   : > { %v3669_v57 = vsel %vm2764_vm1, %v3668_v47, %v3667_v14  ;;  %v3787_v59 = vrot.slane %v7391_v43, 7  ;;  %4986 = vrot.lane.b32.xlu0 %v4985_v25, %s5202_s8  ;;  %v3662_v44 = vsel %vm2776_vm6, %v6302_v62, %v3661_v1  ;;  %v3788_v46 = vrot.slane %v7392_v7, 6 }
 0x36b   : > { %v3671_v48 = vsel %vm2767_vm2, %v3670_v55, %v3669_v57  ;;  %v3790_v10 = vrot.slane %v7363_v42, 5  ;;  %v3664_v6 = vsel %vm2779_vm5, %v3663_v39, %v3662_v44  ;;  %v3792_v60 = vrot.slane %v7365_v8, 4 }
 0x36c   : > { %v3673_v27 = vsel %vm2770_vm3, %v3672_v23, %v3671_v48  ;;  %v3794_v54 = vrot.slane %v6217_v34, 3  ;;  %v3789_v52 = vsel %vm2761_vm0, %v3788_v46, %v3787_v59  ;;  %v3796_v31 = vrot.slane %v6215_v28, 2  ;;  %v7406_v28 = vld [vmem:[#allocation64_spill] sm:$0xff] }
 0x36d   : > { %v3675_v47 = vsel %vm2773_vm4, %v3674_v36, %v3673_v27  ;;  %v3798_v55 = vrot.slane %v6302_v62, 1  ;;  %v3791_v17 = vsel %vm2764_vm1, %v3790_v10, %v3789_v52  ;;  %v3801_v39 = vrot.slane %v7367_v9, 7  ;;  %v7402_v62 = vld [vmem:[#allocation66_spill] sm:$0xff] }
 0x36e   : > { %v3676_v25 = vsel %vm2776_vm6, %v6397_v0, %v3675_v47  ;;  %v3802_v23 = vrot.slane %v7369_v63, 6  ;;  %v3793_v1 = vsel %vm2767_vm2, %v3792_v60, %v3791_v17  ;;  %v3804_v36 = vrot.slane %v7353_v16, 5 }
 0x36f   : > { %v3678_v14 = vsel %vm2779_vm5, %v3677_v22, %v3676_v25  ;;  %v3806_v57 = vrot.slane %v6036_v49, 4  ;;  %v3795_v44 = vsel %vm2770_vm3, %v3794_v54, %v3793_v1  ;;  %v3808_v46 = vrot.slane %v6307_v12, 3 }
 0x370   : > { %v4990_v59 = vpack.i.bf16 %v3678_v14, %v3664_v6  ;;  %v3803_v48 = vsel %vm2761_vm0, %v3802_v23, %v3801_v39  ;;  %v3810_v27 = vrot.slane %v6305_v56, 2  ;;  %v3812_v47 = vrot.slane %v6397_v0, 1 }
 0x371   : > { %v3805_v10 = vsel %vm2764_vm1, %v3804_v36, %v3803_v48  ;;  %v3797_v22 = vsel %vm2773_vm4, %v3796_v31, %v3795_v44  ;;  %v2837_v0 = vrot.slane %v7388_v30, 7  ;;  %v2778_v12 = vrot.slane %v7406_v28, 1 }
 0x372   : > { %4991 = vrot.lane.b32.xlu0 %v4990_v59, %s5202_s8  ;;  %v3807_v60 = vsel %vm2767_vm2, %v3806_v57, %v3805_v10  ;;  %v3799_v6 = vsel %vm2776_vm6, %v3798_v55, %v3797_v22  ;;  %v7393_v10 = vld [vmem:[#allocation16_spill] sm:$0xff]  ;;  %v2783_v22 = vrot.slane %v7377_v51, 6 }
 0x373   : > { %v3809_v54 = vsel %vm2770_vm3, %v3808_v46, %v3807_v60  ;;  %v3800_v39 = vsel %vm2779_vm5, %v6300_v32, %v3799_v6  ;;  %v2781_v46 = vrot.slane %v7375_v26, 7  ;;  %v7394_v60 = vld [vmem:[#allocation20_spill] sm:$0xff]  ;;  %v7398_v26 = vld [vmem:[#allocation22_spill] sm:$0xff] }
 0x374   : > { %v3811_v52 = vsel %vm2773_vm4, %v3810_v27, %v3809_v54  ;;  %v6816_v25 = vpop.permute.xlu1 %4871  ;;  %v2760_v27 = vrot.slane %v7393_v10, 7  ;;  %v2763_v6 = vrot.slane %v7394_v60, 6  ;;  %v2766_v32 = vrot.slane %v7398_v26, 5 }
 0x375   : > { %v3813_v17 = vsel %vm2776_vm6, %v3812_v47, %v3811_v52  ;;  %v4867_v47 = vpop.permute.xlu0 %4866  ;;  %v2782_v54 = vsel %vm2761_vm0, %v2781_v46, %v7374_v5  ;;  %v7395_v52 = vld [vmem:[#allocation15_spill] sm:$0xff]  ;;  %v2787_v60 = vrot.slane %v6092_v40, 4  ;;  %v7399_v5 = vld [vmem:[#allocation57_spill] sm:$0xff] }
 0x376   : > { %v3814_v23 = vsel %vm2779_vm5, %v6395_v53, %v3813_v17  ;;  %v2762_v17 = vsel %vm2761_vm0, %v2760_v27, %v7395_v52  ;;  %v2784_v10 = vsel %vm2764_vm1, %v2783_v22, %v2782_v54  ;;  %v2769_v46 = vrot.slane %v7399_v5, 4  ;;  %v7403_v54 = vld [vmem:[#allocation69_spill] sm:$0xff] }
 0x377   : > { %v5000_v14 = vpack.i.bf16 %v3814_v23, %v3800_v39  ;;  %v2765_v51 = vsel %vm2764_vm1, %v2763_v6, %v2762_v17  ;;  %v2789_v22 = vrot.slane %v7402_v62, 3  ;;  %v2839_v6 = vrot.slane %v7389_v33, 6  ;;  %v7404_v17 = vld [vmem:[#allocation17_spill] sm:$0xff] }
 0x378   : > { %v6823_v31 = vpop.permute.xlu1 %4876  ;;  %v2768_v52 = vsel %vm2767_vm2, %v2766_v32, %v2765_v51  ;;  %v2791_v30 = vrot.slane %v7403_v54, 2  ;;  %v2823_v5 = vrot.slane %v7404_v17, 7  ;;  %v7405_v32 = vld [vmem:[#allocation65_spill] sm:$0xff]  ;;  %v2841_v62 = vrot.slane %v7390_v37, 5 }
 0x379   : > { %5001 = vrot.lane.b32.xlu0 %v5000_v14, %s5200_s4  ;;  %v7397_v14 = vld [vmem:[#allocation27_spill] sm:$0xff]  ;;  %v2771_v51 = vsel %vm2770_vm3, %v2769_v46, %v2768_v52  ;;  %v2843_v17 = vrot.slane %v6133_v2, 4  ;;  %v7409_v52 = vld [vmem:[#allocation18_spill] sm:$0xff]  ;;  %v4868_v37 = vunpack.i.l.bf16 %v4867_v47  ;;  %v7412_v2 = vld [vmem:[#allocation60_spill] sm:$0xff] }
 0x37a   : > { %v2785_v53 = vrot.slane %v7397_v14, 5  ;;  %v7401_v14 = vld [vmem:[#allocation56_spill] sm:$0xff]  ;;  %v2824_v28 = vsel %vm2761_vm0, %v2823_v5, %v7409_v52  ;;  %v2831_v49 = vrot.slane %v7412_v2, 3  ;;  %v4879_v2 = vunpack.i.h.bf16 %v6823_v31 }
 0x37b   : > { %v2772_v26 = vrot.slane %v7401_v14, 3  ;;  %v7407_v14 = vld [vmem:[#allocation68_spill] sm:$0xff] }
 0x37c   : > { %v6826_v55 = vpop.permute.xlu1 %4881  ;;  %v2786_v27 = vsel %vm2767_vm2, %v2785_v53, %v2784_v10  ;;  %v2838_v53 = vsel %vm2761_vm0, %v2837_v0, %v7387_v41  ;;  %v2775_v10 = vrot.slane %v7405_v32, 2  ;;  %v4869_v41 = vunpack.i.h.bf16 %v4867_v47 }
 0x37d   : > { %v2788_v40 = vsel %vm2770_vm3, %v2787_v60, %v2786_v27  ;;  %v7408_v60 = vld [vmem:[#allocation23_spill] sm:$0xff]  ;;  %v2840_v54 = vsel %vm2764_vm1, %v2839_v6, %v2838_v53  ;;  %v2774_v46 = vsel %vm2773_vm4, %v2772_v26, %v2771_v51  ;;  %v7411_v6 = vld [vmem:[#allocation61_spill] sm:$0xff]  ;;  %v2845_v51 = vrot.slane %v6131_v35, 3 }
 0x37e   : > { %v2790_v33 = vsel %vm2773_vm4, %v2789_v22, %v2788_v40  ;;  %v2825_v27 = vrot.slane %v7408_v60, 6  ;;  %v2777_v22 = vsel %vm2776_vm6, %v2775_v10, %v2774_v46  ;;  %v7410_v40 = vld [vmem:[#allocation26_spill] sm:$0xff]  ;;  %v2829_v53 = vrot.slane %v7411_v6, 4 }
 0x37f   : > { %v2792_v0 = vsel %vm2776_vm6, %v2791_v30, %v2790_v33  ;;  %v2827_v60 = vrot.slane %v7410_v40, 5  ;;  %v7413_v30 = vld [vmem:[#allocation67_spill] sm:$0xff]  ;;  %v2842_v26 = vsel %vm2767_vm2, %v2841_v62, %v2840_v54  ;;  %v2847_v47 = vrot.slane %v6212_v50, 2 }
 0x380   : > { %v6828_v1 = vpop.permute.xlu1 %4886  ;;  %v2833_v33 = vrot.slane %v7413_v30, 2  ;;  %v2844_v52 = vsel %vm2770_vm3, %v2843_v17, %v2842_v26  ;;  %v2826_v10 = vsel %vm2764_vm1, %v2825_v27, %v2824_v28  ;;  %v2780_v40 = vsel %vm2779_vm5, %v2778_v12, %v2777_v22 }
 0x381   : > { %v2835_v6 = vrot.slane %v6127_v21, 1  ;;  %v3840_v62 = vsel %vm3839_vm7, %v2780_v40, %v4868_v37  ;;  %v2849_v35 = vrot.slane %v6210_v13, 1  ;;  %v2846_v54 = vsel %vm2773_vm4, %v2845_v51, %v2844_v52 }
 0x382   : > { %v4873_v50 = vunpack.i.l.bf16 %v6816_v25  ;;  %v2828_v27 = vsel %vm2767_vm2, %v2827_v60, %v2826_v10  ;;  %v4878_v17 = vunpack.i.l.bf16 %v6823_v31  ;;  %v4884_v28 = vunpack.i.h.bf16 %v6826_v55 }
 0x383   : > { %v4889_v13 = vunpack.i.h.bf16 %v6828_v1  ;;  %v4888_v37 = vunpack.i.l.bf16 %v6828_v1  ;;  %v2830_v31 = vsel %vm2770_vm3, %v2829_v53, %v2828_v27 }
 0x384   : > { %v6830_v36 = vpop.permute.xlu1 %4891  ;;  %v3849_v51 = vsel %vm3848_vm8, %v3840_v62, %v4878_v17  ;;  %v2832_v27 = vsel %vm2773_vm4, %v2831_v49, %v2830_v31 }
 0x385   : > { %v3858_v52 = vsel %vm3857_vm9, %v3849_v51, %v4888_v37  ;;  %v4894_v49 = vunpack.i.h.bf16 %v6830_v36 }
 0x388   : > { %v6832_v57 = vpop.permute.xlu1 %4896 }
 0x389   : > { %v4898_v60 = vunpack.i.l.bf16 %v6832_v57 }
 0x38b   : > { %v3867_v53 = vsel %vm3866_vm10, %v3858_v52, %v4898_v60  ;;  %v2834_v60 = vsel %vm2776_vm6, %v2833_v33, %v2832_v27  ;;  %v2813_v33 = vrot.slane %v7348_v45, 5  ;;  %v4893_v45 = vunpack.i.l.bf16 %v6830_v36 }
 0x38c   : > { %v6834_v59 = vpop.permute.xlu1 %4901  ;;  %v6848_v39 = vpop.permute.xlu0 %4941 }
 0x38d   : > { %7396 = vst [vmem:[#allocation35_spill] sm:$0xff] %v6848_v39 }
 0x390   : > { %v6836_v44 = vpop.permute.xlu1 %4906  ;;  %v6861_v39 = vpop.permute.xlu0 %4946 }
 0x391   : > { %7400 = vst [vmem:[#allocation45_spill] sm:$0xff] %v6861_v39  ;;  %v2793_v39 = vrot.slane %v7407_v14, 1  ;;  %v4909_v30 = vunpack.i.h.bf16 %v6836_v44  ;;  %v4908_v26 = vunpack.i.l.bf16 %v6836_v44  ;;  %v2809_v44 = vrot.slane %v7360_v38, 7 }
 0x392   : > { %v2811_v38 = vrot.slane %v7346_v4, 6 }
 0x393   : > { %v2794_v5 = vsel %vm2779_vm5, %v2793_v39, %v2792_v0  ;;  %v4874_v39 = vunpack.i.h.bf16 %v6816_v25  ;;  %v4899_v25 = vunpack.i.h.bf16 %v6832_v57  ;;  %v2795_v57 = vrot.slane %v7380_v15, 7 }
 0x394   : > { %v6838_v48 = vpop.permute.xlu1 %4911  ;;  %v6886_v32 = vpop.permute.xlu0 %4951  ;;  %v3841_v46 = vsel %vm3839_vm7, %v2794_v5, %v4869_v41  ;;  %v2848_v41 = vsel %vm2776_vm6, %v2847_v47, %v2846_v54  ;;  %v2810_v31 = vsel %vm2761_vm0, %v2809_v44, %v7358_v24  ;;  %v2836_v24 = vsel %vm2779_vm5, %v2835_v6, %v2834_v60 }
 0x395   : > { %v3850_v22 = vsel %vm3848_vm8, %v3841_v46, %v4879_v2  ;;  %v3876_v2 = vsel %vm3875_vm11, %v3867_v53, %v4908_v26  ;;  %v2796_v37 = vsel %vm2761_vm0, %v2795_v57, %v7379_v29  ;;  %v4883_v26 = vunpack.i.l.bf16 %v6826_v55 }
 0x396   : > { %v3859_v47 = vsel %vm3857_vm9, %v3850_v22, %v4889_v13  ;;  %v2797_v13 = vrot.slane %v7381_v18, 6  ;;  %v2850_v18 = vsel %vm2779_vm5, %v2849_v35, %v2848_v41  ;;  %v2799_v29 = vrot.slane %v7382_v20, 5 }
 0x397   : > { %v3868_v10 = vsel %vm3866_vm10, %v3859_v47, %v4899_v25  ;;  %v3845_v4 = vsel %vm3839_vm7, %v2850_v18, %v4874_v39  ;;  %v2812_v55 = vsel %vm2764_vm1, %v2811_v38, %v2810_v31  ;;  %v2815_v35 = vrot.slane %v6261_v61, 4  ;;  %v7414_v47 = vld [vmem:[#allocation70_spill] sm:$0xff] }
 0x398   : > { %v6850_v23 = vpop.permute.xlu1 %4916  ;;  %v2798_v51 = vsel %vm2764_vm1, %v2797_v13, %v2796_v37  ;;  %v3854_v20 = vsel %vm3848_vm8, %v3845_v4, %v4884_v28  ;;  %v4903_v41 = vunpack.i.l.bf16 %v6834_v59  ;;  %v2803_v21 = vrot.slane %v7414_v47, 3  ;;  %v7416_v13 = vld [vmem:[#allocation77_spill] sm:$0xff]  ;;  %v7419_v47 = vld [vmem:[#allocation76_spill] sm:$0xff] }
 0x399   : > { %v6912_v12 = vpop.permute.xlu0 %4956  ;;  %v4919_v5 = vunpack.i.h.bf16 %v6850_v23  ;;  %v4918_v1 = vunpack.i.l.bf16 %v6850_v23  ;;  %v3877_v23 = vsel %vm3875_vm11, %v3868_v10, %v4909_v30  ;;  %v3863_v39 = vsel %vm3857_vm9, %v3854_v20, %v4894_v49 }
 0x39a   : > { %v2800_v52 = vsel %vm2767_vm2, %v2799_v29, %v2798_v51  ;;  %v2805_v6 = vrot.slane %v6256_v19, 2  ;;  %v4904_v28 = vunpack.i.h.bf16 %v6834_v59  ;;  %v2814_v61 = vsel %vm2767_vm2, %v2813_v33, %v2812_v55 }
 0x39b   : > { %v3885_v15 = vsel %vm3884_vm12, %v3876_v2, %v4918_v1  ;;  %v3886_v17 = vsel %vm3884_vm12, %v3877_v23, %v4919_v5  ;;  %v2801_v5 = vrot.slane %v6174_v3, 4  ;;  %v3844_v3 = vsel %vm3839_vm7, %v2836_v24, %v4873_v50  ;;  %v7415_v2 = vld [vmem:[#allocation72_spill] sm:$0xff] }
 0x39c   : > { %v6863_v56 = vpop.permute.xlu1 %4921  ;;  %v2817_v50 = vrot.slane %v6259_v11, 3  ;;  %v3853_v36 = vsel %vm3848_vm8, %v3844_v3, %v4883_v26  ;;  %v2816_v53 = vsel %vm2770_vm3, %v2815_v35, %v2814_v61  ;;  %v2819_v10 = vrot.slane %v6349_v58, 2 }
 0x39d   : > { %v2802_v57 = vsel %vm2770_vm3, %v2801_v5, %v2800_v52  ;;  %v2851_v44 = vrot.slane %v7392_v7, 7  ;;  %v4914_v19 = vunpack.i.h.bf16 %v6838_v48  ;;  %v4913_v59 = vunpack.i.l.bf16 %v6838_v48 }
 0x39e   : > { %v2807_v23 = vrot.slane %v7415_v2, 1  ;;  %v4923_v27 = vunpack.i.l.bf16 %v6863_v56  ;;  %v2804_v58 = vsel %vm2773_vm4, %v2803_v21, %v2802_v57  ;;  %v3872_v7 = vsel %vm3866_vm10, %v3863_v39, %v4904_v28  ;;  %v7420_v28 = vld [vmem:[#allocation71_spill] sm:$0xff] }
 0x39f   : > { %v2821_v48 = vrot.slane %v7416_v13, 1  ;;  %v2852_v38 = vsel %vm2761_vm0, %v2851_v44, %v7391_v43  ;;  %v3881_v49 = vsel %vm3875_vm11, %v3872_v7, %v4914_v19  ;;  %v2855_v5 = vrot.slane %v7365_v8, 5  ;;  %v7418_v8 = vld [vmem:[#allocation45_spill] sm:$0xff] }
 0x3a0   : > { %v2871_v21 = vrot.slane %v7419_v47, 4  ;;  %v2859_v57 = vrot.slane %v7420_v28, 3  ;;  %v4959_v44 = vunpack.i.h.bf16 %v6912_v12 }
 0x3a2   : > { %v6934_v46 = vpop.permute.xlu0 %4961 }
 0x3a6   : > { %v6888_v14 = vpop.permute.xlu1 %4926 }
 0x3a7   : > { %v4929_v29 = vunpack.i.h.bf16 %v6888_v14  ;;  %v4928_v43 = vunpack.i.l.bf16 %v6888_v14  ;;  %v2857_v14 = vrot.slane %v6217_v34, 4 }
 0x3ad   : > { %v6959_v1 = vpop.permute.xlu0 %4966 }
 0x3b3   : > { %v6914_v0 = vpop.permute.xlu1 %4931 }
 0x3bf   : > { %v4937_v40 = vpop.permute.xlu1 %4936 }
 0x3c0   : > { %v4939_v62 = vunpack.i.h.bf16 %v4937_v40  ;;  %v4938_v54 = vunpack.i.l.bf16 %v4937_v40  ;;  %v3862_v40 = vsel %vm3857_vm9, %v3853_v36, %v4893_v45  ;;  %v7417_v45 = vld [vmem:[#allocation62_spill] sm:$0xff] }
 0x3c1   : > { %v3871_v11 = vsel %vm3866_vm10, %v3862_v40, %v4903_v41  ;;  %v2869_v39 = vrot.slane %v7417_v45, 5  ;;  %v4949_v41 = vunpack.i.h.bf16 %v7418_v8  ;;  %v7421_v36 = vld [vmem:[#allocation74_spill] sm:$0xff]  ;;  %v4958_v40 = vunpack.i.l.bf16 %v6912_v12 }
 0x3c2   : > { %v3894_v22 = vsel %vm3893_vm13, %v3885_v15, %v4938_v54  ;;  %v3895_v25 = vsel %vm3893_vm13, %v3886_v17, %v4939_v62  ;;  %v6991_v62 = vpop.permute.xlu0 %4971  ;;  %v4924_v54 = vunpack.i.h.bf16 %v6863_v56  ;;  %v2806_v15 = vsel %vm2776_vm6, %v2805_v6, %v2804_v58 }
 0x3c3   : > { %v4112_v30 = vpack.c.bf16 %v3895_v25, %v3894_v22  ;;  %v2818_v17 = vsel %vm2773_vm4, %v2817_v50, %v2816_v53  ;;  %v2853_v22 = vrot.slane %v7363_v42, 6  ;;  %v2865_v25 = vrot.slane %v7369_v63, 7 }
 0x3c4   : > { %v2820_v37 = vsel %vm2776_vm6, %v2819_v10, %v2818_v17  ;;  %v3880_v60 = vsel %vm3875_vm11, %v3871_v11, %v4913_v59  ;;  %v3890_v26 = vsel %vm3884_vm12, %v3881_v49, %v4924_v54  ;;  %v2867_v42 = vrot.slane %v7353_v16, 6  ;;  %v7422_v59 = vld [vmem:[#allocation75_spill] sm:$0xff]  ;;  %v7425_v49 = vld [vmem:[#allocation78_spill] sm:$0xff] }
 0x3c5   : > { %4113 = vst [vmem:[%s6963_s7] sm:$0xff] %v4112_v30   ;;  %v3889_v18 = vsel %vm3884_vm12, %v3880_v60, %v4923_v27  ;;  %v2866_v33 = vsel %vm2761_vm0, %v2865_v25, %v7367_v9  ;;  %v2808_v20 = vsel %vm2779_vm5, %v2807_v23, %v2806_v15  ;;  %v2822_v55 = vsel %vm2779_vm5, %v2821_v48, %v2820_v37  ;;  %v7423_v11 = vld [vmem:[#allocation79_spill] sm:$0xff]  ;;  %v7424_v37 = vld [vmem:[#allocation73_spill] sm:$0xff] }
 0x3c6   : > { %v4977_v4 = vpop.permute.xlu0 %4976  ;;  %v2854_v35 = vsel %vm2764_vm1, %v2853_v22, %v2852_v38  ;;  %v3843_v16 = vsel %vm3839_vm7, %v2822_v55, %v4929_v29  ;;  %v3842_v3 = vsel %vm3839_vm7, %v2808_v20, %v4928_v43  ;;  %v4948_v9 = vunpack.i.l.bf16 %v7418_v8  ;;  %v7426_v43 = vld [vmem:[#allocation35_spill] sm:$0xff] }
 0x3c7   : > { %v2868_v52 = vsel %vm2764_vm1, %v2867_v42, %v2866_v33  ;;  %v2856_v6 = vsel %vm2767_vm2, %v2855_v5, %v2854_v35  ;;  %v3852_v61 = vsel %vm3848_vm8, %v3843_v16, %v4949_v41  ;;  %v2861_v53 = vrot.slane %v7421_v36, 2 }
 0x3c8   : > { %v3851_v34 = vsel %vm3848_vm8, %v3842_v3, %v4948_v9  ;;  %v2858_v50 = vsel %vm2770_vm3, %v2857_v14, %v2856_v6  ;;  %v2870_v19 = vsel %vm2767_vm2, %v2869_v39, %v2868_v52  ;;  %v2873_v2 = vrot.slane %v7422_v59, 3 }
 0x3c9   : > { %v2872_v23 = vsel %vm2770_vm3, %v2871_v21, %v2870_v19  ;;  %v2875_v54 = vrot.slane %v7423_v11, 2  ;;  %v3860_v27 = vsel %vm3857_vm9, %v3851_v34, %v4958_v40  ;;  %v3861_v58 = vsel %vm3857_vm9, %v3852_v61, %v4959_v44 }
 0x3ca   : > { %v2860_v7 = vsel %vm2773_vm4, %v2859_v57, %v2858_v50  ;;  %v4969_v15 = vunpack.i.h.bf16 %v6959_v1  ;;  %v4968_v17 = vunpack.i.l.bf16 %v6959_v1  ;;  %v4979_v13 = vunpack.i.h.bf16 %v4977_v4 }
 0x3cb   : > { %v4978_v12 = vunpack.i.l.bf16 %v4977_v4  ;;  %v2862_v48 = vsel %vm2776_vm6, %v2861_v53, %v2860_v7  ;;  %v2863_v38 = vrot.slane %v7424_v37, 1  ;;  %v2874_v22 = vsel %vm2773_vm4, %v2873_v2, %v2872_v23 }
 0x3cc   : > { %v3869_v25 = vsel %vm3866_vm10, %v3860_v27, %v4968_v17  ;;  %v2876_v60 = vsel %vm2776_vm6, %v2875_v54, %v2874_v22  ;;  %v4933_v1 = vunpack.i.l.bf16 %v6914_v0  ;;  %v4944_v42 = vunpack.i.h.bf16 %v7426_v43 }
 0x3cd   : > { %v4943_v4 = vunpack.i.l.bf16 %v7426_v43  ;;  %v4954_v3 = vunpack.i.h.bf16 %v6886_v32  ;;  %v4953_v45 = vunpack.i.l.bf16 %v6886_v32  ;;  %v4964_v9 = vunpack.i.h.bf16 %v6934_v46 }
 0x3ce   : > { %v4997_v56 = vpop.permute.xlu1 %4996  ;;  %v4963_v52 = vunpack.i.l.bf16 %v6934_v46  ;;  %v4974_v28 = vunpack.i.h.bf16 %v6991_v62  ;;  %v4973_v57 = vunpack.i.l.bf16 %v6991_v62 }
 0x3cf   : > { %v4999_v31 = vunpack.i.h.bf16 %v4997_v56  ;;  %v4998_v30 = vunpack.i.l.bf16 %v4997_v56  ;;  %v3870_v56 = vsel %vm3866_vm10, %v3861_v58, %v4969_v15 }
 0x3d1   : > { %v3898_v63 = vsel %vm3893_vm13, %v3889_v18, %v4998_v30  ;;  %v3899_v51 = vsel %vm3893_vm13, %v3890_v26, %v4999_v31  ;;  %v2877_v31 = vrot.slane %v7425_v49, 1  ;;  %v4934_v18 = vunpack.i.h.bf16 %v6914_v0 }
 0x3d2   : > { %v4122_v24 = vpack.c.bf16 %v3899_v51, %v3898_v63  ;;  %v3878_v63 = vsel %vm3875_vm11, %v3869_v25, %v4978_v12  ;;  %v3879_v51 = vsel %vm3875_vm11, %v3870_v56, %v4979_v13 }
 0x3d3   : > { %v2878_v0 = vsel %vm2779_vm5, %v2877_v31, %v2876_v60 }
 0x3d4   : > { %4130 = vst [vmem:[%s6963_s7 + $0x10] sm:$0xff] %v4122_v24   ;;  %v2864_v24 = vsel %vm2779_vm5, %v2863_v38, %v2862_v48  ;;  %v3847_v35 = vsel %vm3839_vm7, %v2878_v0, %v4934_v18 }
 0x3d5   : > { %v7036_v10 = vpop.permute.xlu0 %4981  ;;  %v3846_v14 = vsel %vm3839_vm7, %v2864_v24, %v4933_v1  ;;  %v3856_v8 = vsel %vm3848_vm8, %v3847_v35, %v4954_v3 }
 0x3d6   : > { %v3855_v39 = vsel %vm3848_vm8, %v3846_v14, %v4953_v45  ;;  %v3865_v21 = vsel %vm3857_vm9, %v3856_v8, %v4964_v9  ;;  %v4984_v6 = vunpack.i.h.bf16 %v7036_v10  ;;  %v4983_v32 = vunpack.i.l.bf16 %v7036_v10 }
 0x3d7   : > { %v3864_v47 = vsel %vm3857_vm9, %v3855_v39, %v4963_v52  ;;  %v3874_v46 = vsel %vm3866_vm10, %v3865_v21, %v4974_v28 }
 0x3d8   : > { %v3873_v50 = vsel %vm3866_vm10, %v3864_v47, %v4973_v57  ;;  %v3883_v10 = vsel %vm3875_vm11, %v3874_v46, %v4984_v6 }
 0x3d9   : > { %v3882_v53 = vsel %vm3875_vm11, %v3873_v50, %v4983_v32 }
 0x3dc   : > { %v4987_v30 = vpop.permute.xlu0 %4986 }
 0x3dd   : > { %v4989_v26 = vunpack.i.h.bf16 %v4987_v30  ;;  %v4988_v29 = vunpack.i.l.bf16 %v4987_v30 }
 0x3df   : > { %v3887_v5 = vsel %vm3884_vm12, %v3878_v63, %v4988_v29  ;;  %v3888_v33 = vsel %vm3884_vm12, %v3879_v51, %v4989_v26 }
 0x3e0   : > { %v3896_v20 = vsel %vm3893_vm13, %v3887_v5, %v4943_v4  ;;  %v3897_v55 = vsel %vm3893_vm13, %v3888_v33, %v4944_v42 }
 0x3e1   : > { %v4117_v16 = vpack.c.bf16 %v3897_v55, %v3896_v20 }
 0x3e3   : > { %4129 = vst [vmem:[%s6963_s7 + $0x8] sm:$0xff] %v4117_v16  }
 0x3e4   : > { %v4992_v41 = vpop.permute.xlu0 %4991 }
 0x3e5   : > { %v4994_v34 = vunpack.i.h.bf16 %v4992_v41  ;;  %v4993_v61 = vunpack.i.l.bf16 %v4992_v41 }
 0x3e7   : > { %v3891_v62 = vsel %vm3884_vm12, %v3882_v53, %v4993_v61  ;;  %v3892_v19 = vsel %vm3884_vm12, %v3883_v10, %v4994_v34 }
 0x3eb   : > { %v5002_v36 = vpop.permute.xlu0 %5001 }
 0x3ec   : > { %v5004_v44 = vunpack.i.h.bf16 %v5002_v36  ;;  %v5003_v40 = vunpack.i.l.bf16 %v5002_v36 }
 0x3ee   : > { %v3900_v59 = vsel %vm3893_vm13, %v3891_v62, %v5003_v40  ;;  %v3901_v2 = vsel %vm3893_vm13, %v3892_v19, %v5004_v44 }
 0x3ef   : > { %v4127_v23 = vpack.c.bf16 %v3901_v2, %v3900_v59 }
 0x3f1   : > { %4131 = vst [vmem:[%s6963_s7 + $0x18] sm:$0xff] %v4127_v23  }
 0x3f2   : > { %5100 = shalt.err (!%p5097_p7)
}
 0x3f3   : > { %s5101_s11 = scalar_lea.hbm %s7099_s28, 512  ;;  %s5105_s30 = scalar_lea.hbm %s7159_s3, 2048 }
 0x3f4   : > { %p5102_p1 = scmp.ne.s32.totalorder %s7099_s28, %s5101_s11  ;;  %p5106_p5 = scmp.lt.u32.totalorder %s7099_s28, %s7159_s3 }
 0x3f5   : > { %p5107_p9 = scmp.lt.u32.totalorder %s5105_s30, %s5101_s11  ;;  %p5109_p6 = scmp.lt.u32.totalorder %s5101_s11, %s7099_s28 }
 0x3f6   : > { %p5103_p2 = pnand %p5102_p1, %p5333_p11 }
 0x3f7   : > { %p5108_p0 = por %p5107_p9, %p5106_p5 }
 0x3f8   : > { %p5104_p4 = pneg %p5103_p2 }
 0x3f9   : > { %p5110_p8 = por %p5109_p6, %p5108_p0 }
 0x3fb   : > { %p5111_p10 = pnand %p5110_p8, %p5104_p4 }
 0x3fd   : > { %5114 = shalt.err (!%p5111_p10)
}
 0x3fe   : > { %s5204_s9 = smov 4  }
 0x3ff   : > { %4154 = dma.vmem_to_hbm [thread:$0]  (%p5333_p11), %s7094_s15, 512, %s7099_s28, %s3943_s17, %s5199_s5, %s5199_s5, %s5204_s9  }
 0x400 PF: > { %s7427_s10 = sld [smem:[#allocation12_spill]]  ;;  %p4171_p12 = scmp.ge.s32.totalorder %s5189_s19, 2 }
 0x401   : > { %s3973_s21 = sand.u32 1, %s5161_s12  }
 0x402   : > { %s3974_s16 = scalar_lea.sflag [#allocation4], %s3973_s21 }
 0x406   : > { %p7428_p13 = scmp.ne.s32.totalorder %s7427_s10, 0 }
 0x408   : > { %p4165_p3 = pnand %p4171_p12, %p7428_p13 }
 0x40a   : > { %5156 = dma.done.wait (!%p4165_p3), %s3974_s16, 512  }
 0x40b   : > { %5158 = vsyncadd (!%p4165_p3), %s3974_s16, 4294966784  ;;  %s20_s19 = sadd.s32 1, %s5189_s19   ;;  %s7429_s15 = sld [smem:[#allocation11_spill]] }
 0x40c   : > { %p17_p7 = scmp.ge.s32.totalorder %s20_s19, 6   ;;  %s7430_s17 = sld [smem:[#allocation13_spill]] }
 0x40d   : > { %s7431_s6 = sld [smem:[#allocation14_spill]]  ;;  %s7432_s12 = smov %s5165_s13 }
 0x40e   : > { %s7433_s13 = smov %s5169_s14  ;;  %s7434_s14 = smov %s5350_s20 }
 0x40f   : > { %s7435_s16 = smov %s5185_s18  ;;  %19 = sbr.rel (!%p17_p7) target bundleno = 10 (0xa), region = 81 }
 0x413   : > { %s7436_s18 = smov %s7431_s6 }
 0x416   :  { %3979 = vsyncpa [#allocation3], 1 }
 0x417   :  { %3981 = vsyncpa [#allocation3 + $0x1], 1 }
 0x418   :  { %3982 = vsyncpa [#allocation6], 1 }
 0x419   :  { %3983 = vsyncpa [#allocation4], 1 }
 0x41a   :  { %3985 = vsyncpa [#allocation4 + $0x1], 1 }

// kernel: tpu_custom_call.1
= control target key start
LH: loop header
LB: loop body
LE: loop exit
PB: predicated region body
PF: predicated region fallthrough
CT: control target
= control target key end

     0   :  { %8 = vsyncpa [#allocation3], 0  ;;  %s1015_s0 = inlined_call_operand.hbm [shape: f32[128,128], index: 0, kind: input, shape index: {}]   ;;  %s1016_s1 = inlined_call_operand.hbm [shape: bf16[128,256], index: 1, kind: input, shape index: {}]   ;;  %s1017_s2 = inlined_call_operand.vmem [shape: f32[1,256], index: 2, kind: input, shape index: {}]   ;;  %s1018_s3 = inlined_call_operand.hbm [shape: bf16[128,256], index: 3, kind: output, shape index: {}]  }
   0x1   :  { %10 = vsyncpa [#allocation3 + $0x1], 0 }
   0x2   :  { %11 = vsyncpa [#allocation6], 0 }
   0x3   :  { %12 = vsyncpa [#allocation4], 0 }
   0x4   :  { %14 = vsyncpa [#allocation4 + $0x1], 0  ;;  %s804_s12 = smov 0   ;;  %s806_s13 = smov 0  }
   0x5   :  { %s808_s14 = smov 0   ;;  %s810_s15 = smov 0  }
   0x6 LB: > { %s825_s16 = sadd.s32 4294967295, %s774_s15   ;;  %s500_s17 = sadd.s32 4294967294, %s774_s15   ;;  %s774_s15 = sphi %s810_s15, %s1037_s15   ;;  %s770_s14 = sphi %s808_s14, %s1036_s14   ;;  %s766_s13 = sphi %s806_s13, %s1035_s13   ;;  %s762_s12 = sphi %s804_s12, %s1034_s12  }
   0x7   : > { %p40_p0 = scmp.ne.s32.totalorder %s766_s13, %s762_s12  ;;  %p1019_p1 = scmp.eq.s32.totalorder %s825_s16, 0 }
   0x8   : > { %p112_p3 = scmp.eq.s32.totalorder %s500_s17, 3  ;;  %p501_p5 = scmp.ge.s32.totalorder %s774_s15, 1 }
   0x9   : > { %p834_p4 = por %p1019_p1, %p40_p0  ;;  %p119_p7 = scmp.lt.s32.totalorder %s774_s15, 5 }
   0xa   : > { %p839_p6 = por %p112_p3, %p40_p0  ;;  %s776_s21 = smov [#allocation5]  }
   0xb   : > { %s1022_s18 = scalar_select %p834_p4, 1, 0 }
   0xc   : > { %s1023_s19 = scalar_select %p839_p6, 1, 0 }
   0xd   : > { %p844_p8 = pnand %p501_p5, %p119_p7  ;;  %s131_s22 = sshll.u32 %s776_s21, 4  ;;  %s132_s22 = int_to_ptr.vmem [resolvable:$true] %s131_s22 }
   0xe   : > { %s857_s24 = sadd.s32 1, %s774_s15   ;;  %s27_s25 = sadd.s32 1, %s770_s14 }
   0xf   : > { %s1024_s20 = scalar_select %p844_p8, 1, 0 }
  0x10   : > { %p568_p9 = pneg %p844_p8  ;;  %s24_s26 = ssub.s32 %s774_s15, %s857_s24 }
  0x11   : > { %s646_s29 = scalar_lea.hbm %s1016_s1, 2048 }
  0x12   : > { %p852_p10 = pnand %p568_p9, %p1019_p1  ;;  %p647_p11 = scmp.ne.s32.totalorder %s1016_s1, %s646_s29 }
  0x13   : > { %p653_p3 = scmp.lt.u32.totalorder %s646_s29, %s1016_s1 }
  0x14   : > { %p648_p12 = pneg %p852_p10 }
  0x16   : > { %p649_p13 = pnand %p648_p12, %p647_p11 }
  0x18   : > { %p650_p0 = pneg %p649_p13 }
  0x1a   : > { %p655_p5 = pnand %p653_p3, %p650_p0 }
  0x1c   : > { %658 = shalt.err (!%p655_p5)
}
  0x1d   : > { %s659_s7 = scalar_lea.vmem %s132_s22, 2048  ;;  %p667_p2 = scmp.lt.s32.totalorder %s132_s22, %s132_s22 }
  0x1e   : > { %p660_p7 = scmp.ne.s32.totalorder %s132_s22, %s659_s7  ;;  %p668_p6 = scmp.lt.s32.totalorder %s659_s7, %s659_s7 }
  0x20   : > { %p662_p9 = pnand %p660_p7, %p648_p12  ;;  %p669_p4 = por %p668_p6, %p667_p2 }
  0x22   : > { %p663_p1 = pneg %p662_p9 }
  0x24   : > { %p670_p8 = pnand %p669_p4, %p663_p1 }
  0x26   : > { %673 = shalt.err (!%p670_p8)
}
  0x27   : > { %s777_s8 = smov 128   ;;  %s778_s9 = smov 8  }
  0x28   : > { %571 = dma.hbm_to_vmem [thread:$0]  (!%p852_p10), %s1016_s1, 2048, %s132_s22, [#allocation6], %s777_s8, %s777_s8, %s778_s9  }
  0x29   : > { %p25_p1 = scmp.eq.s32.totalorder %s24_s26, 0  ;;  %p34_p2 = scmp.ne.s32.totalorder %s770_s14, %s766_s13 }
  0x2a   : > { %p35_p4 = scmp.eq.s32.totalorder %s774_s15, 0  ;;  %p581_p6 = scmp.lt.s32.totalorder %s774_s15, 4 }
  0x2b   : > { %s886_s17 = scalar_select %p25_p1, %s770_s14, %s27_s25  }
  0x2c   : > { %p36_p8 = por %p35_p4, %p34_p2  ;;  %p1026_p11 = scmp.eq.s32.totalorder %s825_s16, 3 }
  0x2d   : > { %s148_s23 = sand.u32 1, %s770_s14   ;;  %s537_s27 = sshll.u32 %s774_s15, 9 }
  0x2e   : > { %p890_p12 = por %p1026_p11, %p34_p2  ;;  %s504_s28 = sshll.u32 %s148_s23, 5 }
  0x2f   : > { %s899_s4 = scalar_lea.hbm %s1015_s0, %s537_s27  ;;  %s152_s22 = scalar_lea.vmem [#allocation2], %s504_s28 }
  0x30   : > { %s159_s25 = sshll.u32 %s152_s22, 4  ;;  %p901_p10 = pnand %p581_p6, %p36_p8  ;;  %s905_s25 = int_to_ptr.vmem [resolvable:$true] %s159_s25 }
  0x31   : > { %s907_s5 = scalar_lea.sflag [#allocation3], %s148_s23  ;;  %s674_s6 = scalar_lea.hbm %s899_s4, 512 }
  0x32   : > { %p675_p13 = scmp.ne.s32.totalorder %s899_s4, %s674_s6  ;;  %p676_p0 = pneg %p901_p10 }
  0x33   : > { %s679_s11 = scalar_lea.hbm %s1015_s0, 2048  ;;  %p680_p7 = scmp.lt.u32.totalorder %s899_s4, %s1015_s0 }
  0x34   : > { %p677_p3 = pnand %p676_p0, %p675_p13  ;;  %p681_p9 = scmp.lt.u32.totalorder %s679_s11, %s674_s6 }
  0x35   : > { %p683_p2 = scmp.lt.u32.totalorder %s674_s6, %s899_s4 }
  0x36   : > { %p678_p5 = pneg %p677_p3  ;;  %p682_p1 = por %p681_p9, %p680_p7 }
  0x38   : > { %p684_p4 = por %p683_p2, %p682_p1 }
  0x3a   : > { %p685_p6 = pnand %p684_p4, %p678_p5 }
  0x3c   : > { %688 = shalt.err (!%p685_p6)
}
  0x3d   : > { %s689_s23 = scalar_lea.vmem %s905_s25, 512  ;;  %s779_s29 = smov [#allocation2]  }
  0x3e   : > { %p690_p8 = scmp.ne.s32.totalorder %s905_s25, %s689_s23  ;;  %s694_s30 = sshll.u32 %s779_s29, 4  ;;  %s695_s30 = int_to_ptr.vmem [resolvable:$false] %s694_s30 }
  0x3f   : > { %s696_s22 = scalar_lea.vmem %s695_s30, 1024  ;;  %p697_p3 = scmp.lt.s32.totalorder %s905_s25, %s695_s30 }
  0x40   : > { %p692_p11 = pnand %p690_p8, %p676_p0  ;;  %p698_p7 = scmp.lt.s32.totalorder %s696_s22, %s689_s23 }
  0x42   : > { %p693_p13 = pneg %p692_p11  ;;  %p699_p9 = por %p698_p7, %p697_p3 }
  0x44   : > { %p700_p1 = pnand %p699_p9, %p693_p13 }
  0x46   : > { %703 = shalt.err (!%p700_p1)
}
  0x47   : > { %575 = dma.hbm_to_vmem [thread:$0]  (!%p901_p10), %s899_s4, 512, %s905_s25, %s907_s5, %s777_s8, %s777_s8, %s778_s9  }
  0x48   : > { %p1029_p0 = scmp.ne.s32.totalorder %s1024_s20, 0 }
  0x49   : > { %s941_s6 = sand.u32 (!%p1029_p0), 1, %s766_s13   ;;  %p1030_p5 = scmp.ne.s32.totalorder (!%p1029_p0), %s1022_s18, 0 }
  0x4a   : > { %171 = sbr.rel (%p1029_p0) target bundleno = 353 (0x161), region = 32  ;;  %s508_s7 = sshll.u32 (!%p1029_p0), %s941_s6, 5 }
  0x4b   : > { %s174_s10 = scalar_lea.sflag (!%p1029_p0), [#allocation3], %s941_s6  ;;  %s947_s26 = scalar_lea.vmem (!%p1029_p0), [#allocation2], %s508_s7 }
  0x51   : > { %749 = dma.done.wait (%p1030_p5), %s174_s10, 512  }
  0x52   : > { %751 = vsyncadd (%p1030_p5), %s174_s10, 4294966784  ;;  %p1031_p10 = scmp.eq.s32.totalorder %s825_s16, 0 }
  0x54   : > { %753 = dma.done.wait (%p1031_p10), [#allocation6], 2048   ;;  %p1032_p2 = pmov %p1031_p10 }
  0x55   : > { %v780_v0 = vmov 0   ;;  %v622_v1 = vld [vmem:[#allocation5 + $0x4] ss:$8 sps:$4 sm:$0xff]   ;;  %v624_v2 = vld [vmem:[#allocation5] ss:$8 sps:$4 sm:$0xff]   ;;  %v209_v19 = vld [vmem:[%s947_s26 + $0x10] sm:$0xff]  ;;  %v231_v23 = vlaneseq }
  0x56   : > { %755 = vsyncadd (%p1032_p2), [#allocation6], 4294965248  ;;  %353 = vmatprep.mubr.bf16.mxu0 %v780_v0  ;;  %363 = vmatprep.mubr.bf16.mxu1 %v780_v0  ;;  %v625_v3 = vld [vmem:[#allocation5 + $0x14] ss:$8 sps:$4 sm:$0xff]   ;;  %v627_v4 = vld [vmem:[#allocation5 + $0x10] ss:$8 sps:$4 sm:$0xff]  }
  0x57   : > { %321 = vmatprep.subr.bf16.mxu0 %v622_v1  ;;  %544 = vmatprep.subr.bf16.mxu1 %v622_v1  ;;  %v628_v5 = vld [vmem:[#allocation5 + $0x24] ss:$8 sps:$4 sm:$0xff]   ;;  %v630_v6 = vld [vmem:[#allocation5 + $0x20] ss:$8 sps:$4 sm:$0xff]   ;;  %v631_v7 = vld [vmem:[#allocation5 + $0x34] ss:$8 sps:$4 sm:$0xff]  }
  0x58   : > { %322 = vmatpush1.bf16.msra.mxu0 %v624_v2  ;;  %552 = vmatpush1.bf16.msra.mxu1 %v624_v2  ;;  %v633_v8 = vld [vmem:[#allocation5 + $0x30] ss:$8 sps:$4 sm:$0xff]   ;;  %v634_v9 = vld [vmem:[#allocation5 + $0x44] ss:$8 sps:$4 sm:$0xff]   ;;  %v636_v10 = vld [vmem:[#allocation5 + $0x40] ss:$8 sps:$4 sm:$0xff]  }
  0x59   : > { %323 = vmatprep.subr.bf16.mxu0 %v625_v3  ;;  %545 = vmatprep.subr.bf16.mxu1 %v625_v3  ;;  %v637_v11 = vld [vmem:[#allocation5 + $0x54] ss:$8 sps:$4 sm:$0xff]   ;;  %v639_v12 = vld [vmem:[#allocation5 + $0x50] ss:$8 sps:$4 sm:$0xff]   ;;  %v640_v13 = vld [vmem:[#allocation5 + $0x64] ss:$8 sps:$4 sm:$0xff]  }
  0x5a   : > { %v642_v14 = vld [vmem:[#allocation5 + $0x60] ss:$8 sps:$4 sm:$0xff]   ;;  %v643_v15 = vld [vmem:[#allocation5 + $0x74] ss:$8 sps:$4 sm:$0xff]   ;;  %v645_v16 = vld [vmem:[#allocation5 + $0x70] ss:$8 sps:$4 sm:$0xff]  }
  0x5b   : > { %v207_v17 = vld [vmem:[%s947_s26] sm:$0xff]  ;;  %v208_v18 = vld [vmem:[%s947_s26 + $0x8] sm:$0xff]  ;;  %v210_v20 = vld [vmem:[%s947_s26 + $0x18] sm:$0xff]  ;;  %v232_v24 = vshrl.u32 %v231_v23, 7  ;;  %s203_s8 = scalar_lea.vmem [#allocation7], %s508_s7  ;;  %s543_s4 = sshll.u32 %s825_s16, 9 }
  0x5c   : > { %324 = vmatpush1.bf16.msra.mxu0 %v627_v4  ;;  %553 = vmatpush1.bf16.msra.mxu1 %v627_v4  ;;  %v211_v21 = vpack.c.bf16 %v208_v18, %v207_v17  ;;  %v212_v22 = vpack.c.bf16 %v210_v20, %v209_v19  ;;  %v229_v26 = vld [vmem:[%s1017_s2] sm:$0x3]  ;;  %s417_s9 = sshll.u32 %s203_s8, 4  ;;  %s972_s11 = scalar_lea.hbm %s1018_s3, %s543_s4  ;;  %s967_s9 = int_to_ptr.vmem [resolvable:$true] %s417_s9 }
  0x5d   : > { %325 = vmatprep.subr.bf16.mxu0 %v628_v5  ;;  %546 = vmatprep.subr.bf16.mxu1 %v628_v5  ;;  %v233_v25 = vsub.s32 0, %v232_v24  ;;  %v237_v27 = vsub.s32 1, %v232_v24  ;;  %s403_s16 = scalar_lea.sflag [#allocation4], %s941_s6  ;;  %s704_s27 = scalar_lea.vmem %s967_s9, 512 }
  0x5e   : > { %p705_p4 = scmp.ne.s32.totalorder %s967_s9, %s704_s27  ;;  %s781_s28 = smov [#allocation7]  }
  0x5f   : > { %v234_v28 = vrot.slane %v229_v26, %v233_v25  ;;  %v238_v29 = vrot.slane %v229_v26, %v237_v27  ;;  %s708_s23 = sshll.u32 %s781_s28, 4  ;;  %s709_s23 = int_to_ptr.vmem [resolvable:$false] %s708_s23 }
  0x60   : > { %326 = vmatpush1.bf16.msra.mxu0 %v630_v6  ;;  %554 = vmatpush1.bf16.msra.mxu1 %v630_v6  ;;  %p706_p6 = pnand %p705_p4, %p890_p12  ;;  %s710_s29 = scalar_lea.vmem %s709_s23, 1024 }
  0x61   : > { %327 = vmatprep.subr.bf16.mxu0 %v631_v7  ;;  %547 = vmatprep.subr.bf16.mxu1 %v631_v7  ;;  %p711_p11 = scmp.lt.s32.totalorder %s967_s9, %s709_s23  ;;  %p712_p13 = scmp.lt.s32.totalorder %s710_s29, %s704_s27 }
  0x62   : > { %p707_p8 = pneg %p706_p6 }
  0x63   : > { %p713_p3 = por %p712_p13, %p711_p11 }
  0x64   : > { %328 = vmatpush1.bf16.msra.mxu0 %v633_v8  ;;  %555 = vmatpush1.bf16.msra.mxu1 %v633_v8 }
  0x65   : > { %329 = vmatprep.subr.bf16.mxu0 %v634_v9  ;;  %548 = vmatprep.subr.bf16.mxu1 %v634_v9  ;;  %p714_p7 = pnand %p713_p3, %p707_p8 }
  0x68   : > { %330 = vmatpush1.bf16.msra.mxu0 %v636_v10  ;;  %556 = vmatpush1.bf16.msra.mxu1 %v636_v10 }
  0x69   : > { %331 = vmatprep.subr.bf16.mxu0 %v637_v11  ;;  %549 = vmatprep.subr.bf16.mxu1 %v637_v11 }
  0x6c   : > { %332 = vmatpush1.bf16.msra.mxu0 %v639_v12  ;;  %557 = vmatpush1.bf16.msra.mxu1 %v639_v12 }
  0x6d   : > { %333 = vmatprep.subr.bf16.mxu0 %v640_v13  ;;  %550 = vmatprep.subr.bf16.mxu1 %v640_v13 }
  0x70   : > { %334 = vmatpush1.bf16.msra.mxu0 %v642_v14  ;;  %558 = vmatpush1.bf16.msra.mxu1 %v642_v14 }
  0x71   : > { %335 = vmatprep.subr.bf16.mxu0 %v643_v15  ;;  %551 = vmatprep.subr.bf16.mxu1 %v643_v15 }
  0x74   : > { %336 = vmatpush1.bf16.msra.mxu0 %v645_v16  ;;  %559 = vmatpush1.bf16.msra.mxu1 %v645_v16 }
  0x77   : > { %354 = vmatmul.mubr.bf16.vlgmr.msra.gmra.mrb[0].mxu0 %v211_v21  ;;  %364 = vmatmul.mubr.bf16.vlgmr.msra.gmra.mrb[0].mxu1 %v212_v22 }
 0x14a   : > { %v355_v30 = vpop.f32.mrb[0].mxu0  ;;  %v365_v31 = vpop.f32.mrb[0].mxu1 }
 0x14b   : > { %v356_v32 = vadd.f32 %v355_v30, %v234_v28  ;;  %v366_v33 = vadd.f32 %v365_v31, %v234_v28  ;;  %v357_v34 = vpop.f32.mrb[1].mxu0  ;;  %v367_v35 = vpop.f32.mrb[1].mxu1 }
 0x14c   : > { %v358_v36 = vadd.f32 %v357_v34, %v238_v29  ;;  %v368_v37 = vadd.f32 %v367_v35, %v238_v29  ;;  %v359_v38 = vpop.f32.mrb[2].mxu0  ;;  %v369_v39 = vpop.f32.mrb[2].mxu1 }
 0x14d   : > { %v360_v40 = vadd.f32 %v359_v38, %v234_v28  ;;  %v370_v41 = vadd.f32 %v369_v39, %v234_v28  ;;  %v361_v42 = vpop.f32.mrb[3].mxu0  ;;  %v371_v43 = vpop.f32.mrb[3].mxu1 }
 0x14e   : > { %v538_v44 = vpack.c.bf16 %v358_v36, %v356_v32  ;;  %v540_v45 = vpack.c.bf16 %v368_v37, %v366_v33  ;;  %v362_v46 = vadd.f32 %v361_v42, %v238_v29  ;;  %v372_v47 = vadd.f32 %v371_v43, %v238_v29 }
 0x150   : > { %398 = vst [vmem:[%s203_s8] sm:$0xff] %v538_v44  ;;  %400 = vst [vmem:[%s203_s8 + $0x10] sm:$0xff] %v540_v45  ;;  %v539_v48 = vpack.c.bf16 %v362_v46, %v360_v40  ;;  %v541_v49 = vpack.c.bf16 %v372_v47, %v370_v41 }
 0x152   : > { %399 = vst [vmem:[%s203_s8 + $0x8] sm:$0xff] %v539_v48  ;;  %401 = vst [vmem:[%s203_s8 + $0x18] sm:$0xff] %v541_v49 }
 0x153   : > { %717 = shalt.err (!%p714_p7)
}
 0x154   : > { %s718_s30 = scalar_lea.hbm %s972_s11, 512  ;;  %s722_s10 = scalar_lea.hbm %s1018_s3, 2048 }
 0x155   : > { %p719_p9 = scmp.ne.s32.totalorder %s972_s11, %s718_s30  ;;  %p723_p5 = scmp.lt.u32.totalorder %s972_s11, %s1018_s3 }
 0x156   : > { %p724_p10 = scmp.lt.u32.totalorder %s722_s10, %s718_s30  ;;  %p726_p4 = scmp.lt.u32.totalorder %s718_s30, %s972_s11 }
 0x157   : > { %p720_p1 = pnand %p719_p9, %p890_p12 }
 0x158   : > { %p725_p2 = por %p724_p10, %p723_p5 }
 0x159   : > { %p721_p0 = pneg %p720_p1 }
 0x15a   : > { %p727_p6 = por %p726_p4, %p725_p2 }
 0x15c   : > { %p728_p8 = pnand %p727_p6, %p721_p0 }
 0x15e   : > { %731 = shalt.err (!%p728_p8)
}
 0x15f   : > { %s782_s20 = smov 128   ;;  %s783_s8 = smov 8  }
 0x160   : > { %566 = dma.vmem_to_hbm [thread:$0]  (%p890_p12), %s967_s9, 512, %s972_s11, %s403_s16, %s782_s20, %s782_s20, %s783_s8  }
 0x161 PF: > { %p583_p11 = scmp.ge.s32.totalorder %s774_s15, 2  ;;  %s432_s4 = sand.u32 1, %s762_s12  }
 0x162   : > { %p1033_p13 = scmp.ne.s32.totalorder %s1023_s19, 0  ;;  %s433_s25 = scalar_lea.sflag [#allocation4], %s432_s4 }
 0x164   : > { %p577_p3 = pnand %p583_p11, %p1033_p13 }
 0x166   : > { %757 = dma.done.wait (!%p577_p3), %s433_s25, 512  }
 0x167   : > { %759 = vsyncadd (!%p577_p3), %s433_s25, 4294966784  ;;  %p17_p7 = scmp.ge.s32.totalorder %s857_s24, 6   ;;  %s1034_s12 = smov %s766_s13 }
 0x168   : > { %s1035_s13 = smov %s770_s14  ;;  %s1036_s14 = smov %s886_s17 }
 0x169   : > { %s1037_s15 = smov %s857_s24  ;;  %19 = sbr.rel (!%p17_p7) target bundleno = 6 (0x6), region = 81 }
 0x170   :  { %438 = vsyncpa [#allocation3], 1 }
 0x171   :  { %440 = vsyncpa [#allocation3 + $0x1], 1 }
 0x172   :  { %441 = vsyncpa [#allocation6], 1 }
 0x173   :  { %442 = vsyncpa [#allocation4], 1 }
 0x174   :  { %444 = vsyncpa [#allocation4 + $0x1], 1 }

</bundles_post_ra>
